<compile_context>
chip_gen: v6e
topology: v6e:2x2x1
jax: 0.10.0
libtpu: 0.0.40
codegen_flags: <defaults>
</compile_context>

<pallas_src>
import numpy as np
import jax
import jax.numpy as jnp
from jax import lax
from jax.experimental import pallas as pl
from jax.experimental.pallas import tpu as pltpu  # noqa: F401  (TPU backend)

# ---------------- small synthetic T5 config ----------------
VOCAB = 64
D_MODEL = 32
N_HEADS = 4
D_KV = 8
D_FF = 64
NUM_LAYERS = 2          # encoder layers
NUM_DEC_LAYERS = 2      # decoder layers
NUM_BUCKETS = 32
MAX_DISTANCE = 128
EPS = 1e-6
BATCH = 2
SEQ = 8
DOC_SIZE = 2            # == batch, so the [:doc_size] slices are faithful no-ops
INNER = N_HEADS * D_KV
NEG = float(np.finfo(np.float32).min)


# ============================ in-kernel helpers ============================

def _rms(x, w):
    """T5 RMSNorm; w is (1, D)."""
    var = jnp.mean(x * x, axis=-1, keepdims=True)
    return x * lax.rsqrt(var + EPS) * w


def _attend(q2d, k2d, v2d, b, lq, lk, bias_fn):
    """Multi-head T5 attention (no 1/sqrt(d) scaling, additive bias).

    q2d: (b*lq, INNER), k2d/v2d: (b*lk, INNER). Static per-head loop; each head
    is one batched dot (batch dim = b) so all heads stay inside one kernel
    invocation. Returns (b*lq, INNER) with heads concatenated on lanes.
    """
    outs = []
    for hd in range(N_HEADS):
        sl = slice(hd * D_KV, (hd + 1) * D_KV)
        qh = q2d[:, sl].reshape(b, lq, D_KV)
        kh = k2d[:, sl].reshape(b, lk, D_KV)
        vh = v2d[:, sl].reshape(b, lk, D_KV)
        s = jnp.einsum('bqd,bkd->bqk', qh, kh,
                       preferred_element_type=jnp.float32)
        s = s + bias_fn(hd)
        m = jnp.max(s, axis=-1, keepdims=True)
        e = jnp.exp(s - m)
        p = e * pl.reciprocal(jnp.sum(e, axis=-1, keepdims=True), approx=True)
        oh = jnp.einsum('bqk,bkd->bqd', p, vh,
                        preferred_element_type=jnp.float32)
        outs.append(oh.reshape(b * lq, D_KV))
    return jnp.concatenate(outs, axis=-1)


# ============================ the fused kernel ============================

def _t5_fused_kernel(
        # encoder operands
        x_ref,        # (B*L, D)   embedded encoder input
        mask_ref,     # (B, L)     additive encoder mask: (1 - mask) * NEG
        pb0_ref,      # (H, L, L)  encoder layer-0 relative position bias
        e_wqkv_ref,   # (NE, D, 3*INNER)
        e_wo_ref,     # (NE, INNER, D)
        e_lnsa_ref,   # (NE, 1, D)
        e_wi_ref,     # (NE, D, FF)
        e_wff_ref,    # (NE, FF, D)
        e_lnff_ref,   # (NE, 1, D)
        e_lnf_ref,    # (1, D)
        # decoder operands
        dx_ref,       # (B, D)     embedded decoder input (token id 0, seq len 1)
        d_wqkv_ref,   # (ND, D, 3*INNER)  self-attn
        d_wosa_ref,   # (ND, INNER, D)
        d_lnsa_ref,   # (ND, 1, D)
        d_wqca_ref,   # (ND, D, INNER)    cross-attn q
        d_wkvca_ref,  # (ND, D, 2*INNER)  cross-attn k|v
        d_woca_ref,   # (ND, INNER, D)
        d_lnca_ref,   # (ND, 1, D)
        d_wi_ref,     # (ND, D, FF)
        d_wff_ref,    # (ND, FF, D)
        d_lnff_ref,   # (ND, 1, D)
        d_lnf_ref,    # (1, D)
        dense_w_ref,  # (D, 2)
        dense_b_ref,  # (1, 2)
        # output
        out_ref,      # (B, 2)
):
    f32 = jnp.float32
    mask_add = mask_ref[...]                 # (B, L)
    h = x_ref[...]                           # (B*L, D)

    # ------------------------------ encoder ------------------------------
    for i in range(NUM_LAYERS):
        # self-attention block
        normed = _rms(h, e_lnsa_ref[i])
        qkv = jnp.dot(normed, e_wqkv_ref[i], preferred_element_type=f32)
        q2d = qkv[:, :INNER]
        k2d = qkv[:, INNER:2 * INNER]
        v2d = qkv[:, 2 * INNER:]
        if i == 0:
            bias_fn = lambda hd: pb0_ref[hd] + mask_add[:, None, :]
        else:
            bias_fn = lambda hd: mask_add[:, None, :]
        attn = _attend(q2d, k2d, v2d, DOC_SIZE, SEQ, SEQ, bias_fn)
        h = h + jnp.dot(attn, e_wo_ref[i], preferred_element_type=f32)
        # feed-forward block
        normed = _rms(h, e_lnff_ref[i])
        ff = jnp.maximum(jnp.dot(normed, e_wi_ref[i],
                                 preferred_element_type=f32), 0.0)
        h = h + jnp.dot(ff, e_wff_ref[i], preferred_element_type=f32)
    enc_h = _rms(h, e_lnf_ref[...])          # (B*L, D)

    # --------------------------- decoder (Lq = 1) ---------------------------
    dh = dx_ref[...]                         # (B, D)
    for i in range(NUM_DEC_LAYERS):
        # self-attention: Lq = Lk = 1, all-ones mask -> additive bias 0.
        # (Layer-0 relative bias over a single key cannot change a singleton
        #  softmax, so it is omitted here; see module docstring.)
        normed = _rms(dh, d_lnsa_ref[i])
        qkv = jnp.dot(normed, d_wqkv_ref[i], preferred_element_type=f32)
        q2d = qkv[:, :INNER]
        k2d = qkv[:, INNER:2 * INNER]
        v2d = qkv[:, 2 * INNER:]
        sa = _attend(q2d, k2d, v2d, DOC_SIZE, 1, 1, lambda hd: 0.0)
        dh = dh + jnp.dot(sa, d_wosa_ref[i], preferred_element_type=f32)
        # cross-attention against the (already final-normed) encoder output
        normed = _rms(dh, d_lnca_ref[i])
        q2d = jnp.dot(normed, d_wqca_ref[i], preferred_element_type=f32)
        kv = jnp.dot(enc_h, d_wkvca_ref[i], preferred_element_type=f32)
        k2d = kv[:, :INNER]
        v2d = kv[:, INNER:]
        ca = _attend(q2d, k2d, v2d, DOC_SIZE, 1, SEQ,
                     lambda hd: mask_add[:, None, :])
        dh = dh + jnp.dot(ca, d_woca_ref[i], preferred_element_type=f32)
        # feed-forward block
        normed = _rms(dh, d_lnff_ref[i])
        ff = jnp.maximum(jnp.dot(normed, d_wi_ref[i],
                                 preferred_element_type=f32), 0.0)
        dh = dh + jnp.dot(ff, d_wff_ref[i], preferred_element_type=f32)
    dh = _rms(dh, d_lnf_ref[...])            # (B, D)

    # ------------------------- final 2-way dense head -------------------------
    out_ref[...] = (jnp.dot(dh, dense_w_ref[...], preferred_element_type=f32)
                    + dense_b_ref[...])


# ============================ JAX glue ============================

def _rel_pos_bucket(rel, bidirectional, num_buckets, max_distance):
    rel = np.asarray(rel, dtype=np.int64)
    buckets = np.zeros_like(rel)
    if bidirectional:
        num_buckets //= 2
        buckets += (rel > 0).astype(np.int64) * num_buckets
        rel = np.abs(rel)
    else:
        rel = -np.minimum(rel, 0)
    max_exact = num_buckets // 2
    is_small = rel < max_exact
    rel_safe = np.maximum(rel, 1).astype(np.float64)
    large = max_exact + (np.log(rel_safe / max_exact)
                         / np.log(max_distance / max_exact)
                         * (num_buckets - max_exact)).astype(np.int64)
    large = np.minimum(large, num_buckets - 1)
    buckets += np.where(is_small, rel, large)
    return buckets


def compute_position_bias(qlen, klen, bidirectional, rel_emb):
    """Returns (H, qlen, klen) relative position bias."""
    ctx = np.arange(qlen)[:, None]
    mem = np.arange(klen)[None, :]
    buckets = _rel_pos_bucket(mem - ctx, bidirectional, NUM_BUCKETS, MAX_DISTANCE)
    vals = jnp.take(rel_emb, jnp.asarray(buckets, dtype=jnp.int32), axis=0)  # (q,k,H)
    return jnp.transpose(vals, (2, 0, 1))


def pack_params(params):
    """Stack per-layer weights (leading layer axis) and fuse QKV / KV."""
    enc, dec = params['enc'], params['dec']

    def fuse_qkv(p):
        return jnp.concatenate([p['q'], p['k'], p['v']], axis=1)

    def fuse_kv(p):
        return jnp.concatenate([p['k'], p['v']], axis=1)

    return {
        'shared': params['shared'],
        'pb0_enc': compute_position_bias(SEQ, SEQ, True, enc[0]['rel']),
        'e_wqkv': jnp.stack([fuse_qkv(lp['sa']) for lp in enc]),
        'e_wo':   jnp.stack([lp['sa']['o'] for lp in enc]),
        'e_lnsa': jnp.stack([lp['sa']['ln'].reshape(1, -1) for lp in enc]),
        'e_wi':   jnp.stack([lp['ff']['wi'] for lp in enc]),
        'e_wff':  jnp.stack([lp['ff']['wo'] for lp in enc]),
        'e_lnff': jnp.stack([lp['ff']['ln'].reshape(1, -1) for lp in enc]),
        'e_lnf':  params['enc_final_ln'].reshape(1, -1),
        'd_wqkv_sa': jnp.stack([fuse_qkv(lp['sa']) for lp in dec]),
        'd_wo_sa':   jnp.stack([lp['sa']['o'] for lp in dec]),
        'd_lnsa':    jnp.stack([lp['sa']['ln'].reshape(1, -1) for lp in dec]),
        'd_wq_ca':   jnp.stack([lp['ca']['q'] for lp in dec]),
        'd_wkv_ca':  jnp.stack([fuse_kv(lp['ca']) for lp in dec]),
        'd_wo_ca':   jnp.stack([lp['ca']['o'] for lp in dec]),
        'd_lnca':    jnp.stack([lp['ca']['ln'].reshape(1, -1) for lp in dec]),
        'd_wi':      jnp.stack([lp['ff']['wi'] for lp in dec]),
        'd_wff':     jnp.stack([lp['ff']['wo'] for lp in dec]),
        'd_lnff':    jnp.stack([lp['ff']['ln'].reshape(1, -1) for lp in dec]),
        'd_lnf':     params['dec_final_ln'].reshape(1, -1),
        'dense_w':   params['dense_w'],
        'dense_b':   params['dense_b'].reshape(1, -1),
    }


def t5_forward(packed, input_ids, attention_mask):
    assert input_ids.shape[0] >= DOC_SIZE
    B, L = input_ids.shape
    # embedding gather + additive mask stay in JAX glue (single XLA ops)
    x = jnp.take(packed['shared'], input_ids, axis=0).reshape(B * L, D_MODEL)
    dec_x = jnp.broadcast_to(packed['shared'][0:1], (B, D_MODEL))  # token id 0
    mask_add = (1.0 - attention_mask) * NEG                        # (B, L)

    return pl.pallas_call(
        _t5_fused_kernel,
        out_shape=jax.ShapeDtypeStruct((B, 2), jnp.float32),
        # no grid: every operand is mapped whole into VMEM (total < 1 MiB)
    )(x, mask_add, packed['pb0_enc'],
      packed['e_wqkv'], packed['e_wo'], packed['e_lnsa'], packed['e_wi'],
      packed['e_wff'], packed['e_lnff'], packed['e_lnf'],
      dec_x,
      packed['d_wqkv_sa'], packed['d_wo_sa'], packed['d_lnsa'],
      packed['d_wq_ca'], packed['d_wkv_ca'], packed['d_wo_ca'], packed['d_lnca'],
      packed['d_wi'], packed['d_wff'], packed['d_lnff'], packed['d_lnf'],
      packed['dense_w'], packed['dense_b'])


# ============================ pure-JAX reference ============================

def _ref_rmsnorm(x, w):
    var = jnp.mean(x * x, axis=-1, keepdims=True)
    return x * lax.rsqrt(var + EPS) * w


def _ref_attention(xq, xkv, p, bias):
    B, Lq, D = xq.shape
    Lk = xkv.shape[1]

    def proj(x, w, Lx):
        return (x.reshape(B * Lx, D) @ w).reshape(B, Lx, N_HEADS, D_KV).transpose(0, 2, 1, 3)

    q = proj(xq, p['q'], Lq)
    k = proj(xkv, p['k'], Lk)
    v = proj(xkv, p['v'], Lk)
    s = jnp.einsum('bhqd,bhkd->bhqk', q, k) + bias
    a = jax.nn.softmax(s, axis=-1)
    o = jnp.einsum('bhqk,bhkd->bhqd', a, v)
    o = o.transpose(0, 2, 1, 3).reshape(B * Lq, INNER)
    return (o @ p['o']).reshape(B, Lq, D)


def _ref_sa(h, p, bias):
    B, L, D = h.shape
    normed = _ref_rmsnorm(h.reshape(B * L, D), p['ln']).reshape(B, L, D)
    return h + _ref_attention(normed, normed, p, bias)


def _ref_ca(h, enc_h, p, bias):
    B, L, D = h.shape
    normed = _ref_rmsnorm(h.reshape(B * L, D), p['ln']).reshape(B, L, D)
    return h + _ref_attention(normed, enc_h, p, bias)


def _ref_ff(h, p):
    B, L, D = h.shape
    normed = _ref_rmsnorm(h.reshape(B * L, D), p['ln'])
    y = jnp.maximum(normed @ p['wi'], 0.0) @ p['wo']
    return h + y.reshape(B, L, D)


def t5_forward_ref(params, input_ids, attention_mask):
    B, L = input_ids.shape
    ext_mask = (1.0 - attention_mask)[:, None, None, :] * NEG       # (B,1,1,L)
    h = jnp.take(params['shared'], input_ids, axis=0)
    for i, lp in enumerate(params['enc']):
        if i == 0:
            pb = compute_position_bias(L, L, True, lp['rel'])[None]
        else:
            pb = jnp.zeros((1, N_HEADS, L, L), jnp.float32)
        h = _ref_sa(h, lp['sa'], pb + ext_mask)
        h = _ref_ff(h, lp['ff'])
    enc_h = _ref_rmsnorm(h.reshape(B * L, D_MODEL),
                         params['enc_final_ln']).reshape(B, L, D_MODEL)

    dh = jnp.take(params['shared'], jnp.zeros((B, 1), jnp.int32), axis=0)
    for i, lp in enumerate(params['dec']):
        if i == 0:
            pb = compute_position_bias(1, 1, False, lp['rel'])[None]
        else:
            pb = jnp.zeros((1, N_HEADS, 1, 1), jnp.float32)
        dh = _ref_sa(dh, lp['sa'], pb + jnp.zeros((B, 1, 1, 1), jnp.float32))
        dh = _ref_ca(dh, enc_h, lp['ca'],
                     jnp.zeros((1, N_HEADS, 1, L), jnp.float32) + ext_mask)
        dh = _ref_ff(dh, lp['ff'])
    dh = _ref_rmsnorm(dh.reshape(B, D_MODEL), params['dec_final_ln'])
    return dh @ params['dense_w'] + params['dense_b']


# ============================ params ============================

def init_params(key):
    ks = list(jax.random.split(key, 256))
    idx = [0]

    def nxt():
        k = ks[idx[0]]
        idx[0] += 1
        return k

    def w(shape, scale=0.02):
        return (scale * jax.random.normal(nxt(), shape)).astype(jnp.float32)

    def attn_p():
        # weights stored as (in, out) == PyTorch nn.Linear weight transposed
        return {'q': w((D_MODEL, INNER)), 'k': w((D_MODEL, INNER)),
                'v': w((D_MODEL, INNER)), 'o': w((INNER, D_MODEL)),
                'ln': jnp.ones((D_MODEL,), jnp.float32)}

    def ff_p():
        return {'wi': w((D_MODEL, D_FF)), 'wo': w((D_FF, D_MODEL)),
                'ln': jnp.ones((D_MODEL,), jnp.float32)}

    params = {'shared': w((VOCAB, D_MODEL), 1.0)}
    enc = []
    for i in range(NUM_LAYERS):
        lp = {'sa': attn_p(), 'ff': ff_p()}
        if i == 0:
            lp['rel'] = w((NUM_BUCKETS, N_HEADS))
        enc.append(lp)
    params['enc'] = enc
    params['enc_final_ln'] = jnp.ones((D_MODEL,), jnp.float32)
    dec = []
    for i in range(NUM_DEC_LAYERS):
        lp = {'sa': attn_p(), 'ca': attn_p(), 'ff': ff_p()}
        if i == 0:
            lp['rel'] = w((NUM_BUCKETS, N_HEADS))
        dec.append(lp)
    params['dec'] = dec
    params['dec_final_ln'] = jnp.ones((D_MODEL,), jnp.float32)
    params['dense_w'] = w((D_MODEL, 2))
    params['dense_b'] = jnp.zeros((2,), jnp.float32)
    return params


if __name__ == "__main__":
    key = jax.random.PRNGKey(0)
    pkey, ikey = jax.random.split(key)
    params = init_params(pkey)
    packed = pack_params(params)
    input_ids = jax.random.randint(ikey, (BATCH, SEQ), 0, VOCAB, dtype=jnp.int32)
    attention_mask = jnp.ones((BATCH, SEQ), jnp.float32)

    fwd = jax.jit(t5_forward)
    out = fwd(packed, input_ids, attention_mask)
    jax.block_until_ready(out)
    assert out.shape == (BATCH, 2) and out.dtype == jnp.float32

    # correctness check against a pure-JAX reference (loose tolerance to cover
    # the approx-reciprocal softmax inside the kernel)
    ref = t5_forward_ref(params, input_ids, attention_mask)
    np.testing.assert_allclose(np.asarray(out), np.asarray(ref),
                               rtol=2e-3, atol=2e-3)
    print("KERNEL_OK")
</pallas_src>

<mosaic_0001>
module attributes {stable_mosaic.version = 11 : i64} {
  func.func @_t5_fused_kernel(%arg0: memref<16x32xf32, #tpu.memory_space<vmem>>, %arg1: memref<2x8xf32, #tpu.memory_space<vmem>>, %arg2: memref<4x8x8xf32, #tpu.memory_space<vmem>>, %arg3: memref<2x32x96xf32, #tpu.memory_space<vmem>>, %arg4: memref<2x32x32xf32, #tpu.memory_space<vmem>>, %arg5: memref<2x1x32xf32, #tpu.memory_space<vmem>>, %arg6: memref<2x32x64xf32, #tpu.memory_space<vmem>>, %arg7: memref<2x64x32xf32, #tpu.memory_space<vmem>>, %arg8: memref<2x1x32xf32, #tpu.memory_space<vmem>>, %arg9: memref<1x32xf32, #tpu.memory_space<vmem>>, %arg10: memref<2x32xf32, #tpu.memory_space<vmem>>, %arg11: memref<2x32x96xf32, #tpu.memory_space<vmem>>, %arg12: memref<2x32x32xf32, #tpu.memory_space<vmem>>, %arg13: memref<2x1x32xf32, #tpu.memory_space<vmem>>, %arg14: memref<2x32x32xf32, #tpu.memory_space<vmem>>, %arg15: memref<2x32x64xf32, #tpu.memory_space<vmem>>, %arg16: memref<2x32x32xf32, #tpu.memory_space<vmem>>, %arg17: memref<2x1x32xf32, #tpu.memory_space<vmem>>, %arg18: memref<2x32x64xf32, #tpu.memory_space<vmem>>, %arg19: memref<2x64x32xf32, #tpu.memory_space<vmem>>, %arg20: memref<2x1x32xf32, #tpu.memory_space<vmem>>, %arg21: memref<1x32xf32, #tpu.memory_space<vmem>>, %arg22: memref<32x2xf32, #tpu.memory_space<vmem>>, %arg23: memref<1x2xf32, #tpu.memory_space<vmem>>, %arg24: memref<2x2xf32, #tpu.memory_space<vmem>>) attributes {dimension_semantics = [], scalar_prefetch = 0 : i64, scratch_operands = 0 : i64, tpu.core_type = #tpu.core_type<tc>} {
    %c0 = arith.constant 0 : index
    %c0_0 = arith.constant 0 : index
    %0 = vector.load %arg1[%c0, %c0_0] : memref<2x8xf32, #tpu.memory_space<vmem>>, vector<2x8xf32>
    %c0_1 = arith.constant 0 : index
    %c0_2 = arith.constant 0 : index
    %1 = vector.load %arg0[%c0_1, %c0_2] : memref<16x32xf32, #tpu.memory_space<vmem>>, vector<16x32xf32>
    %c0_3 = arith.constant 0 : index
    %c0_4 = arith.constant 0 : index
    %c0_5 = arith.constant 0 : index
    %2 = vector.load %arg5[%c0_3, %c0_4, %c0_5] : memref<2x1x32xf32, #tpu.memory_space<vmem>>, vector<1x1x32xf32>
    %3 = vector.shape_cast %2 : vector<1x1x32xf32> to vector<1x32xf32>
    %4 = arith.mulf %1, %1 : vector<16x32xf32>
    %cst = arith.constant dense<0.000000e+00> : vector<16xf32>
    %5 = vector.multi_reduction <add>, %4, %cst [1] : vector<16x32xf32> to vector<16xf32>
    %6 = vector.shape_cast %5 : vector<16xf32> to vector<16x1xf32>
    %cst_6 = arith.constant 3.200000e+01 : f32
    %7 = vector.broadcast %cst_6 : f32 to vector<16x1xf32>
    %8 = arith.divf %6, %7 : vector<16x1xf32>
    %cst_7 = arith.constant 9.99999997E-7 : f32
    %9 = vector.broadcast %cst_7 : f32 to vector<16x1xf32>
    %10 = arith.addf %8, %9 : vector<16x1xf32>
    %11 = math.rsqrt %10 : vector<16x1xf32>
    %12 = vector.broadcast %11 : vector<16x1xf32> to vector<16x32xf32>
    %13 = arith.mulf %1, %12 : vector<16x32xf32>
    %14 = vector.broadcast %3 : vector<1x32xf32> to vector<16x32xf32>
    %15 = arith.mulf %13, %14 : vector<16x32xf32>
    %c0_8 = arith.constant 0 : index
    %c0_9 = arith.constant 0 : index
    %c0_10 = arith.constant 0 : index
    %16 = vector.load %arg3[%c0_8, %c0_9, %c0_10] : memref<2x32x96xf32, #tpu.memory_space<vmem>>, vector<1x32x96xf32>
    %17 = vector.shape_cast %16 : vector<1x32x96xf32> to vector<32x96xf32>
    %cst_11 = arith.constant dense<0.000000e+00> : vector<16x96xf32>
    %18 = tpu.matmul %15, %17, %cst_11 {dimension_numbers = #tpu.dot_dimension_numbers<[1], [0], [0], [1], [0, 0, 1, 1], [], []>} : vector<16x32xf32>, vector<32x96xf32>, vector<16x96xf32> -> vector<16x96xf32>
    %19 = vector.extract_strided_slice %18 {offsets = [0, 0], sizes = [16, 32], strides = [1, 1]} : vector<16x96xf32> to vector<16x32xf32>
    %20 = vector.extract_strided_slice %18 {offsets = [0, 32], sizes = [16, 32], strides = [1, 1]} : vector<16x96xf32> to vector<16x32xf32>
    %21 = vector.extract_strided_slice %18 {offsets = [0, 64], sizes = [16, 32], strides = [1, 1]} : vector<16x96xf32> to vector<16x32xf32>
    %22 = vector.extract_strided_slice %19 {offsets = [0, 0], sizes = [16, 8], strides = [1, 1]} : vector<16x32xf32> to vector<16x8xf32>
    %23 = vector.shape_cast %22 : vector<16x8xf32> to vector<2x8x8xf32>
    %24 = vector.extract_strided_slice %20 {offsets = [0, 0], sizes = [16, 8], strides = [1, 1]} : vector<16x32xf32> to vector<16x8xf32>
    %25 = vector.shape_cast %24 : vector<16x8xf32> to vector<2x8x8xf32>
    %26 = vector.extract_strided_slice %21 {offsets = [0, 0], sizes = [16, 8], strides = [1, 1]} : vector<16x32xf32> to vector<16x8xf32>
    %27 = vector.shape_cast %26 : vector<16x8xf32> to vector<2x8x8xf32>
    "tpu.trace_start"() <{level = 10 : i32, message = "bqd,bkd->bqk"}> : () -> ()
    %cst_12 = arith.constant dense<0.000000e+00> : vector<2x8x8xf32>
    %28 = tpu.matmul %23, %25, %cst_12 {dimension_numbers = #tpu.dot_dimension_numbers<[2], [2], [1], [1], [0, 0, 0, 1, 1, 1], [0], [0]>} : vector<2x8x8xf32>, vector<2x8x8xf32>, vector<2x8x8xf32> -> vector<2x8x8xf32>
    "tpu.trace_stop"() : () -> ()
    %c0_13 = arith.constant 0 : index
    %c0_14 = arith.constant 0 : index
    %c0_15 = arith.constant 0 : index
    %29 = vector.load %arg2[%c0_13, %c0_14, %c0_15] : memref<4x8x8xf32, #tpu.memory_space<vmem>>, vector<1x8x8xf32>
    %30 = vector.shape_cast %29 : vector<1x8x8xf32> to vector<8x8xf32>
    %31 = vector.shape_cast %0 : vector<2x8xf32> to vector<2x1x8xf32>
    %32 = vector.shape_cast %30 : vector<8x8xf32> to vector<1x8x8xf32>
    %33 = vector.broadcast %32 : vector<1x8x8xf32> to vector<2x8x8xf32>
    %34 = vector.broadcast %31 : vector<2x1x8xf32> to vector<2x8x8xf32>
    %35 = arith.addf %33, %34 : vector<2x8x8xf32>
    %36 = arith.addf %28, %35 : vector<2x8x8xf32>
    %cst_16 = arith.constant dense<0xFF800000> : vector<2x8xf32>
    %37 = vector.multi_reduction <maximumf>, %36, %cst_16 [2] : vector<2x8x8xf32> to vector<2x8xf32>
    %38 = vector.shape_cast %37 : vector<2x8xf32> to vector<2x8x1xf32>
    %39 = vector.broadcast %38 : vector<2x8x1xf32> to vector<2x8x8xf32>
    %40 = arith.subf %36, %39 : vector<2x8x8xf32>
    %41 = math.exp %40 : vector<2x8x8xf32>
    %cst_17 = arith.constant dense<0.000000e+00> : vector<2x8xf32>
    %42 = vector.multi_reduction <add>, %41, %cst_17 [2] : vector<2x8x8xf32> to vector<2x8xf32>
    %43 = vector.shape_cast %42 : vector<2x8xf32> to vector<2x8x1xf32>
    %44 = tpu.reciprocal %43 {approx = true} : vector<2x8x1xf32> -> vector<2x8x1xf32>
    %45 = vector.broadcast %44 : vector<2x8x1xf32> to vector<2x8x8xf32>
    %46 = arith.mulf %41, %45 : vector<2x8x8xf32>
    "tpu.trace_start"() <{level = 10 : i32, message = "bqk,bkd->bqd"}> : () -> ()
    %cst_18 = arith.constant dense<0.000000e+00> : vector<2x8x8xf32>
    %47 = tpu.matmul %46, %27, %cst_18 {dimension_numbers = #tpu.dot_dimension_numbers<[2], [1], [1], [2], [0, 0, 0, 1, 1, 2], [0], [0]>} : vector<2x8x8xf32>, vector<2x8x8xf32>, vector<2x8x8xf32> -> vector<2x8x8xf32>
    "tpu.trace_stop"() : () -> ()
    %48 = vector.shape_cast %47 : vector<2x8x8xf32> to vector<16x8xf32>
    %49 = vector.extract_strided_slice %19 {offsets = [0, 8], sizes = [16, 8], strides = [1, 1]} : vector<16x32xf32> to vector<16x8xf32>
    %50 = vector.shape_cast %49 : vector<16x8xf32> to vector<2x8x8xf32>
    %51 = vector.extract_strided_slice %20 {offsets = [0, 8], sizes = [16, 8], strides = [1, 1]} : vector<16x32xf32> to vector<16x8xf32>
    %52 = vector.shape_cast %51 : vector<16x8xf32> to vector<2x8x8xf32>
    %53 = vector.extract_strided_slice %21 {offsets = [0, 8], sizes = [16, 8], strides = [1, 1]} : vector<16x32xf32> to vector<16x8xf32>
    %54 = vector.shape_cast %53 : vector<16x8xf32> to vector<2x8x8xf32>
    "tpu.trace_start"() <{level = 10 : i32, message = "bqd,bkd->bqk"}> : () -> ()
    %cst_19 = arith.constant dense<0.000000e+00> : vector<2x8x8xf32>
    %55 = tpu.matmul %50, %52, %cst_19 {dimension_numbers = #tpu.dot_dimension_numbers<[2], [2], [1], [1], [0, 0, 0, 1, 1, 1], [0], [0]>} : vector<2x8x8xf32>, vector<2x8x8xf32>, vector<2x8x8xf32> -> vector<2x8x8xf32>
    "tpu.trace_stop"() : () -> ()
    %c1 = arith.constant 1 : index
    %c0_20 = arith.constant 0 : index
    %c0_21 = arith.constant 0 : index
    %56 = vector.load %arg2[%c1, %c0_20, %c0_21] : memref<4x8x8xf32, #tpu.memory_space<vmem>>, vector<1x8x8xf32>
    %57 = vector.shape_cast %56 : vector<1x8x8xf32> to vector<8x8xf32>
    %58 = vector.shape_cast %0 : vector<2x8xf32> to vector<2x1x8xf32>
    %59 = vector.shape_cast %57 : vector<8x8xf32> to vector<1x8x8xf32>
    %60 = vector.broadcast %59 : vector<1x8x8xf32> to vector<2x8x8xf32>
    %61 = vector.broadcast %58 : vector<2x1x8xf32> to vector<2x8x8xf32>
    %62 = arith.addf %60, %61 : vector<2x8x8xf32>
    %63 = arith.addf %55, %62 : vector<2x8x8xf32>
    %cst_22 = arith.constant dense<0xFF800000> : vector<2x8xf32>
    %64 = vector.multi_reduction <maximumf>, %63, %cst_22 [2] : vector<2x8x8xf32> to vector<2x8xf32>
    %65 = vector.shape_cast %64 : vector<2x8xf32> to vector<2x8x1xf32>
    %66 = vector.broadcast %65 : vector<2x8x1xf32> to vector<2x8x8xf32>
    %67 = arith.subf %63, %66 : vector<2x8x8xf32>
    %68 = math.exp %67 : vector<2x8x8xf32>
    %cst_23 = arith.constant dense<0.000000e+00> : vector<2x8xf32>
    %69 = vector.multi_reduction <add>, %68, %cst_23 [2] : vector<2x8x8xf32> to vector<2x8xf32>
    %70 = vector.shape_cast %69 : vector<2x8xf32> to vector<2x8x1xf32>
    %71 = tpu.reciprocal %70 {approx = true} : vector<2x8x1xf32> -> vector<2x8x1xf32>
    %72 = vector.broadcast %71 : vector<2x8x1xf32> to vector<2x8x8xf32>
    %73 = arith.mulf %68, %72 : vector<2x8x8xf32>
    "tpu.trace_start"() <{level = 10 : i32, message = "bqk,bkd->bqd"}> : () -> ()
    %cst_24 = arith.constant dense<0.000000e+00> : vector<2x8x8xf32>
    %74 = tpu.matmul %73, %54, %cst_24 {dimension_numbers = #tpu.dot_dimension_numbers<[2], [1], [1], [2], [0, 0, 0, 1, 1, 2], [0], [0]>} : vector<2x8x8xf32>, vector<2x8x8xf32>, vector<2x8x8xf32> -> vector<2x8x8xf32>
    "tpu.trace_stop"() : () -> ()
    %75 = vector.shape_cast %74 : vector<2x8x8xf32> to vector<16x8xf32>
    %76 = vector.extract_strided_slice %19 {offsets = [0, 16], sizes = [16, 8], strides = [1, 1]} : vector<16x32xf32> to vector<16x8xf32>
    %77 = vector.shape_cast %76 : vector<16x8xf32> to vector<2x8x8xf32>
    %78 = vector.extract_strided_slice %20 {offsets = [0, 16], sizes = [16, 8], strides = [1, 1]} : vector<16x32xf32> to vector<16x8xf32>
    %79 = vector.shape_cast %78 : vector<16x8xf32> to vector<2x8x8xf32>
    %80 = vector.extract_strided_slice %21 {offsets = [0, 16], sizes = [16, 8], strides = [1, 1]} : vector<16x32xf32> to vector<16x8xf32>
    %81 = vector.shape_cast %80 : vector<16x8xf32> to vector<2x8x8xf32>
    "tpu.trace_start"() <{level = 10 : i32, message = "bqd,bkd->bqk"}> : () -> ()
    %cst_25 = arith.constant dense<0.000000e+00> : vector<2x8x8xf32>
    %82 = tpu.matmul %77, %79, %cst_25 {dimension_numbers = #tpu.dot_dimension_numbers<[2], [2], [1], [1], [0, 0, 0, 1, 1, 1], [0], [0]>} : vector<2x8x8xf32>, vector<2x8x8xf32>, vector<2x8x8xf32> -> vector<2x8x8xf32>
    "tpu.trace_stop"() : () -> ()
    %c2 = arith.constant 2 : index
    %c0_26 = arith.constant 0 : index
    %c0_27 = arith.constant 0 : index
    %83 = vector.load %arg2[%c2, %c0_26, %c0_27] : memref<4x8x8xf32, #tpu.memory_space<vmem>>, vector<1x8x8xf32>
    %84 = vector.shape_cast %83 : vector<1x8x8xf32> to vector<8x8xf32>
    %85 = vector.shape_cast %0 : vector<2x8xf32> to vector<2x1x8xf32>
    %86 = vector.shape_cast %84 : vector<8x8xf32> to vector<1x8x8xf32>
    %87 = vector.broadcast %86 : vector<1x8x8xf32> to vector<2x8x8xf32>
    %88 = vector.broadcast %85 : vector<2x1x8xf32> to vector<2x8x8xf32>
    %89 = arith.addf %87, %88 : vector<2x8x8xf32>
    %90 = arith.addf %82, %89 : vector<2x8x8xf32>
    %cst_28 = arith.constant dense<0xFF800000> : vector<2x8xf32>
    %91 = vector.multi_reduction <maximumf>, %90, %cst_28 [2] : vector<2x8x8xf32> to vector<2x8xf32>
    %92 = vector.shape_cast %91 : vector<2x8xf32> to vector<2x8x1xf32>
    %93 = vector.broadcast %92 : vector<2x8x1xf32> to vector<2x8x8xf32>
    %94 = arith.subf %90, %93 : vector<2x8x8xf32>
    %95 = math.exp %94 : vector<2x8x8xf32>
    %cst_29 = arith.constant dense<0.000000e+00> : vector<2x8xf32>
    %96 = vector.multi_reduction <add>, %95, %cst_29 [2] : vector<2x8x8xf32> to vector<2x8xf32>
    %97 = vector.shape_cast %96 : vector<2x8xf32> to vector<2x8x1xf32>
    %98 = tpu.reciprocal %97 {approx = true} : vector<2x8x1xf32> -> vector<2x8x1xf32>
    %99 = vector.broadcast %98 : vector<2x8x1xf32> to vector<2x8x8xf32>
    %100 = arith.mulf %95, %99 : vector<2x8x8xf32>
    "tpu.trace_start"() <{level = 10 : i32, message = "bqk,bkd->bqd"}> : () -> ()
    %cst_30 = arith.constant dense<0.000000e+00> : vector<2x8x8xf32>
    %101 = tpu.matmul %100, %81, %cst_30 {dimension_numbers = #tpu.dot_dimension_numbers<[2], [1], [1], [2], [0, 0, 0, 1, 1, 2], [0], [0]>} : vector<2x8x8xf32>, vector<2x8x8xf32>, vector<2x8x8xf32> -> vector<2x8x8xf32>
    "tpu.trace_stop"() : () -> ()
    %102 = vector.shape_cast %101 : vector<2x8x8xf32> to vector<16x8xf32>
    %103 = vector.extract_strided_slice %19 {offsets = [0, 24], sizes = [16, 8], strides = [1, 1]} : vector<16x32xf32> to vector<16x8xf32>
    %104 = vector.shape_cast %103 : vector<16x8xf32> to vector<2x8x8xf32>
    %105 = vector.extract_strided_slice %20 {offsets = [0, 24], sizes = [16, 8], strides = [1, 1]} : vector<16x32xf32> to vector<16x8xf32>
    %106 = vector.shape_cast %105 : vector<16x8xf32> to vector<2x8x8xf32>
    %107 = vector.extract_strided_slice %21 {offsets = [0, 24], sizes = [16, 8], strides = [1, 1]} : vector<16x32xf32> to vector<16x8xf32>
    %108 = vector.shape_cast %107 : vector<16x8xf32> to vector<2x8x8xf32>
    "tpu.trace_start"() <{level = 10 : i32, message = "bqd,bkd->bqk"}> : () -> ()
    %cst_31 = arith.constant dense<0.000000e+00> : vector<2x8x8xf32>
    %109 = tpu.matmul %104, %106, %cst_31 {dimension_numbers = #tpu.dot_dimension_numbers<[2], [2], [1], [1], [0, 0, 0, 1, 1, 1], [0], [0]>} : vector<2x8x8xf32>, vector<2x8x8xf32>, vector<2x8x8xf32> -> vector<2x8x8xf32>
    "tpu.trace_stop"() : () -> ()
    %c3 = arith.constant 3 : index
    %c0_32 = arith.constant 0 : index
    %c0_33 = arith.constant 0 : index
    %110 = vector.load %arg2[%c3, %c0_32, %c0_33] : memref<4x8x8xf32, #tpu.memory_space<vmem>>, vector<1x8x8xf32>
    %111 = vector.shape_cast %110 : vector<1x8x8xf32> to vector<8x8xf32>
    %112 = vector.shape_cast %0 : vector<2x8xf32> to vector<2x1x8xf32>
    %113 = vector.shape_cast %111 : vector<8x8xf32> to vector<1x8x8xf32>
    %114 = vector.broadcast %113 : vector<1x8x8xf32> to vector<2x8x8xf32>
    %115 = vector.broadcast %112 : vector<2x1x8xf32> to vector<2x8x8xf32>
    %116 = arith.addf %114, %115 : vector<2x8x8xf32>
    %117 = arith.addf %109, %116 : vector<2x8x8xf32>
    %cst_34 = arith.constant dense<0xFF800000> : vector<2x8xf32>
    %118 = vector.multi_reduction <maximumf>, %117, %cst_34 [2] : vector<2x8x8xf32> to vector<2x8xf32>
    %119 = vector.shape_cast %118 : vector<2x8xf32> to vector<2x8x1xf32>
    %120 = vector.broadcast %119 : vector<2x8x1xf32> to vector<2x8x8xf32>
    %121 = arith.subf %117, %120 : vector<2x8x8xf32>
    %122 = math.exp %121 : vector<2x8x8xf32>
    %cst_35 = arith.constant dense<0.000000e+00> : vector<2x8xf32>
    %123 = vector.multi_reduction <add>, %122, %cst_35 [2] : vector<2x8x8xf32> to vector<2x8xf32>
    %124 = vector.shape_cast %123 : vector<2x8xf32> to vector<2x8x1xf32>
    %125 = tpu.reciprocal %124 {approx = true} : vector<2x8x1xf32> -> vector<2x8x1xf32>
    %126 = vector.broadcast %125 : vector<2x8x1xf32> to vector<2x8x8xf32>
    %127 = arith.mulf %122, %126 : vector<2x8x8xf32>
    "tpu.trace_start"() <{level = 10 : i32, message = "bqk,bkd->bqd"}> : () -> ()
    %cst_36 = arith.constant dense<0.000000e+00> : vector<2x8x8xf32>
    %128 = tpu.matmul %127, %108, %cst_36 {dimension_numbers = #tpu.dot_dimension_numbers<[2], [1], [1], [2], [0, 0, 0, 1, 1, 2], [0], [0]>} : vector<2x8x8xf32>, vector<2x8x8xf32>, vector<2x8x8xf32> -> vector<2x8x8xf32>
    "tpu.trace_stop"() : () -> ()
    %129 = vector.shape_cast %128 : vector<2x8x8xf32> to vector<16x8xf32>
    %130 = tpu.concatenate %48, %75, %102, %129 in 1 : vector<16x8xf32>, vector<16x8xf32>, vector<16x8xf32>, vector<16x8xf32> -> vector<16x32xf32>
    %c0_37 = arith.constant 0 : index
    %c0_38 = arith.constant 0 : index
    %c0_39 = arith.constant 0 : index
    %131 = vector.load %arg4[%c0_37, %c0_38, %c0_39] : memref<2x32x32xf32, #tpu.memory_space<vmem>>, vector<1x32x32xf32>
    %132 = vector.shape_cast %131 : vector<1x32x32xf32> to vector<32x32xf32>
    %cst_40 = arith.constant dense<0.000000e+00> : vector<16x32xf32>
    %133 = tpu.matmul %130, %132, %cst_40 {dimension_numbers = #tpu.dot_dimension_numbers<[1], [0], [0], [1], [0, 0, 1, 1], [], []>} : vector<16x32xf32>, vector<32x32xf32>, vector<16x32xf32> -> vector<16x32xf32>
    %134 = arith.addf %1, %133 : vector<16x32xf32>
    %c0_41 = arith.constant 0 : index
    %c0_42 = arith.constant 0 : index
    %c0_43 = arith.constant 0 : index
    %135 = vector.load %arg8[%c0_41, %c0_42, %c0_43] : memref<2x1x32xf32, #tpu.memory_space<vmem>>, vector<1x1x32xf32>
    %136 = vector.shape_cast %135 : vector<1x1x32xf32> to vector<1x32xf32>
    %137 = arith.mulf %134, %134 : vector<16x32xf32>
    %cst_44 = arith.constant dense<0.000000e+00> : vector<16xf32>
    %138 = vector.multi_reduction <add>, %137, %cst_44 [1] : vector<16x32xf32> to vector<16xf32>
    %139 = vector.shape_cast %138 : vector<16xf32> to vector<16x1xf32>
    %cst_45 = arith.constant 3.200000e+01 : f32
    %140 = vector.broadcast %cst_45 : f32 to vector<16x1xf32>
    %141 = arith.divf %139, %140 : vector<16x1xf32>
    %cst_46 = arith.constant 9.99999997E-7 : f32
    %142 = vector.broadcast %cst_46 : f32 to vector<16x1xf32>
    %143 = arith.addf %141, %142 : vector<16x1xf32>
    %144 = math.rsqrt %143 : vector<16x1xf32>
    %145 = vector.broadcast %144 : vector<16x1xf32> to vector<16x32xf32>
    %146 = arith.mulf %134, %145 : vector<16x32xf32>
    %147 = vector.broadcast %136 : vector<1x32xf32> to vector<16x32xf32>
    %148 = arith.mulf %146, %147 : vector<16x32xf32>
    %c0_47 = arith.constant 0 : index
    %c0_48 = arith.constant 0 : index
    %c0_49 = arith.constant 0 : index
    %149 = vector.load %arg6[%c0_47, %c0_48, %c0_49] : memref<2x32x64xf32, #tpu.memory_space<vmem>>, vector<1x32x64xf32>
    %150 = vector.shape_cast %149 : vector<1x32x64xf32> to vector<32x64xf32>
    %cst_50 = arith.constant dense<0.000000e+00> : vector<16x64xf32>
    %151 = tpu.matmul %148, %150, %cst_50 {dimension_numbers = #tpu.dot_dimension_numbers<[1], [0], [0], [1], [0, 0, 1, 1], [], []>} : vector<16x32xf32>, vector<32x64xf32>, vector<16x64xf32> -> vector<16x64xf32>
    %cst_51 = arith.constant 0.000000e+00 : f32
    %152 = vector.broadcast %cst_51 : f32 to vector<16x64xf32>
    %153 = arith.maximumf %151, %152 : vector<16x64xf32>
    %c0_52 = arith.constant 0 : index
    %c0_53 = arith.constant 0 : index
    %c0_54 = arith.constant 0 : index
    %154 = vector.load %arg7[%c0_52, %c0_53, %c0_54] : memref<2x64x32xf32, #tpu.memory_space<vmem>>, vector<1x64x32xf32>
    %155 = vector.shape_cast %154 : vector<1x64x32xf32> to vector<64x32xf32>
    %cst_55 = arith.constant dense<0.000000e+00> : vector<16x32xf32>
    %156 = tpu.matmul %153, %155, %cst_55 {dimension_numbers = #tpu.dot_dimension_numbers<[1], [0], [0], [1], [0, 0, 1, 1], [], []>} : vector<16x64xf32>, vector<64x32xf32>, vector<16x32xf32> -> vector<16x32xf32>
    %157 = arith.addf %134, %156 : vector<16x32xf32>
    %c1_56 = arith.constant 1 : index
    %c0_57 = arith.constant 0 : index
    %c0_58 = arith.constant 0 : index
    %158 = vector.load %arg5[%c1_56, %c0_57, %c0_58] : memref<2x1x32xf32, #tpu.memory_space<vmem>>, vector<1x1x32xf32>
    %159 = vector.shape_cast %158 : vector<1x1x32xf32> to vector<1x32xf32>
    %160 = arith.mulf %157, %157 : vector<16x32xf32>
    %cst_59 = arith.constant dense<0.000000e+00> : vector<16xf32>
    %161 = vector.multi_reduction <add>, %160, %cst_59 [1] : vector<16x32xf32> to vector<16xf32>
    %162 = vector.shape_cast %161 : vector<16xf32> to vector<16x1xf32>
    %cst_60 = arith.constant 3.200000e+01 : f32
    %163 = vector.broadcast %cst_60 : f32 to vector<16x1xf32>
    %164 = arith.divf %162, %163 : vector<16x1xf32>
    %cst_61 = arith.constant 9.99999997E-7 : f32
    %165 = vector.broadcast %cst_61 : f32 to vector<16x1xf32>
    %166 = arith.addf %164, %165 : vector<16x1xf32>
    %167 = math.rsqrt %166 : vector<16x1xf32>
    %168 = vector.broadcast %167 : vector<16x1xf32> to vector<16x32xf32>
    %169 = arith.mulf %157, %168 : vector<16x32xf32>
    %170 = vector.broadcast %159 : vector<1x32xf32> to vector<16x32xf32>
    %171 = arith.mulf %169, %170 : vector<16x32xf32>
    %c1_62 = arith.constant 1 : index
    %c0_63 = arith.constant 0 : index
    %c0_64 = arith.constant 0 : index
    %172 = vector.load %arg3[%c1_62, %c0_63, %c0_64] : memref<2x32x96xf32, #tpu.memory_space<vmem>>, vector<1x32x96xf32>
    %173 = vector.shape_cast %172 : vector<1x32x96xf32> to vector<32x96xf32>
    %cst_65 = arith.constant dense<0.000000e+00> : vector<16x96xf32>
    %174 = tpu.matmul %171, %173, %cst_65 {dimension_numbers = #tpu.dot_dimension_numbers<[1], [0], [0], [1], [0, 0, 1, 1], [], []>} : vector<16x32xf32>, vector<32x96xf32>, vector<16x96xf32> -> vector<16x96xf32>
    %175 = vector.extract_strided_slice %174 {offsets = [0, 0], sizes = [16, 32], strides = [1, 1]} : vector<16x96xf32> to vector<16x32xf32>
    %176 = vector.extract_strided_slice %174 {offsets = [0, 32], sizes = [16, 32], strides = [1, 1]} : vector<16x96xf32> to vector<16x32xf32>
    %177 = vector.extract_strided_slice %174 {offsets = [0, 64], sizes = [16, 32], strides = [1, 1]} : vector<16x96xf32> to vector<16x32xf32>
    %178 = vector.extract_strided_slice %175 {offsets = [0, 0], sizes = [16, 8], strides = [1, 1]} : vector<16x32xf32> to vector<16x8xf32>
    %179 = vector.shape_cast %178 : vector<16x8xf32> to vector<2x8x8xf32>
    %180 = vector.extract_strided_slice %176 {offsets = [0, 0], sizes = [16, 8], strides = [1, 1]} : vector<16x32xf32> to vector<16x8xf32>
    %181 = vector.shape_cast %180 : vector<16x8xf32> to vector<2x8x8xf32>
    %182 = vector.extract_strided_slice %177 {offsets = [0, 0], sizes = [16, 8], strides = [1, 1]} : vector<16x32xf32> to vector<16x8xf32>
    %183 = vector.shape_cast %182 : vector<16x8xf32> to vector<2x8x8xf32>
    "tpu.trace_start"() <{level = 10 : i32, message = "bqd,bkd->bqk"}> : () -> ()
    %cst_66 = arith.constant dense<0.000000e+00> : vector<2x8x8xf32>
    %184 = tpu.matmul %179, %181, %cst_66 {dimension_numbers = #tpu.dot_dimension_numbers<[2], [2], [1], [1], [0, 0, 0, 1, 1, 1], [0], [0]>} : vector<2x8x8xf32>, vector<2x8x8xf32>, vector<2x8x8xf32> -> vector<2x8x8xf32>
    "tpu.trace_stop"() : () -> ()
    %185 = vector.shape_cast %0 : vector<2x8xf32> to vector<2x1x8xf32>
    %186 = vector.broadcast %185 : vector<2x1x8xf32> to vector<2x8x8xf32>
    %187 = arith.addf %184, %186 : vector<2x8x8xf32>
    %cst_67 = arith.constant dense<0xFF800000> : vector<2x8xf32>
    %188 = vector.multi_reduction <maximumf>, %187, %cst_67 [2] : vector<2x8x8xf32> to vector<2x8xf32>
    %189 = vector.shape_cast %188 : vector<2x8xf32> to vector<2x8x1xf32>
    %190 = vector.broadcast %189 : vector<2x8x1xf32> to vector<2x8x8xf32>
    %191 = arith.subf %187, %190 : vector<2x8x8xf32>
    %192 = math.exp %191 : vector<2x8x8xf32>
    %cst_68 = arith.constant dense<0.000000e+00> : vector<2x8xf32>
    %193 = vector.multi_reduction <add>, %192, %cst_68 [2] : vector<2x8x8xf32> to vector<2x8xf32>
    %194 = vector.shape_cast %193 : vector<2x8xf32> to vector<2x8x1xf32>
    %195 = tpu.reciprocal %194 {approx = true} : vector<2x8x1xf32> -> vector<2x8x1xf32>
    %196 = vector.broadcast %195 : vector<2x8x1xf32> to vector<2x8x8xf32>
    %197 = arith.mulf %192, %196 : vector<2x8x8xf32>
    "tpu.trace_start"() <{level = 10 : i32, message = "bqk,bkd->bqd"}> : () -> ()
    %cst_69 = arith.constant dense<0.000000e+00> : vector<2x8x8xf32>
    %198 = tpu.matmul %197, %183, %cst_69 {dimension_numbers = #tpu.dot_dimension_numbers<[2], [1], [1], [2], [0, 0, 0, 1, 1, 2], [0], [0]>} : vector<2x8x8xf32>, vector<2x8x8xf32>, vector<2x8x8xf32> -> vector<2x8x8xf32>
    "tpu.trace_stop"() : () -> ()
    %199 = vector.shape_cast %198 : vector<2x8x8xf32> to vector<16x8xf32>
    %200 = vector.extract_strided_slice %175 {offsets = [0, 8], sizes = [16, 8], strides = [1, 1]} : vector<16x32xf32> to vector<16x8xf32>
    %201 = vector.shape_cast %200 : vector<16x8xf32> to vector<2x8x8xf32>
    %202 = vector.extract_strided_slice %176 {offsets = [0, 8], sizes = [16, 8], strides = [1, 1]} : vector<16x32xf32> to vector<16x8xf32>
    %203 = vector.shape_cast %202 : vector<16x8xf32> to vector<2x8x8xf32>
    %204 = vector.extract_strided_slice %177 {offsets = [0, 8], sizes = [16, 8], strides = [1, 1]} : vector<16x32xf32> to vector<16x8xf32>
    %205 = vector.shape_cast %204 : vector<16x8xf32> to vector<2x8x8xf32>
    "tpu.trace_start"() <{level = 10 : i32, message = "bqd,bkd->bqk"}> : () -> ()
    %cst_70 = arith.constant dense<0.000000e+00> : vector<2x8x8xf32>
    %206 = tpu.matmul %201, %203, %cst_70 {dimension_numbers = #tpu.dot_dimension_numbers<[2], [2], [1], [1], [0, 0, 0, 1, 1, 1], [0], [0]>} : vector<2x8x8xf32>, vector<2x8x8xf32>, vector<2x8x8xf32> -> vector<2x8x8xf32>
    "tpu.trace_stop"() : () -> ()
    %207 = vector.shape_cast %0 : vector<2x8xf32> to vector<2x1x8xf32>
    %208 = vector.broadcast %207 : vector<2x1x8xf32> to vector<2x8x8xf32>
    %209 = arith.addf %206, %208 : vector<2x8x8xf32>
    %cst_71 = arith.constant dense<0xFF800000> : vector<2x8xf32>
    %210 = vector.multi_reduction <maximumf>, %209, %cst_71 [2] : vector<2x8x8xf32> to vector<2x8xf32>
    %211 = vector.shape_cast %210 : vector<2x8xf32> to vector<2x8x1xf32>
    %212 = vector.broadcast %211 : vector<2x8x1xf32> to vector<2x8x8xf32>
    %213 = arith.subf %209, %212 : vector<2x8x8xf32>
    %214 = math.exp %213 : vector<2x8x8xf32>
    %cst_72 = arith.constant dense<0.000000e+00> : vector<2x8xf32>
    %215 = vector.multi_reduction <add>, %214, %cst_72 [2] : vector<2x8x8xf32> to vector<2x8xf32>
    %216 = vector.shape_cast %215 : vector<2x8xf32> to vector<2x8x1xf32>
    %217 = tpu.reciprocal %216 {approx = true} : vector<2x8x1xf32> -> vector<2x8x1xf32>
    %218 = vector.broadcast %217 : vector<2x8x1xf32> to vector<2x8x8xf32>
    %219 = arith.mulf %214, %218 : vector<2x8x8xf32>
    "tpu.trace_start"() <{level = 10 : i32, message = "bqk,bkd->bqd"}> : () -> ()
    %cst_73 = arith.constant dense<0.000000e+00> : vector<2x8x8xf32>
    %220 = tpu.matmul %219, %205, %cst_73 {dimension_numbers = #tpu.dot_dimension_numbers<[2], [1], [1], [2], [0, 0, 0, 1, 1, 2], [0], [0]>} : vector<2x8x8xf32>, vector<2x8x8xf32>, vector<2x8x8xf32> -> vector<2x8x8xf32>
    "tpu.trace_stop"() : () -> ()
    %221 = vector.shape_cast %220 : vector<2x8x8xf32> to vector<16x8xf32>
    %222 = vector.extract_strided_slice %175 {offsets = [0, 16], sizes = [16, 8], strides = [1, 1]} : vector<16x32xf32> to vector<16x8xf32>
    %223 = vector.shape_cast %222 : vector<16x8xf32> to vector<2x8x8xf32>
    %224 = vector.extract_strided_slice %176 {offsets = [0, 16], sizes = [16, 8], strides = [1, 1]} : vector<16x32xf32> to vector<16x8xf32>
    %225 = vector.shape_cast %224 : vector<16x8xf32> to vector<2x8x8xf32>
    %226 = vector.extract_strided_slice %177 {offsets = [0, 16], sizes = [16, 8], strides = [1, 1]} : vector<16x32xf32> to vector<16x8xf32>
    %227 = vector.shape_cast %226 : vector<16x8xf32> to vector<2x8x8xf32>
    "tpu.trace_start"() <{level = 10 : i32, message = "bqd,bkd->bqk"}> : () -> ()
    %cst_74 = arith.constant dense<0.000000e+00> : vector<2x8x8xf32>
    %228 = tpu.matmul %223, %225, %cst_74 {dimension_numbers = #tpu.dot_dimension_numbers<[2], [2], [1], [1], [0, 0, 0, 1, 1, 1], [0], [0]>} : vector<2x8x8xf32>, vector<2x8x8xf32>, vector<2x8x8xf32> -> vector<2x8x8xf32>
    "tpu.trace_stop"() : () -> ()
    %229 = vector.shape_cast %0 : vector<2x8xf32> to vector<2x1x8xf32>
    %230 = vector.broadcast %229 : vector<2x1x8xf32> to vector<2x8x8xf32>
    %231 = arith.addf %228, %230 : vector<2x8x8xf32>
    %cst_75 = arith.constant dense<0xFF800000> : vector<2x8xf32>
    %232 = vector.multi_reduction <maximumf>, %231, %cst_75 [2] : vector<2x8x8xf32> to vector<2x8xf32>
    %233 = vector.shape_cast %232 : vector<2x8xf32> to vector<2x8x1xf32>
    %234 = vector.broadcast %233 : vector<2x8x1xf32> to vector<2x8x8xf32>
    %235 = arith.subf %231, %234 : vector<2x8x8xf32>
    %236 = math.exp %235 : vector<2x8x8xf32>
    %cst_76 = arith.constant dense<0.000000e+00> : vector<2x8xf32>
    %237 = vector.multi_reduction <add>, %236, %cst_76 [2] : vector<2x8x8xf32> to vector<2x8xf32>
    %238 = vector.shape_cast %237 : vector<2x8xf32> to vector<2x8x1xf32>
    %239 = tpu.reciprocal %238 {approx = true} : vector<2x8x1xf32> -> vector<2x8x1xf32>
    %240 = vector.broadcast %239 : vector<2x8x1xf32> to vector<2x8x8xf32>
    %241 = arith.mulf %236, %240 : vector<2x8x8xf32>
    "tpu.trace_start"() <{level = 10 : i32, message = "bqk,bkd->bqd"}> : () -> ()
    %cst_77 = arith.constant dense<0.000000e+00> : vector<2x8x8xf32>
    %242 = tpu.matmul %241, %227, %cst_77 {dimension_numbers = #tpu.dot_dimension_numbers<[2], [1], [1], [2], [0, 0, 0, 1, 1, 2], [0], [0]>} : vector<2x8x8xf32>, vector<2x8x8xf32>, vector<2x8x8xf32> -> vector<2x8x8xf32>
    "tpu.trace_stop"() : () -> ()
    %243 = vector.shape_cast %242 : vector<2x8x8xf32> to vector<16x8xf32>
    %244 = vector.extract_strided_slice %175 {offsets = [0, 24], sizes = [16, 8], strides = [1, 1]} : vector<16x32xf32> to vector<16x8xf32>
    %245 = vector.shape_cast %244 : vector<16x8xf32> to vector<2x8x8xf32>
    %246 = vector.extract_strided_slice %176 {offsets = [0, 24], sizes = [16, 8], strides = [1, 1]} : vector<16x32xf32> to vector<16x8xf32>
    %247 = vector.shape_cast %246 : vector<16x8xf32> to vector<2x8x8xf32>
    %248 = vector.extract_strided_slice %177 {offsets = [0, 24], sizes = [16, 8], strides = [1, 1]} : vector<16x32xf32> to vector<16x8xf32>
    %249 = vector.shape_cast %248 : vector<16x8xf32> to vector<2x8x8xf32>
    "tpu.trace_start"() <{level = 10 : i32, message = "bqd,bkd->bqk"}> : () -> ()
    %cst_78 = arith.constant dense<0.000000e+00> : vector<2x8x8xf32>
    %250 = tpu.matmul %245, %247, %cst_78 {dimension_numbers = #tpu.dot_dimension_numbers<[2], [2], [1], [1], [0, 0, 0, 1, 1, 1], [0], [0]>} : vector<2x8x8xf32>, vector<2x8x8xf32>, vector<2x8x8xf32> -> vector<2x8x8xf32>
    "tpu.trace_stop"() : () -> ()
    %251 = vector.shape_cast %0 : vector<2x8xf32> to vector<2x1x8xf32>
    %252 = vector.broadcast %251 : vector<2x1x8xf32> to vector<2x8x8xf32>
    %253 = arith.addf %250, %252 : vector<2x8x8xf32>
    %cst_79 = arith.constant dense<0xFF800000> : vector<2x8xf32>
    %254 = vector.multi_reduction <maximumf>, %253, %cst_79 [2] : vector<2x8x8xf32> to vector<2x8xf32>
    %255 = vector.shape_cast %254 : vector<2x8xf32> to vector<2x8x1xf32>
    %256 = vector.broadcast %255 : vector<2x8x1xf32> to vector<2x8x8xf32>
    %257 = arith.subf %253, %256 : vector<2x8x8xf32>
    %258 = math.exp %257 : vector<2x8x8xf32>
    %cst_80 = arith.constant dense<0.000000e+00> : vector<2x8xf32>
    %259 = vector.multi_reduction <add>, %258, %cst_80 [2] : vector<2x8x8xf32> to vector<2x8xf32>
    %260 = vector.shape_cast %259 : vector<2x8xf32> to vector<2x8x1xf32>
    %261 = tpu.reciprocal %260 {approx = true} : vector<2x8x1xf32> -> vector<2x8x1xf32>
    %262 = vector.broadcast %261 : vector<2x8x1xf32> to vector<2x8x8xf32>
    %263 = arith.mulf %258, %262 : vector<2x8x8xf32>
    "tpu.trace_start"() <{level = 10 : i32, message = "bqk,bkd->bqd"}> : () -> ()
    %cst_81 = arith.constant dense<0.000000e+00> : vector<2x8x8xf32>
    %264 = tpu.matmul %263, %249, %cst_81 {dimension_numbers = #tpu.dot_dimension_numbers<[2], [1], [1], [2], [0, 0, 0, 1, 1, 2], [0], [0]>} : vector<2x8x8xf32>, vector<2x8x8xf32>, vector<2x8x8xf32> -> vector<2x8x8xf32>
    "tpu.trace_stop"() : () -> ()
    %265 = vector.shape_cast %264 : vector<2x8x8xf32> to vector<16x8xf32>
    %266 = tpu.concatenate %199, %221, %243, %265 in 1 : vector<16x8xf32>, vector<16x8xf32>, vector<16x8xf32>, vector<16x8xf32> -> vector<16x32xf32>
    %c1_82 = arith.constant 1 : index
    %c0_83 = arith.constant 0 : index
    %c0_84 = arith.constant 0 : index
    %267 = vector.load %arg4[%c1_82, %c0_83, %c0_84] : memref<2x32x32xf32, #tpu.memory_space<vmem>>, vector<1x32x32xf32>
    %268 = vector.shape_cast %267 : vector<1x32x32xf32> to vector<32x32xf32>
    %cst_85 = arith.constant dense<0.000000e+00> : vector<16x32xf32>
    %269 = tpu.matmul %266, %268, %cst_85 {dimension_numbers = #tpu.dot_dimension_numbers<[1], [0], [0], [1], [0, 0, 1, 1], [], []>} : vector<16x32xf32>, vector<32x32xf32>, vector<16x32xf32> -> vector<16x32xf32>
    %270 = arith.addf %157, %269 : vector<16x32xf32>
    %c1_86 = arith.constant 1 : index
    %c0_87 = arith.constant 0 : index
    %c0_88 = arith.constant 0 : index
    %271 = vector.load %arg8[%c1_86, %c0_87, %c0_88] : memref<2x1x32xf32, #tpu.memory_space<vmem>>, vector<1x1x32xf32>
    %272 = vector.shape_cast %271 : vector<1x1x32xf32> to vector<1x32xf32>
    %273 = arith.mulf %270, %270 : vector<16x32xf32>
    %cst_89 = arith.constant dense<0.000000e+00> : vector<16xf32>
    %274 = vector.multi_reduction <add>, %273, %cst_89 [1] : vector<16x32xf32> to vector<16xf32>
    %275 = vector.shape_cast %274 : vector<16xf32> to vector<16x1xf32>
    %cst_90 = arith.constant 3.200000e+01 : f32
    %276 = vector.broadcast %cst_90 : f32 to vector<16x1xf32>
    %277 = arith.divf %275, %276 : vector<16x1xf32>
    %cst_91 = arith.constant 9.99999997E-7 : f32
    %278 = vector.broadcast %cst_91 : f32 to vector<16x1xf32>
    %279 = arith.addf %277, %278 : vector<16x1xf32>
    %280 = math.rsqrt %279 : vector<16x1xf32>
    %281 = vector.broadcast %280 : vector<16x1xf32> to vector<16x32xf32>
    %282 = arith.mulf %270, %281 : vector<16x32xf32>
    %283 = vector.broadcast %272 : vector<1x32xf32> to vector<16x32xf32>
    %284 = arith.mulf %282, %283 : vector<16x32xf32>
    %c1_92 = arith.constant 1 : index
    %c0_93 = arith.constant 0 : index
    %c0_94 = arith.constant 0 : index
    %285 = vector.load %arg6[%c1_92, %c0_93, %c0_94] : memref<2x32x64xf32, #tpu.memory_space<vmem>>, vector<1x32x64xf32>
    %286 = vector.shape_cast %285 : vector<1x32x64xf32> to vector<32x64xf32>
    %cst_95 = arith.constant dense<0.000000e+00> : vector<16x64xf32>
    %287 = tpu.matmul %284, %286, %cst_95 {dimension_numbers = #tpu.dot_dimension_numbers<[1], [0], [0], [1], [0, 0, 1, 1], [], []>} : vector<16x32xf32>, vector<32x64xf32>, vector<16x64xf32> -> vector<16x64xf32>
    %cst_96 = arith.constant 0.000000e+00 : f32
    %288 = vector.broadcast %cst_96 : f32 to vector<16x64xf32>
    %289 = arith.maximumf %287, %288 : vector<16x64xf32>
    %c1_97 = arith.constant 1 : index
    %c0_98 = arith.constant 0 : index
    %c0_99 = arith.constant 0 : index
    %290 = vector.load %arg7[%c1_97, %c0_98, %c0_99] : memref<2x64x32xf32, #tpu.memory_space<vmem>>, vector<1x64x32xf32>
    %291 = vector.shape_cast %290 : vector<1x64x32xf32> to vector<64x32xf32>
    %cst_100 = arith.constant dense<0.000000e+00> : vector<16x32xf32>
    %292 = tpu.matmul %289, %291, %cst_100 {dimension_numbers = #tpu.dot_dimension_numbers<[1], [0], [0], [1], [0, 0, 1, 1], [], []>} : vector<16x64xf32>, vector<64x32xf32>, vector<16x32xf32> -> vector<16x32xf32>
    %293 = arith.addf %270, %292 : vector<16x32xf32>
    %c0_101 = arith.constant 0 : index
    %c0_102 = arith.constant 0 : index
    %294 = vector.load %arg9[%c0_101, %c0_102] : memref<1x32xf32, #tpu.memory_space<vmem>>, vector<1x32xf32>
    %295 = arith.mulf %293, %293 : vector<16x32xf32>
    %cst_103 = arith.constant dense<0.000000e+00> : vector<16xf32>
    %296 = vector.multi_reduction <add>, %295, %cst_103 [1] : vector<16x32xf32> to vector<16xf32>
    %297 = vector.shape_cast %296 : vector<16xf32> to vector<16x1xf32>
    %cst_104 = arith.constant 3.200000e+01 : f32
    %298 = vector.broadcast %cst_104 : f32 to vector<16x1xf32>
    %299 = arith.divf %297, %298 : vector<16x1xf32>
    %cst_105 = arith.constant 9.99999997E-7 : f32
    %300 = vector.broadcast %cst_105 : f32 to vector<16x1xf32>
    %301 = arith.addf %299, %300 : vector<16x1xf32>
    %302 = math.rsqrt %301 : vector<16x1xf32>
    %303 = vector.broadcast %302 : vector<16x1xf32> to vector<16x32xf32>
    %304 = arith.mulf %293, %303 : vector<16x32xf32>
    %305 = vector.broadcast %294 : vector<1x32xf32> to vector<16x32xf32>
    %306 = arith.mulf %304, %305 : vector<16x32xf32>
    %c0_106 = arith.constant 0 : index
    %c0_107 = arith.constant 0 : index
    %307 = vector.load %arg10[%c0_106, %c0_107] : memref<2x32xf32, #tpu.memory_space<vmem>>, vector<2x32xf32>
    %c0_108 = arith.constant 0 : index
    %c0_109 = arith.constant 0 : index
    %c0_110 = arith.constant 0 : index
    %308 = vector.load %arg13[%c0_108, %c0_109, %c0_110] : memref<2x1x32xf32, #tpu.memory_space<vmem>>, vector<1x1x32xf32>
    %309 = vector.shape_cast %308 : vector<1x1x32xf32> to vector<1x32xf32>
    %310 = arith.mulf %307, %307 : vector<2x32xf32>
    %cst_111 = arith.constant dense<0.000000e+00> : vector<2xf32>
    %311 = vector.multi_reduction <add>, %310, %cst_111 [1] : vector<2x32xf32> to vector<2xf32>
    %312 = vector.shape_cast %311 : vector<2xf32> to vector<2x1xf32>
    %cst_112 = arith.constant 3.200000e+01 : f32
    %313 = vector.broadcast %cst_112 : f32 to vector<2x1xf32>
    %314 = arith.divf %312, %313 : vector<2x1xf32>
    %cst_113 = arith.constant 9.99999997E-7 : f32
    %315 = vector.broadcast %cst_113 : f32 to vector<2x1xf32>
    %316 = arith.addf %314, %315 : vector<2x1xf32>
    %317 = math.rsqrt %316 : vector<2x1xf32>
    %318 = vector.broadcast %317 : vector<2x1xf32> to vector<2x32xf32>
    %319 = arith.mulf %307, %318 : vector<2x32xf32>
    %320 = vector.broadcast %309 : vector<1x32xf32> to vector<2x32xf32>
    %321 = arith.mulf %319, %320 : vector<2x32xf32>
    %c0_114 = arith.constant 0 : index
    %c0_115 = arith.constant 0 : index
    %c0_116 = arith.constant 0 : index
    %322 = vector.load %arg11[%c0_114, %c0_115, %c0_116] : memref<2x32x96xf32, #tpu.memory_space<vmem>>, vector<1x32x96xf32>
    %323 = vector.shape_cast %322 : vector<1x32x96xf32> to vector<32x96xf32>
    %cst_117 = arith.constant dense<0.000000e+00> : vector<2x96xf32>
    %324 = tpu.matmul %321, %323, %cst_117 {dimension_numbers = #tpu.dot_dimension_numbers<[1], [0], [0], [1], [0, 0, 1, 1], [], []>} : vector<2x32xf32>, vector<32x96xf32>, vector<2x96xf32> -> vector<2x96xf32>
    %325 = vector.extract_strided_slice %324 {offsets = [0, 0], sizes = [2, 32], strides = [1, 1]} : vector<2x96xf32> to vector<2x32xf32>
    %326 = vector.extract_strided_slice %324 {offsets = [0, 32], sizes = [2, 32], strides = [1, 1]} : vector<2x96xf32> to vector<2x32xf32>
    %327 = vector.extract_strided_slice %324 {offsets = [0, 64], sizes = [2, 32], strides = [1, 1]} : vector<2x96xf32> to vector<2x32xf32>
    %328 = vector.extract_strided_slice %325 {offsets = [0, 0], sizes = [2, 8], strides = [1, 1]} : vector<2x32xf32> to vector<2x8xf32>
    %329 = vector.shape_cast %328 : vector<2x8xf32> to vector<2x1x8xf32>
    %330 = vector.extract_strided_slice %326 {offsets = [0, 0], sizes = [2, 8], strides = [1, 1]} : vector<2x32xf32> to vector<2x8xf32>
    %331 = vector.shape_cast %330 : vector<2x8xf32> to vector<2x1x8xf32>
    %332 = vector.extract_strided_slice %327 {offsets = [0, 0], sizes = [2, 8], strides = [1, 1]} : vector<2x32xf32> to vector<2x8xf32>
    %333 = vector.shape_cast %332 : vector<2x8xf32> to vector<2x1x8xf32>
    "tpu.trace_start"() <{level = 10 : i32, message = "bqd,bkd->bqk"}> : () -> ()
    %cst_118 = arith.constant dense<0.000000e+00> : vector<2x1x1xf32>
    %334 = tpu.matmul %329, %331, %cst_118 {dimension_numbers = #tpu.dot_dimension_numbers<[2], [2], [1], [1], [0, 0, 0, 1, 1, 1], [0], [0]>} : vector<2x1x8xf32>, vector<2x1x8xf32>, vector<2x1x1xf32> -> vector<2x1x1xf32>
    "tpu.trace_stop"() : () -> ()
    %cst_119 = arith.constant 0.000000e+00 : f32
    %335 = vector.broadcast %cst_119 : f32 to vector<2x1x1xf32>
    %336 = arith.addf %334, %335 : vector<2x1x1xf32>
    %cst_120 = arith.constant dense<0xFF800000> : vector<2x1xf32>
    %337 = vector.multi_reduction <maximumf>, %336, %cst_120 [2] : vector<2x1x1xf32> to vector<2x1xf32>
    %338 = vector.shape_cast %337 : vector<2x1xf32> to vector<2x1x1xf32>
    %339 = arith.subf %336, %338 : vector<2x1x1xf32>
    %340 = math.exp %339 : vector<2x1x1xf32>
    %cst_121 = arith.constant dense<0.000000e+00> : vector<2x1xf32>
    %341 = vector.multi_reduction <add>, %340, %cst_121 [2] : vector<2x1x1xf32> to vector<2x1xf32>
    %342 = vector.shape_cast %341 : vector<2x1xf32> to vector<2x1x1xf32>
    %343 = tpu.reciprocal %342 {approx = true} : vector<2x1x1xf32> -> vector<2x1x1xf32>
    %344 = arith.mulf %340, %343 : vector<2x1x1xf32>
    "tpu.trace_start"() <{level = 10 : i32, message = "bqk,bkd->bqd"}> : () -> ()
    %cst_122 = arith.constant dense<0.000000e+00> : vector<2x1x8xf32>
    %345 = tpu.matmul %344, %333, %cst_122 {dimension_numbers = #tpu.dot_dimension_numbers<[2], [1], [1], [2], [0, 0, 0, 1, 1, 2], [0], [0]>} : vector<2x1x1xf32>, vector<2x1x8xf32>, vector<2x1x8xf32> -> vector<2x1x8xf32>
    "tpu.trace_stop"() : () -> ()
    %346 = vector.shape_cast %345 : vector<2x1x8xf32> to vector<2x8xf32>
    %347 = vector.extract_strided_slice %325 {offsets = [0, 8], sizes = [2, 8], strides = [1, 1]} : vector<2x32xf32> to vector<2x8xf32>
    %348 = vector.shape_cast %347 : vector<2x8xf32> to vector<2x1x8xf32>
    %349 = vector.extract_strided_slice %326 {offsets = [0, 8], sizes = [2, 8], strides = [1, 1]} : vector<2x32xf32> to vector<2x8xf32>
    %350 = vector.shape_cast %349 : vector<2x8xf32> to vector<2x1x8xf32>
    %351 = vector.extract_strided_slice %327 {offsets = [0, 8], sizes = [2, 8], strides = [1, 1]} : vector<2x32xf32> to vector<2x8xf32>
    %352 = vector.shape_cast %351 : vector<2x8xf32> to vector<2x1x8xf32>
    "tpu.trace_start"() <{level = 10 : i32, message = "bqd,bkd->bqk"}> : () -> ()
    %cst_123 = arith.constant dense<0.000000e+00> : vector<2x1x1xf32>
    %353 = tpu.matmul %348, %350, %cst_123 {dimension_numbers = #tpu.dot_dimension_numbers<[2], [2], [1], [1], [0, 0, 0, 1, 1, 1], [0], [0]>} : vector<2x1x8xf32>, vector<2x1x8xf32>, vector<2x1x1xf32> -> vector<2x1x1xf32>
    "tpu.trace_stop"() : () -> ()
    %cst_124 = arith.constant 0.000000e+00 : f32
    %354 = vector.broadcast %cst_124 : f32 to vector<2x1x1xf32>
    %355 = arith.addf %353, %354 : vector<2x1x1xf32>
    %cst_125 = arith.constant dense<0xFF800000> : vector<2x1xf32>
    %356 = vector.multi_reduction <maximumf>, %355, %cst_125 [2] : vector<2x1x1xf32> to vector<2x1xf32>
    %357 = vector.shape_cast %356 : vector<2x1xf32> to vector<2x1x1xf32>
    %358 = arith.subf %355, %357 : vector<2x1x1xf32>
    %359 = math.exp %358 : vector<2x1x1xf32>
    %cst_126 = arith.constant dense<0.000000e+00> : vector<2x1xf32>
    %360 = vector.multi_reduction <add>, %359, %cst_126 [2] : vector<2x1x1xf32> to vector<2x1xf32>
    %361 = vector.shape_cast %360 : vector<2x1xf32> to vector<2x1x1xf32>
    %362 = tpu.reciprocal %361 {approx = true} : vector<2x1x1xf32> -> vector<2x1x1xf32>
    %363 = arith.mulf %359, %362 : vector<2x1x1xf32>
    "tpu.trace_start"() <{level = 10 : i32, message = "bqk,bkd->bqd"}> : () -> ()
    %cst_127 = arith.constant dense<0.000000e+00> : vector<2x1x8xf32>
    %364 = tpu.matmul %363, %352, %cst_127 {dimension_numbers = #tpu.dot_dimension_numbers<[2], [1], [1], [2], [0, 0, 0, 1, 1, 2], [0], [0]>} : vector<2x1x1xf32>, vector<2x1x8xf32>, vector<2x1x8xf32> -> vector<2x1x8xf32>
    "tpu.trace_stop"() : () -> ()
    %365 = vector.shape_cast %364 : vector<2x1x8xf32> to vector<2x8xf32>
    %366 = vector.extract_strided_slice %325 {offsets = [0, 16], sizes = [2, 8], strides = [1, 1]} : vector<2x32xf32> to vector<2x8xf32>
    %367 = vector.shape_cast %366 : vector<2x8xf32> to vector<2x1x8xf32>
    %368 = vector.extract_strided_slice %326 {offsets = [0, 16], sizes = [2, 8], strides = [1, 1]} : vector<2x32xf32> to vector<2x8xf32>
    %369 = vector.shape_cast %368 : vector<2x8xf32> to vector<2x1x8xf32>
    %370 = vector.extract_strided_slice %327 {offsets = [0, 16], sizes = [2, 8], strides = [1, 1]} : vector<2x32xf32> to vector<2x8xf32>
    %371 = vector.shape_cast %370 : vector<2x8xf32> to vector<2x1x8xf32>
    "tpu.trace_start"() <{level = 10 : i32, message = "bqd,bkd->bqk"}> : () -> ()
    %cst_128 = arith.constant dense<0.000000e+00> : vector<2x1x1xf32>
    %372 = tpu.matmul %367, %369, %cst_128 {dimension_numbers = #tpu.dot_dimension_numbers<[2], [2], [1], [1], [0, 0, 0, 1, 1, 1], [0], [0]>} : vector<2x1x8xf32>, vector<2x1x8xf32>, vector<2x1x1xf32> -> vector<2x1x1xf32>
    "tpu.trace_stop"() : () -> ()
    %cst_129 = arith.constant 0.000000e+00 : f32
    %373 = vector.broadcast %cst_129 : f32 to vector<2x1x1xf32>
    %374 = arith.addf %372, %373 : vector<2x1x1xf32>
    %cst_130 = arith.constant dense<0xFF800000> : vector<2x1xf32>
    %375 = vector.multi_reduction <maximumf>, %374, %cst_130 [2] : vector<2x1x1xf32> to vector<2x1xf32>
    %376 = vector.shape_cast %375 : vector<2x1xf32> to vector<2x1x1xf32>
    %377 = arith.subf %374, %376 : vector<2x1x1xf32>
    %378 = math.exp %377 : vector<2x1x1xf32>
    %cst_131 = arith.constant dense<0.000000e+00> : vector<2x1xf32>
    %379 = vector.multi_reduction <add>, %378, %cst_131 [2] : vector<2x1x1xf32> to vector<2x1xf32>
    %380 = vector.shape_cast %379 : vector<2x1xf32> to vector<2x1x1xf32>
    %381 = tpu.reciprocal %380 {approx = true} : vector<2x1x1xf32> -> vector<2x1x1xf32>
    %382 = arith.mulf %378, %381 : vector<2x1x1xf32>
    "tpu.trace_start"() <{level = 10 : i32, message = "bqk,bkd->bqd"}> : () -> ()
    %cst_132 = arith.constant dense<0.000000e+00> : vector<2x1x8xf32>
    %383 = tpu.matmul %382, %371, %cst_132 {dimension_numbers = #tpu.dot_dimension_numbers<[2], [1], [1], [2], [0, 0, 0, 1, 1, 2], [0], [0]>} : vector<2x1x1xf32>, vector<2x1x8xf32>, vector<2x1x8xf32> -> vector<2x1x8xf32>
    "tpu.trace_stop"() : () -> ()
    %384 = vector.shape_cast %383 : vector<2x1x8xf32> to vector<2x8xf32>
    %385 = vector.extract_strided_slice %325 {offsets = [0, 24], sizes = [2, 8], strides = [1, 1]} : vector<2x32xf32> to vector<2x8xf32>
    %386 = vector.shape_cast %385 : vector<2x8xf32> to vector<2x1x8xf32>
    %387 = vector.extract_strided_slice %326 {offsets = [0, 24], sizes = [2, 8], strides = [1, 1]} : vector<2x32xf32> to vector<2x8xf32>
    %388 = vector.shape_cast %387 : vector<2x8xf32> to vector<2x1x8xf32>
    %389 = vector.extract_strided_slice %327 {offsets = [0, 24], sizes = [2, 8], strides = [1, 1]} : vector<2x32xf32> to vector<2x8xf32>
    %390 = vector.shape_cast %389 : vector<2x8xf32> to vector<2x1x8xf32>
    "tpu.trace_start"() <{level = 10 : i32, message = "bqd,bkd->bqk"}> : () -> ()
    %cst_133 = arith.constant dense<0.000000e+00> : vector<2x1x1xf32>
    %391 = tpu.matmul %386, %388, %cst_133 {dimension_numbers = #tpu.dot_dimension_numbers<[2], [2], [1], [1], [0, 0, 0, 1, 1, 1], [0], [0]>} : vector<2x1x8xf32>, vector<2x1x8xf32>, vector<2x1x1xf32> -> vector<2x1x1xf32>
    "tpu.trace_stop"() : () -> ()
    %cst_134 = arith.constant 0.000000e+00 : f32
    %392 = vector.broadcast %cst_134 : f32 to vector<2x1x1xf32>
    %393 = arith.addf %391, %392 : vector<2x1x1xf32>
    %cst_135 = arith.constant dense<0xFF800000> : vector<2x1xf32>
    %394 = vector.multi_reduction <maximumf>, %393, %cst_135 [2] : vector<2x1x1xf32> to vector<2x1xf32>
    %395 = vector.shape_cast %394 : vector<2x1xf32> to vector<2x1x1xf32>
    %396 = arith.subf %393, %395 : vector<2x1x1xf32>
    %397 = math.exp %396 : vector<2x1x1xf32>
    %cst_136 = arith.constant dense<0.000000e+00> : vector<2x1xf32>
    %398 = vector.multi_reduction <add>, %397, %cst_136 [2] : vector<2x1x1xf32> to vector<2x1xf32>
    %399 = vector.shape_cast %398 : vector<2x1xf32> to vector<2x1x1xf32>
    %400 = tpu.reciprocal %399 {approx = true} : vector<2x1x1xf32> -> vector<2x1x1xf32>
    %401 = arith.mulf %397, %400 : vector<2x1x1xf32>
    "tpu.trace_start"() <{level = 10 : i32, message = "bqk,bkd->bqd"}> : () -> ()
    %cst_137 = arith.constant dense<0.000000e+00> : vector<2x1x8xf32>
    %402 = tpu.matmul %401, %390, %cst_137 {dimension_numbers = #tpu.dot_dimension_numbers<[2], [1], [1], [2], [0, 0, 0, 1, 1, 2], [0], [0]>} : vector<2x1x1xf32>, vector<2x1x8xf32>, vector<2x1x8xf32> -> vector<2x1x8xf32>
    "tpu.trace_stop"() : () -> ()
    %403 = vector.shape_cast %402 : vector<2x1x8xf32> to vector<2x8xf32>
    %404 = tpu.concatenate %346, %365, %384, %403 in 1 : vector<2x8xf32>, vector<2x8xf32>, vector<2x8xf32>, vector<2x8xf32> -> vector<2x32xf32>
    %c0_138 = arith.constant 0 : index
    %c0_139 = arith.constant 0 : index
    %c0_140 = arith.constant 0 : index
    %405 = vector.load %arg12[%c0_138, %c0_139, %c0_140] : memref<2x32x32xf32, #tpu.memory_space<vmem>>, vector<1x32x32xf32>
    %406 = vector.shape_cast %405 : vector<1x32x32xf32> to vector<32x32xf32>
    %cst_141 = arith.constant dense<0.000000e+00> : vector<2x32xf32>
    %407 = tpu.matmul %404, %406, %cst_141 {dimension_numbers = #tpu.dot_dimension_numbers<[1], [0], [0], [1], [0, 0, 1, 1], [], []>} : vector<2x32xf32>, vector<32x32xf32>, vector<2x32xf32> -> vector<2x32xf32>
    %408 = arith.addf %307, %407 : vector<2x32xf32>
    %c0_142 = arith.constant 0 : index
    %c0_143 = arith.constant 0 : index
    %c0_144 = arith.constant 0 : index
    %409 = vector.load %arg17[%c0_142, %c0_143, %c0_144] : memref<2x1x32xf32, #tpu.memory_space<vmem>>, vector<1x1x32xf32>
    %410 = vector.shape_cast %409 : vector<1x1x32xf32> to vector<1x32xf32>
    %411 = arith.mulf %408, %408 : vector<2x32xf32>
    %cst_145 = arith.constant dense<0.000000e+00> : vector<2xf32>
    %412 = vector.multi_reduction <add>, %411, %cst_145 [1] : vector<2x32xf32> to vector<2xf32>
    %413 = vector.shape_cast %412 : vector<2xf32> to vector<2x1xf32>
    %cst_146 = arith.constant 3.200000e+01 : f32
    %414 = vector.broadcast %cst_146 : f32 to vector<2x1xf32>
    %415 = arith.divf %413, %414 : vector<2x1xf32>
    %cst_147 = arith.constant 9.99999997E-7 : f32
    %416 = vector.broadcast %cst_147 : f32 to vector<2x1xf32>
    %417 = arith.addf %415, %416 : vector<2x1xf32>
    %418 = math.rsqrt %417 : vector<2x1xf32>
    %419 = vector.broadcast %418 : vector<2x1xf32> to vector<2x32xf32>
    %420 = arith.mulf %408, %419 : vector<2x32xf32>
    %421 = vector.broadcast %410 : vector<1x32xf32> to vector<2x32xf32>
    %422 = arith.mulf %420, %421 : vector<2x32xf32>
    %c0_148 = arith.constant 0 : index
    %c0_149 = arith.constant 0 : index
    %c0_150 = arith.constant 0 : index
    %423 = vector.load %arg14[%c0_148, %c0_149, %c0_150] : memref<2x32x32xf32, #tpu.memory_space<vmem>>, vector<1x32x32xf32>
    %424 = vector.shape_cast %423 : vector<1x32x32xf32> to vector<32x32xf32>
    %cst_151 = arith.constant dense<0.000000e+00> : vector<2x32xf32>
    %425 = tpu.matmul %422, %424, %cst_151 {dimension_numbers = #tpu.dot_dimension_numbers<[1], [0], [0], [1], [0, 0, 1, 1], [], []>} : vector<2x32xf32>, vector<32x32xf32>, vector<2x32xf32> -> vector<2x32xf32>
    %c0_152 = arith.constant 0 : index
    %c0_153 = arith.constant 0 : index
    %c0_154 = arith.constant 0 : index
    %426 = vector.load %arg15[%c0_152, %c0_153, %c0_154] : memref<2x32x64xf32, #tpu.memory_space<vmem>>, vector<1x32x64xf32>
    %427 = vector.shape_cast %426 : vector<1x32x64xf32> to vector<32x64xf32>
    %cst_155 = arith.constant dense<0.000000e+00> : vector<16x64xf32>
    %428 = tpu.matmul %306, %427, %cst_155 {dimension_numbers = #tpu.dot_dimension_numbers<[1], [0], [0], [1], [0, 0, 1, 1], [], []>} : vector<16x32xf32>, vector<32x64xf32>, vector<16x64xf32> -> vector<16x64xf32>
    %429 = vector.extract_strided_slice %428 {offsets = [0, 0], sizes = [16, 32], strides = [1, 1]} : vector<16x64xf32> to vector<16x32xf32>
    %430 = vector.extract_strided_slice %428 {offsets = [0, 32], sizes = [16, 32], strides = [1, 1]} : vector<16x64xf32> to vector<16x32xf32>
    %431 = vector.extract_strided_slice %425 {offsets = [0, 0], sizes = [2, 8], strides = [1, 1]} : vector<2x32xf32> to vector<2x8xf32>
    %432 = vector.shape_cast %431 : vector<2x8xf32> to vector<2x1x8xf32>
    %433 = vector.extract_strided_slice %429 {offsets = [0, 0], sizes = [16, 8], strides = [1, 1]} : vector<16x32xf32> to vector<16x8xf32>
    %434 = vector.shape_cast %433 : vector<16x8xf32> to vector<2x8x8xf32>
    %435 = vector.extract_strided_slice %430 {offsets = [0, 0], sizes = [16, 8], strides = [1, 1]} : vector<16x32xf32> to vector<16x8xf32>
    %436 = vector.shape_cast %435 : vector<16x8xf32> to vector<2x8x8xf32>
    "tpu.trace_start"() <{level = 10 : i32, message = "bqd,bkd->bqk"}> : () -> ()
    %cst_156 = arith.constant dense<0.000000e+00> : vector<2x1x8xf32>
    %437 = tpu.matmul %432, %434, %cst_156 {dimension_numbers = #tpu.dot_dimension_numbers<[2], [2], [1], [1], [0, 0, 0, 1, 1, 1], [0], [0]>} : vector<2x1x8xf32>, vector<2x8x8xf32>, vector<2x1x8xf32> -> vector<2x1x8xf32>
    "tpu.trace_stop"() : () -> ()
    %438 = vector.shape_cast %0 : vector<2x8xf32> to vector<2x1x8xf32>
    %439 = arith.addf %437, %438 : vector<2x1x8xf32>
    %cst_157 = arith.constant dense<0xFF800000> : vector<2x1xf32>
    %440 = vector.multi_reduction <maximumf>, %439, %cst_157 [2] : vector<2x1x8xf32> to vector<2x1xf32>
    %441 = vector.shape_cast %440 : vector<2x1xf32> to vector<2x1x1xf32>
    %442 = vector.broadcast %441 : vector<2x1x1xf32> to vector<2x1x8xf32>
    %443 = arith.subf %439, %442 : vector<2x1x8xf32>
    %444 = math.exp %443 : vector<2x1x8xf32>
    %cst_158 = arith.constant dense<0.000000e+00> : vector<2x1xf32>
    %445 = vector.multi_reduction <add>, %444, %cst_158 [2] : vector<2x1x8xf32> to vector<2x1xf32>
    %446 = vector.shape_cast %445 : vector<2x1xf32> to vector<2x1x1xf32>
    %447 = tpu.reciprocal %446 {approx = true} : vector<2x1x1xf32> -> vector<2x1x1xf32>
    %448 = vector.broadcast %447 : vector<2x1x1xf32> to vector<2x1x8xf32>
    %449 = arith.mulf %444, %448 : vector<2x1x8xf32>
    "tpu.trace_start"() <{level = 10 : i32, message = "bqk,bkd->bqd"}> : () -> ()
    %cst_159 = arith.constant dense<0.000000e+00> : vector<2x1x8xf32>
    %450 = tpu.matmul %449, %436, %cst_159 {dimension_numbers = #tpu.dot_dimension_numbers<[2], [1], [1], [2], [0, 0, 0, 1, 1, 2], [0], [0]>} : vector<2x1x8xf32>, vector<2x8x8xf32>, vector<2x1x8xf32> -> vector<2x1x8xf32>
    "tpu.trace_stop"() : () -> ()
    %451 = vector.shape_cast %450 : vector<2x1x8xf32> to vector<2x8xf32>
    %452 = vector.extract_strided_slice %425 {offsets = [0, 8], sizes = [2, 8], strides = [1, 1]} : vector<2x32xf32> to vector<2x8xf32>
    %453 = vector.shape_cast %452 : vector<2x8xf32> to vector<2x1x8xf32>
    %454 = vector.extract_strided_slice %429 {offsets = [0, 8], sizes = [16, 8], strides = [1, 1]} : vector<16x32xf32> to vector<16x8xf32>
    %455 = vector.shape_cast %454 : vector<16x8xf32> to vector<2x8x8xf32>
    %456 = vector.extract_strided_slice %430 {offsets = [0, 8], sizes = [16, 8], strides = [1, 1]} : vector<16x32xf32> to vector<16x8xf32>
    %457 = vector.shape_cast %456 : vector<16x8xf32> to vector<2x8x8xf32>
    "tpu.trace_start"() <{level = 10 : i32, message = "bqd,bkd->bqk"}> : () -> ()
    %cst_160 = arith.constant dense<0.000000e+00> : vector<2x1x8xf32>
    %458 = tpu.matmul %453, %455, %cst_160 {dimension_numbers = #tpu.dot_dimension_numbers<[2], [2], [1], [1], [0, 0, 0, 1, 1, 1], [0], [0]>} : vector<2x1x8xf32>, vector<2x8x8xf32>, vector<2x1x8xf32> -> vector<2x1x8xf32>
    "tpu.trace_stop"() : () -> ()
    %459 = vector.shape_cast %0 : vector<2x8xf32> to vector<2x1x8xf32>
    %460 = arith.addf %458, %459 : vector<2x1x8xf32>
    %cst_161 = arith.constant dense<0xFF800000> : vector<2x1xf32>
    %461 = vector.multi_reduction <maximumf>, %460, %cst_161 [2] : vector<2x1x8xf32> to vector<2x1xf32>
    %462 = vector.shape_cast %461 : vector<2x1xf32> to vector<2x1x1xf32>
    %463 = vector.broadcast %462 : vector<2x1x1xf32> to vector<2x1x8xf32>
    %464 = arith.subf %460, %463 : vector<2x1x8xf32>
    %465 = math.exp %464 : vector<2x1x8xf32>
    %cst_162 = arith.constant dense<0.000000e+00> : vector<2x1xf32>
    %466 = vector.multi_reduction <add>, %465, %cst_162 [2] : vector<2x1x8xf32> to vector<2x1xf32>
    %467 = vector.shape_cast %466 : vector<2x1xf32> to vector<2x1x1xf32>
    %468 = tpu.reciprocal %467 {approx = true} : vector<2x1x1xf32> -> vector<2x1x1xf32>
    %469 = vector.broadcast %468 : vector<2x1x1xf32> to vector<2x1x8xf32>
    %470 = arith.mulf %465, %469 : vector<2x1x8xf32>
    "tpu.trace_start"() <{level = 10 : i32, message = "bqk,bkd->bqd"}> : () -> ()
    %cst_163 = arith.constant dense<0.000000e+00> : vector<2x1x8xf32>
    %471 = tpu.matmul %470, %457, %cst_163 {dimension_numbers = #tpu.dot_dimension_numbers<[2], [1], [1], [2], [0, 0, 0, 1, 1, 2], [0], [0]>} : vector<2x1x8xf32>, vector<2x8x8xf32>, vector<2x1x8xf32> -> vector<2x1x8xf32>
    "tpu.trace_stop"() : () -> ()
    %472 = vector.shape_cast %471 : vector<2x1x8xf32> to vector<2x8xf32>
    %473 = vector.extract_strided_slice %425 {offsets = [0, 16], sizes = [2, 8], strides = [1, 1]} : vector<2x32xf32> to vector<2x8xf32>
    %474 = vector.shape_cast %473 : vector<2x8xf32> to vector<2x1x8xf32>
    %475 = vector.extract_strided_slice %429 {offsets = [0, 16], sizes = [16, 8], strides = [1, 1]} : vector<16x32xf32> to vector<16x8xf32>
    %476 = vector.shape_cast %475 : vector<16x8xf32> to vector<2x8x8xf32>
    %477 = vector.extract_strided_slice %430 {offsets = [0, 16], sizes = [16, 8], strides = [1, 1]} : vector<16x32xf32> to vector<16x8xf32>
    %478 = vector.shape_cast %477 : vector<16x8xf32> to vector<2x8x8xf32>
    "tpu.trace_start"() <{level = 10 : i32, message = "bqd,bkd->bqk"}> : () -> ()
    %cst_164 = arith.constant dense<0.000000e+00> : vector<2x1x8xf32>
    %479 = tpu.matmul %474, %476, %cst_164 {dimension_numbers = #tpu.dot_dimension_numbers<[2], [2], [1], [1], [0, 0, 0, 1, 1, 1], [0], [0]>} : vector<2x1x8xf32>, vector<2x8x8xf32>, vector<2x1x8xf32> -> vector<2x1x8xf32>
    "tpu.trace_stop"() : () -> ()
    %480 = vector.shape_cast %0 : vector<2x8xf32> to vector<2x1x8xf32>
    %481 = arith.addf %479, %480 : vector<2x1x8xf32>
    %cst_165 = arith.constant dense<0xFF800000> : vector<2x1xf32>
    %482 = vector.multi_reduction <maximumf>, %481, %cst_165 [2] : vector<2x1x8xf32> to vector<2x1xf32>
    %483 = vector.shape_cast %482 : vector<2x1xf32> to vector<2x1x1xf32>
    %484 = vector.broadcast %483 : vector<2x1x1xf32> to vector<2x1x8xf32>
    %485 = arith.subf %481, %484 : vector<2x1x8xf32>
    %486 = math.exp %485 : vector<2x1x8xf32>
    %cst_166 = arith.constant dense<0.000000e+00> : vector<2x1xf32>
    %487 = vector.multi_reduction <add>, %486, %cst_166 [2] : vector<2x1x8xf32> to vector<2x1xf32>
    %488 = vector.shape_cast %487 : vector<2x1xf32> to vector<2x1x1xf32>
    %489 = tpu.reciprocal %488 {approx = true} : vector<2x1x1xf32> -> vector<2x1x1xf32>
    %490 = vector.broadcast %489 : vector<2x1x1xf32> to vector<2x1x8xf32>
    %491 = arith.mulf %486, %490 : vector<2x1x8xf32>
    "tpu.trace_start"() <{level = 10 : i32, message = "bqk,bkd->bqd"}> : () -> ()
    %cst_167 = arith.constant dense<0.000000e+00> : vector<2x1x8xf32>
    %492 = tpu.matmul %491, %478, %cst_167 {dimension_numbers = #tpu.dot_dimension_numbers<[2], [1], [1], [2], [0, 0, 0, 1, 1, 2], [0], [0]>} : vector<2x1x8xf32>, vector<2x8x8xf32>, vector<2x1x8xf32> -> vector<2x1x8xf32>
    "tpu.trace_stop"() : () -> ()
    %493 = vector.shape_cast %492 : vector<2x1x8xf32> to vector<2x8xf32>
    %494 = vector.extract_strided_slice %425 {offsets = [0, 24], sizes = [2, 8], strides = [1, 1]} : vector<2x32xf32> to vector<2x8xf32>
    %495 = vector.shape_cast %494 : vector<2x8xf32> to vector<2x1x8xf32>
    %496 = vector.extract_strided_slice %429 {offsets = [0, 24], sizes = [16, 8], strides = [1, 1]} : vector<16x32xf32> to vector<16x8xf32>
    %497 = vector.shape_cast %496 : vector<16x8xf32> to vector<2x8x8xf32>
    %498 = vector.extract_strided_slice %430 {offsets = [0, 24], sizes = [16, 8], strides = [1, 1]} : vector<16x32xf32> to vector<16x8xf32>
    %499 = vector.shape_cast %498 : vector<16x8xf32> to vector<2x8x8xf32>
    "tpu.trace_start"() <{level = 10 : i32, message = "bqd,bkd->bqk"}> : () -> ()
    %cst_168 = arith.constant dense<0.000000e+00> : vector<2x1x8xf32>
    %500 = tpu.matmul %495, %497, %cst_168 {dimension_numbers = #tpu.dot_dimension_numbers<[2], [2], [1], [1], [0, 0, 0, 1, 1, 1], [0], [0]>} : vector<2x1x8xf32>, vector<2x8x8xf32>, vector<2x1x8xf32> -> vector<2x1x8xf32>
    "tpu.trace_stop"() : () -> ()
    %501 = vector.shape_cast %0 : vector<2x8xf32> to vector<2x1x8xf32>
    %502 = arith.addf %500, %501 : vector<2x1x8xf32>
    %cst_169 = arith.constant dense<0xFF800000> : vector<2x1xf32>
    %503 = vector.multi_reduction <maximumf>, %502, %cst_169 [2] : vector<2x1x8xf32> to vector<2x1xf32>
    %504 = vector.shape_cast %503 : vector<2x1xf32> to vector<2x1x1xf32>
    %505 = vector.broadcast %504 : vector<2x1x1xf32> to vector<2x1x8xf32>
    %506 = arith.subf %502, %505 : vector<2x1x8xf32>
    %507 = math.exp %506 : vector<2x1x8xf32>
    %cst_170 = arith.constant dense<0.000000e+00> : vector<2x1xf32>
    %508 = vector.multi_reduction <add>, %507, %cst_170 [2] : vector<2x1x8xf32> to vector<2x1xf32>
    %509 = vector.shape_cast %508 : vector<2x1xf32> to vector<2x1x1xf32>
    %510 = tpu.reciprocal %509 {approx = true} : vector<2x1x1xf32> -> vector<2x1x1xf32>
    %511 = vector.broadcast %510 : vector<2x1x1xf32> to vector<2x1x8xf32>
    %512 = arith.mulf %507, %511 : vector<2x1x8xf32>
    "tpu.trace_start"() <{level = 10 : i32, message = "bqk,bkd->bqd"}> : () -> ()
    %cst_171 = arith.constant dense<0.000000e+00> : vector<2x1x8xf32>
    %513 = tpu.matmul %512, %499, %cst_171 {dimension_numbers = #tpu.dot_dimension_numbers<[2], [1], [1], [2], [0, 0, 0, 1, 1, 2], [0], [0]>} : vector<2x1x8xf32>, vector<2x8x8xf32>, vector<2x1x8xf32> -> vector<2x1x8xf32>
    "tpu.trace_stop"() : () -> ()
    %514 = vector.shape_cast %513 : vector<2x1x8xf32> to vector<2x8xf32>
    %515 = tpu.concatenate %451, %472, %493, %514 in 1 : vector<2x8xf32>, vector<2x8xf32>, vector<2x8xf32>, vector<2x8xf32> -> vector<2x32xf32>
    %c0_172 = arith.constant 0 : index
    %c0_173 = arith.constant 0 : index
    %c0_174 = arith.constant 0 : index
    %516 = vector.load %arg16[%c0_172, %c0_173, %c0_174] : memref<2x32x32xf32, #tpu.memory_space<vmem>>, vector<1x32x32xf32>
    %517 = vector.shape_cast %516 : vector<1x32x32xf32> to vector<32x32xf32>
    %cst_175 = arith.constant dense<0.000000e+00> : vector<2x32xf32>
    %518 = tpu.matmul %515, %517, %cst_175 {dimension_numbers = #tpu.dot_dimension_numbers<[1], [0], [0], [1], [0, 0, 1, 1], [], []>} : vector<2x32xf32>, vector<32x32xf32>, vector<2x32xf32> -> vector<2x32xf32>
    %519 = arith.addf %408, %518 : vector<2x32xf32>
    %c0_176 = arith.constant 0 : index
    %c0_177 = arith.constant 0 : index
    %c0_178 = arith.constant 0 : index
    %520 = vector.load %arg20[%c0_176, %c0_177, %c0_178] : memref<2x1x32xf32, #tpu.memory_space<vmem>>, vector<1x1x32xf32>
    %521 = vector.shape_cast %520 : vector<1x1x32xf32> to vector<1x32xf32>
    %522 = arith.mulf %519, %519 : vector<2x32xf32>
    %cst_179 = arith.constant dense<0.000000e+00> : vector<2xf32>
    %523 = vector.multi_reduction <add>, %522, %cst_179 [1] : vector<2x32xf32> to vector<2xf32>
    %524 = vector.shape_cast %523 : vector<2xf32> to vector<2x1xf32>
    %cst_180 = arith.constant 3.200000e+01 : f32
    %525 = vector.broadcast %cst_180 : f32 to vector<2x1xf32>
    %526 = arith.divf %524, %525 : vector<2x1xf32>
    %cst_181 = arith.constant 9.99999997E-7 : f32
    %527 = vector.broadcast %cst_181 : f32 to vector<2x1xf32>
    %528 = arith.addf %526, %527 : vector<2x1xf32>
    %529 = math.rsqrt %528 : vector<2x1xf32>
    %530 = vector.broadcast %529 : vector<2x1xf32> to vector<2x32xf32>
    %531 = arith.mulf %519, %530 : vector<2x32xf32>
    %532 = vector.broadcast %521 : vector<1x32xf32> to vector<2x32xf32>
    %533 = arith.mulf %531, %532 : vector<2x32xf32>
    %c0_182 = arith.constant 0 : index
    %c0_183 = arith.constant 0 : index
    %c0_184 = arith.constant 0 : index
    %534 = vector.load %arg18[%c0_182, %c0_183, %c0_184] : memref<2x32x64xf32, #tpu.memory_space<vmem>>, vector<1x32x64xf32>
    %535 = vector.shape_cast %534 : vector<1x32x64xf32> to vector<32x64xf32>
    %cst_185 = arith.constant dense<0.000000e+00> : vector<2x64xf32>
    %536 = tpu.matmul %533, %535, %cst_185 {dimension_numbers = #tpu.dot_dimension_numbers<[1], [0], [0], [1], [0, 0, 1, 1], [], []>} : vector<2x32xf32>, vector<32x64xf32>, vector<2x64xf32> -> vector<2x64xf32>
    %cst_186 = arith.constant 0.000000e+00 : f32
    %537 = vector.broadcast %cst_186 : f32 to vector<2x64xf32>
    %538 = arith.maximumf %536, %537 : vector<2x64xf32>
    %c0_187 = arith.constant 0 : index
    %c0_188 = arith.constant 0 : index
    %c0_189 = arith.constant 0 : index
    %539 = vector.load %arg19[%c0_187, %c0_188, %c0_189] : memref<2x64x32xf32, #tpu.memory_space<vmem>>, vector<1x64x32xf32>
    %540 = vector.shape_cast %539 : vector<1x64x32xf32> to vector<64x32xf32>
    %cst_190 = arith.constant dense<0.000000e+00> : vector<2x32xf32>
    %541 = tpu.matmul %538, %540, %cst_190 {dimension_numbers = #tpu.dot_dimension_numbers<[1], [0], [0], [1], [0, 0, 1, 1], [], []>} : vector<2x64xf32>, vector<64x32xf32>, vector<2x32xf32> -> vector<2x32xf32>
    %542 = arith.addf %519, %541 : vector<2x32xf32>
    %c1_191 = arith.constant 1 : index
    %c0_192 = arith.constant 0 : index
    %c0_193 = arith.constant 0 : index
    %543 = vector.load %arg13[%c1_191, %c0_192, %c0_193] : memref<2x1x32xf32, #tpu.memory_space<vmem>>, vector<1x1x32xf32>
    %544 = vector.shape_cast %543 : vector<1x1x32xf32> to vector<1x32xf32>
    %545 = arith.mulf %542, %542 : vector<2x32xf32>
    %cst_194 = arith.constant dense<0.000000e+00> : vector<2xf32>
    %546 = vector.multi_reduction <add>, %545, %cst_194 [1] : vector<2x32xf32> to vector<2xf32>
    %547 = vector.shape_cast %546 : vector<2xf32> to vector<2x1xf32>
    %cst_195 = arith.constant 3.200000e+01 : f32
    %548 = vector.broadcast %cst_195 : f32 to vector<2x1xf32>
    %549 = arith.divf %547, %548 : vector<2x1xf32>
    %cst_196 = arith.constant 9.99999997E-7 : f32
    %550 = vector.broadcast %cst_196 : f32 to vector<2x1xf32>
    %551 = arith.addf %549, %550 : vector<2x1xf32>
    %552 = math.rsqrt %551 : vector<2x1xf32>
    %553 = vector.broadcast %552 : vector<2x1xf32> to vector<2x32xf32>
    %554 = arith.mulf %542, %553 : vector<2x32xf32>
    %555 = vector.broadcast %544 : vector<1x32xf32> to vector<2x32xf32>
    %556 = arith.mulf %554, %555 : vector<2x32xf32>
    %c1_197 = arith.constant 1 : index
    %c0_198 = arith.constant 0 : index
    %c0_199 = arith.constant 0 : index
    %557 = vector.load %arg11[%c1_197, %c0_198, %c0_199] : memref<2x32x96xf32, #tpu.memory_space<vmem>>, vector<1x32x96xf32>
    %558 = vector.shape_cast %557 : vector<1x32x96xf32> to vector<32x96xf32>
    %cst_200 = arith.constant dense<0.000000e+00> : vector<2x96xf32>
    %559 = tpu.matmul %556, %558, %cst_200 {dimension_numbers = #tpu.dot_dimension_numbers<[1], [0], [0], [1], [0, 0, 1, 1], [], []>} : vector<2x32xf32>, vector<32x96xf32>, vector<2x96xf32> -> vector<2x96xf32>
    %560 = vector.extract_strided_slice %559 {offsets = [0, 0], sizes = [2, 32], strides = [1, 1]} : vector<2x96xf32> to vector<2x32xf32>
    %561 = vector.extract_strided_slice %559 {offsets = [0, 32], sizes = [2, 32], strides = [1, 1]} : vector<2x96xf32> to vector<2x32xf32>
    %562 = vector.extract_strided_slice %559 {offsets = [0, 64], sizes = [2, 32], strides = [1, 1]} : vector<2x96xf32> to vector<2x32xf32>
    %563 = vector.extract_strided_slice %560 {offsets = [0, 0], sizes = [2, 8], strides = [1, 1]} : vector<2x32xf32> to vector<2x8xf32>
    %564 = vector.shape_cast %563 : vector<2x8xf32> to vector<2x1x8xf32>
    %565 = vector.extract_strided_slice %561 {offsets = [0, 0], sizes = [2, 8], strides = [1, 1]} : vector<2x32xf32> to vector<2x8xf32>
    %566 = vector.shape_cast %565 : vector<2x8xf32> to vector<2x1x8xf32>
    %567 = vector.extract_strided_slice %562 {offsets = [0, 0], sizes = [2, 8], strides = [1, 1]} : vector<2x32xf32> to vector<2x8xf32>
    %568 = vector.shape_cast %567 : vector<2x8xf32> to vector<2x1x8xf32>
    "tpu.trace_start"() <{level = 10 : i32, message = "bqd,bkd->bqk"}> : () -> ()
    %cst_201 = arith.constant dense<0.000000e+00> : vector<2x1x1xf32>
    %569 = tpu.matmul %564, %566, %cst_201 {dimension_numbers = #tpu.dot_dimension_numbers<[2], [2], [1], [1], [0, 0, 0, 1, 1, 1], [0], [0]>} : vector<2x1x8xf32>, vector<2x1x8xf32>, vector<2x1x1xf32> -> vector<2x1x1xf32>
    "tpu.trace_stop"() : () -> ()
    %cst_202 = arith.constant 0.000000e+00 : f32
    %570 = vector.broadcast %cst_202 : f32 to vector<2x1x1xf32>
    %571 = arith.addf %569, %570 : vector<2x1x1xf32>
    %cst_203 = arith.constant dense<0xFF800000> : vector<2x1xf32>
    %572 = vector.multi_reduction <maximumf>, %571, %cst_203 [2] : vector<2x1x1xf32> to vector<2x1xf32>
    %573 = vector.shape_cast %572 : vector<2x1xf32> to vector<2x1x1xf32>
    %574 = arith.subf %571, %573 : vector<2x1x1xf32>
    %575 = math.exp %574 : vector<2x1x1xf32>
    %cst_204 = arith.constant dense<0.000000e+00> : vector<2x1xf32>
    %576 = vector.multi_reduction <add>, %575, %cst_204 [2] : vector<2x1x1xf32> to vector<2x1xf32>
    %577 = vector.shape_cast %576 : vector<2x1xf32> to vector<2x1x1xf32>
    %578 = tpu.reciprocal %577 {approx = true} : vector<2x1x1xf32> -> vector<2x1x1xf32>
    %579 = arith.mulf %575, %578 : vector<2x1x1xf32>
    "tpu.trace_start"() <{level = 10 : i32, message = "bqk,bkd->bqd"}> : () -> ()
    %cst_205 = arith.constant dense<0.000000e+00> : vector<2x1x8xf32>
    %580 = tpu.matmul %579, %568, %cst_205 {dimension_numbers = #tpu.dot_dimension_numbers<[2], [1], [1], [2], [0, 0, 0, 1, 1, 2], [0], [0]>} : vector<2x1x1xf32>, vector<2x1x8xf32>, vector<2x1x8xf32> -> vector<2x1x8xf32>
    "tpu.trace_stop"() : () -> ()
    %581 = vector.shape_cast %580 : vector<2x1x8xf32> to vector<2x8xf32>
    %582 = vector.extract_strided_slice %560 {offsets = [0, 8], sizes = [2, 8], strides = [1, 1]} : vector<2x32xf32> to vector<2x8xf32>
    %583 = vector.shape_cast %582 : vector<2x8xf32> to vector<2x1x8xf32>
    %584 = vector.extract_strided_slice %561 {offsets = [0, 8], sizes = [2, 8], strides = [1, 1]} : vector<2x32xf32> to vector<2x8xf32>
    %585 = vector.shape_cast %584 : vector<2x8xf32> to vector<2x1x8xf32>
    %586 = vector.extract_strided_slice %562 {offsets = [0, 8], sizes = [2, 8], strides = [1, 1]} : vector<2x32xf32> to vector<2x8xf32>
    %587 = vector.shape_cast %586 : vector<2x8xf32> to vector<2x1x8xf32>
    "tpu.trace_start"() <{level = 10 : i32, message = "bqd,bkd->bqk"}> : () -> ()
    %cst_206 = arith.constant dense<0.000000e+00> : vector<2x1x1xf32>
    %588 = tpu.matmul %583, %585, %cst_206 {dimension_numbers = #tpu.dot_dimension_numbers<[2], [2], [1], [1], [0, 0, 0, 1, 1, 1], [0], [0]>} : vector<2x1x8xf32>, vector<2x1x8xf32>, vector<2x1x1xf32> -> vector<2x1x1xf32>
    "tpu.trace_stop"() : () -> ()
    %cst_207 = arith.constant 0.000000e+00 : f32
    %589 = vector.broadcast %cst_207 : f32 to vector<2x1x1xf32>
    %590 = arith.addf %588, %589 : vector<2x1x1xf32>
    %cst_208 = arith.constant dense<0xFF800000> : vector<2x1xf32>
    %591 = vector.multi_reduction <maximumf>, %590, %cst_208 [2] : vector<2x1x1xf32> to vector<2x1xf32>
    %592 = vector.shape_cast %591 : vector<2x1xf32> to vector<2x1x1xf32>
    %593 = arith.subf %590, %592 : vector<2x1x1xf32>
    %594 = math.exp %593 : vector<2x1x1xf32>
    %cst_209 = arith.constant dense<0.000000e+00> : vector<2x1xf32>
    %595 = vector.multi_reduction <add>, %594, %cst_209 [2] : vector<2x1x1xf32> to vector<2x1xf32>
    %596 = vector.shape_cast %595 : vector<2x1xf32> to vector<2x1x1xf32>
    %597 = tpu.reciprocal %596 {approx = true} : vector<2x1x1xf32> -> vector<2x1x1xf32>
    %598 = arith.mulf %594, %597 : vector<2x1x1xf32>
    "tpu.trace_start"() <{level = 10 : i32, message = "bqk,bkd->bqd"}> : () -> ()
    %cst_210 = arith.constant dense<0.000000e+00> : vector<2x1x8xf32>
    %599 = tpu.matmul %598, %587, %cst_210 {dimension_numbers = #tpu.dot_dimension_numbers<[2], [1], [1], [2], [0, 0, 0, 1, 1, 2], [0], [0]>} : vector<2x1x1xf32>, vector<2x1x8xf32>, vector<2x1x8xf32> -> vector<2x1x8xf32>
    "tpu.trace_stop"() : () -> ()
    %600 = vector.shape_cast %599 : vector<2x1x8xf32> to vector<2x8xf32>
    %601 = vector.extract_strided_slice %560 {offsets = [0, 16], sizes = [2, 8], strides = [1, 1]} : vector<2x32xf32> to vector<2x8xf32>
    %602 = vector.shape_cast %601 : vector<2x8xf32> to vector<2x1x8xf32>
    %603 = vector.extract_strided_slice %561 {offsets = [0, 16], sizes = [2, 8], strides = [1, 1]} : vector<2x32xf32> to vector<2x8xf32>
    %604 = vector.shape_cast %603 : vector<2x8xf32> to vector<2x1x8xf32>
    %605 = vector.extract_strided_slice %562 {offsets = [0, 16], sizes = [2, 8], strides = [1, 1]} : vector<2x32xf32> to vector<2x8xf32>
    %606 = vector.shape_cast %605 : vector<2x8xf32> to vector<2x1x8xf32>
    "tpu.trace_start"() <{level = 10 : i32, message = "bqd,bkd->bqk"}> : () -> ()
    %cst_211 = arith.constant dense<0.000000e+00> : vector<2x1x1xf32>
    %607 = tpu.matmul %602, %604, %cst_211 {dimension_numbers = #tpu.dot_dimension_numbers<[2], [2], [1], [1], [0, 0, 0, 1, 1, 1], [0], [0]>} : vector<2x1x8xf32>, vector<2x1x8xf32>, vector<2x1x1xf32> -> vector<2x1x1xf32>
    "tpu.trace_stop"() : () -> ()
    %cst_212 = arith.constant 0.000000e+00 : f32
    %608 = vector.broadcast %cst_212 : f32 to vector<2x1x1xf32>
    %609 = arith.addf %607, %608 : vector<2x1x1xf32>
    %cst_213 = arith.constant dense<0xFF800000> : vector<2x1xf32>
    %610 = vector.multi_reduction <maximumf>, %609, %cst_213 [2] : vector<2x1x1xf32> to vector<2x1xf32>
    %611 = vector.shape_cast %610 : vector<2x1xf32> to vector<2x1x1xf32>
    %612 = arith.subf %609, %611 : vector<2x1x1xf32>
    %613 = math.exp %612 : vector<2x1x1xf32>
    %cst_214 = arith.constant dense<0.000000e+00> : vector<2x1xf32>
    %614 = vector.multi_reduction <add>, %613, %cst_214 [2] : vector<2x1x1xf32> to vector<2x1xf32>
    %615 = vector.shape_cast %614 : vector<2x1xf32> to vector<2x1x1xf32>
    %616 = tpu.reciprocal %615 {approx = true} : vector<2x1x1xf32> -> vector<2x1x1xf32>
    %617 = arith.mulf %613, %616 : vector<2x1x1xf32>
    "tpu.trace_start"() <{level = 10 : i32, message = "bqk,bkd->bqd"}> : () -> ()
    %cst_215 = arith.constant dense<0.000000e+00> : vector<2x1x8xf32>
    %618 = tpu.matmul %617, %606, %cst_215 {dimension_numbers = #tpu.dot_dimension_numbers<[2], [1], [1], [2], [0, 0, 0, 1, 1, 2], [0], [0]>} : vector<2x1x1xf32>, vector<2x1x8xf32>, vector<2x1x8xf32> -> vector<2x1x8xf32>
    "tpu.trace_stop"() : () -> ()
    %619 = vector.shape_cast %618 : vector<2x1x8xf32> to vector<2x8xf32>
    %620 = vector.extract_strided_slice %560 {offsets = [0, 24], sizes = [2, 8], strides = [1, 1]} : vector<2x32xf32> to vector<2x8xf32>
    %621 = vector.shape_cast %620 : vector<2x8xf32> to vector<2x1x8xf32>
    %622 = vector.extract_strided_slice %561 {offsets = [0, 24], sizes = [2, 8], strides = [1, 1]} : vector<2x32xf32> to vector<2x8xf32>
    %623 = vector.shape_cast %622 : vector<2x8xf32> to vector<2x1x8xf32>
    %624 = vector.extract_strided_slice %562 {offsets = [0, 24], sizes = [2, 8], strides = [1, 1]} : vector<2x32xf32> to vector<2x8xf32>
    %625 = vector.shape_cast %624 : vector<2x8xf32> to vector<2x1x8xf32>
    "tpu.trace_start"() <{level = 10 : i32, message = "bqd,bkd->bqk"}> : () -> ()
    %cst_216 = arith.constant dense<0.000000e+00> : vector<2x1x1xf32>
    %626 = tpu.matmul %621, %623, %cst_216 {dimension_numbers = #tpu.dot_dimension_numbers<[2], [2], [1], [1], [0, 0, 0, 1, 1, 1], [0], [0]>} : vector<2x1x8xf32>, vector<2x1x8xf32>, vector<2x1x1xf32> -> vector<2x1x1xf32>
    "tpu.trace_stop"() : () -> ()
    %cst_217 = arith.constant 0.000000e+00 : f32
    %627 = vector.broadcast %cst_217 : f32 to vector<2x1x1xf32>
    %628 = arith.addf %626, %627 : vector<2x1x1xf32>
    %cst_218 = arith.constant dense<0xFF800000> : vector<2x1xf32>
    %629 = vector.multi_reduction <maximumf>, %628, %cst_218 [2] : vector<2x1x1xf32> to vector<2x1xf32>
    %630 = vector.shape_cast %629 : vector<2x1xf32> to vector<2x1x1xf32>
    %631 = arith.subf %628, %630 : vector<2x1x1xf32>
    %632 = math.exp %631 : vector<2x1x1xf32>
    %cst_219 = arith.constant dense<0.000000e+00> : vector<2x1xf32>
    %633 = vector.multi_reduction <add>, %632, %cst_219 [2] : vector<2x1x1xf32> to vector<2x1xf32>
    %634 = vector.shape_cast %633 : vector<2x1xf32> to vector<2x1x1xf32>
    %635 = tpu.reciprocal %634 {approx = true} : vector<2x1x1xf32> -> vector<2x1x1xf32>
    %636 = arith.mulf %632, %635 : vector<2x1x1xf32>
    "tpu.trace_start"() <{level = 10 : i32, message = "bqk,bkd->bqd"}> : () -> ()
    %cst_220 = arith.constant dense<0.000000e+00> : vector<2x1x8xf32>
    %637 = tpu.matmul %636, %625, %cst_220 {dimension_numbers = #tpu.dot_dimension_numbers<[2], [1], [1], [2], [0, 0, 0, 1, 1, 2], [0], [0]>} : vector<2x1x1xf32>, vector<2x1x8xf32>, vector<2x1x8xf32> -> vector<2x1x8xf32>
    "tpu.trace_stop"() : () -> ()
    %638 = vector.shape_cast %637 : vector<2x1x8xf32> to vector<2x8xf32>
    %639 = tpu.concatenate %581, %600, %619, %638 in 1 : vector<2x8xf32>, vector<2x8xf32>, vector<2x8xf32>, vector<2x8xf32> -> vector<2x32xf32>
    %c1_221 = arith.constant 1 : index
    %c0_222 = arith.constant 0 : index
    %c0_223 = arith.constant 0 : index
    %640 = vector.load %arg12[%c1_221, %c0_222, %c0_223] : memref<2x32x32xf32, #tpu.memory_space<vmem>>, vector<1x32x32xf32>
    %641 = vector.shape_cast %640 : vector<1x32x32xf32> to vector<32x32xf32>
    %cst_224 = arith.constant dense<0.000000e+00> : vector<2x32xf32>
    %642 = tpu.matmul %639, %641, %cst_224 {dimension_numbers = #tpu.dot_dimension_numbers<[1], [0], [0], [1], [0, 0, 1, 1], [], []>} : vector<2x32xf32>, vector<32x32xf32>, vector<2x32xf32> -> vector<2x32xf32>
    %643 = arith.addf %542, %642 : vector<2x32xf32>
    %c1_225 = arith.constant 1 : index
    %c0_226 = arith.constant 0 : index
    %c0_227 = arith.constant 0 : index
    %644 = vector.load %arg17[%c1_225, %c0_226, %c0_227] : memref<2x1x32xf32, #tpu.memory_space<vmem>>, vector<1x1x32xf32>
    %645 = vector.shape_cast %644 : vector<1x1x32xf32> to vector<1x32xf32>
    %646 = arith.mulf %643, %643 : vector<2x32xf32>
    %cst_228 = arith.constant dense<0.000000e+00> : vector<2xf32>
    %647 = vector.multi_reduction <add>, %646, %cst_228 [1] : vector<2x32xf32> to vector<2xf32>
    %648 = vector.shape_cast %647 : vector<2xf32> to vector<2x1xf32>
    %cst_229 = arith.constant 3.200000e+01 : f32
    %649 = vector.broadcast %cst_229 : f32 to vector<2x1xf32>
    %650 = arith.divf %648, %649 : vector<2x1xf32>
    %cst_230 = arith.constant 9.99999997E-7 : f32
    %651 = vector.broadcast %cst_230 : f32 to vector<2x1xf32>
    %652 = arith.addf %650, %651 : vector<2x1xf32>
    %653 = math.rsqrt %652 : vector<2x1xf32>
    %654 = vector.broadcast %653 : vector<2x1xf32> to vector<2x32xf32>
    %655 = arith.mulf %643, %654 : vector<2x32xf32>
    %656 = vector.broadcast %645 : vector<1x32xf32> to vector<2x32xf32>
    %657 = arith.mulf %655, %656 : vector<2x32xf32>
    %c1_231 = arith.constant 1 : index
    %c0_232 = arith.constant 0 : index
    %c0_233 = arith.constant 0 : index
    %658 = vector.load %arg14[%c1_231, %c0_232, %c0_233] : memref<2x32x32xf32, #tpu.memory_space<vmem>>, vector<1x32x32xf32>
    %659 = vector.shape_cast %658 : vector<1x32x32xf32> to vector<32x32xf32>
    %cst_234 = arith.constant dense<0.000000e+00> : vector<2x32xf32>
    %660 = tpu.matmul %657, %659, %cst_234 {dimension_numbers = #tpu.dot_dimension_numbers<[1], [0], [0], [1], [0, 0, 1, 1], [], []>} : vector<2x32xf32>, vector<32x32xf32>, vector<2x32xf32> -> vector<2x32xf32>
    %c1_235 = arith.constant 1 : index
    %c0_236 = arith.constant 0 : index
    %c0_237 = arith.constant 0 : index
    %661 = vector.load %arg15[%c1_235, %c0_236, %c0_237] : memref<2x32x64xf32, #tpu.memory_space<vmem>>, vector<1x32x64xf32>
    %662 = vector.shape_cast %661 : vector<1x32x64xf32> to vector<32x64xf32>
    %cst_238 = arith.constant dense<0.000000e+00> : vector<16x64xf32>
    %663 = tpu.matmul %306, %662, %cst_238 {dimension_numbers = #tpu.dot_dimension_numbers<[1], [0], [0], [1], [0, 0, 1, 1], [], []>} : vector<16x32xf32>, vector<32x64xf32>, vector<16x64xf32> -> vector<16x64xf32>
    %664 = vector.extract_strided_slice %663 {offsets = [0, 0], sizes = [16, 32], strides = [1, 1]} : vector<16x64xf32> to vector<16x32xf32>
    %665 = vector.extract_strided_slice %663 {offsets = [0, 32], sizes = [16, 32], strides = [1, 1]} : vector<16x64xf32> to vector<16x32xf32>
    %666 = vector.extract_strided_slice %660 {offsets = [0, 0], sizes = [2, 8], strides = [1, 1]} : vector<2x32xf32> to vector<2x8xf32>
    %667 = vector.shape_cast %666 : vector<2x8xf32> to vector<2x1x8xf32>
    %668 = vector.extract_strided_slice %664 {offsets = [0, 0], sizes = [16, 8], strides = [1, 1]} : vector<16x32xf32> to vector<16x8xf32>
    %669 = vector.shape_cast %668 : vector<16x8xf32> to vector<2x8x8xf32>
    %670 = vector.extract_strided_slice %665 {offsets = [0, 0], sizes = [16, 8], strides = [1, 1]} : vector<16x32xf32> to vector<16x8xf32>
    %671 = vector.shape_cast %670 : vector<16x8xf32> to vector<2x8x8xf32>
    "tpu.trace_start"() <{level = 10 : i32, message = "bqd,bkd->bqk"}> : () -> ()
    %cst_239 = arith.constant dense<0.000000e+00> : vector<2x1x8xf32>
    %672 = tpu.matmul %667, %669, %cst_239 {dimension_numbers = #tpu.dot_dimension_numbers<[2], [2], [1], [1], [0, 0, 0, 1, 1, 1], [0], [0]>} : vector<2x1x8xf32>, vector<2x8x8xf32>, vector<2x1x8xf32> -> vector<2x1x8xf32>
    "tpu.trace_stop"() : () -> ()
    %673 = vector.shape_cast %0 : vector<2x8xf32> to vector<2x1x8xf32>
    %674 = arith.addf %672, %673 : vector<2x1x8xf32>
    %cst_240 = arith.constant dense<0xFF800000> : vector<2x1xf32>
    %675 = vector.multi_reduction <maximumf>, %674, %cst_240 [2] : vector<2x1x8xf32> to vector<2x1xf32>
    %676 = vector.shape_cast %675 : vector<2x1xf32> to vector<2x1x1xf32>
    %677 = vector.broadcast %676 : vector<2x1x1xf32> to vector<2x1x8xf32>
    %678 = arith.subf %674, %677 : vector<2x1x8xf32>
    %679 = math.exp %678 : vector<2x1x8xf32>
    %cst_241 = arith.constant dense<0.000000e+00> : vector<2x1xf32>
    %680 = vector.multi_reduction <add>, %679, %cst_241 [2] : vector<2x1x8xf32> to vector<2x1xf32>
    %681 = vector.shape_cast %680 : vector<2x1xf32> to vector<2x1x1xf32>
    %682 = tpu.reciprocal %681 {approx = true} : vector<2x1x1xf32> -> vector<2x1x1xf32>
    %683 = vector.broadcast %682 : vector<2x1x1xf32> to vector<2x1x8xf32>
    %684 = arith.mulf %679, %683 : vector<2x1x8xf32>
    "tpu.trace_start"() <{level = 10 : i32, message = "bqk,bkd->bqd"}> : () -> ()
    %cst_242 = arith.constant dense<0.000000e+00> : vector<2x1x8xf32>
    %685 = tpu.matmul %684, %671, %cst_242 {dimension_numbers = #tpu.dot_dimension_numbers<[2], [1], [1], [2], [0, 0, 0, 1, 1, 2], [0], [0]>} : vector<2x1x8xf32>, vector<2x8x8xf32>, vector<2x1x8xf32> -> vector<2x1x8xf32>
    "tpu.trace_stop"() : () -> ()
    %686 = vector.shape_cast %685 : vector<2x1x8xf32> to vector<2x8xf32>
    %687 = vector.extract_strided_slice %660 {offsets = [0, 8], sizes = [2, 8], strides = [1, 1]} : vector<2x32xf32> to vector<2x8xf32>
    %688 = vector.shape_cast %687 : vector<2x8xf32> to vector<2x1x8xf32>
    %689 = vector.extract_strided_slice %664 {offsets = [0, 8], sizes = [16, 8], strides = [1, 1]} : vector<16x32xf32> to vector<16x8xf32>
    %690 = vector.shape_cast %689 : vector<16x8xf32> to vector<2x8x8xf32>
    %691 = vector.extract_strided_slice %665 {offsets = [0, 8], sizes = [16, 8], strides = [1, 1]} : vector<16x32xf32> to vector<16x8xf32>
    %692 = vector.shape_cast %691 : vector<16x8xf32> to vector<2x8x8xf32>
    "tpu.trace_start"() <{level = 10 : i32, message = "bqd,bkd->bqk"}> : () -> ()
    %cst_243 = arith.constant dense<0.000000e+00> : vector<2x1x8xf32>
    %693 = tpu.matmul %688, %690, %cst_243 {dimension_numbers = #tpu.dot_dimension_numbers<[2], [2], [1], [1], [0, 0, 0, 1, 1, 1], [0], [0]>} : vector<2x1x8xf32>, vector<2x8x8xf32>, vector<2x1x8xf32> -> vector<2x1x8xf32>
    "tpu.trace_stop"() : () -> ()
    %694 = vector.shape_cast %0 : vector<2x8xf32> to vector<2x1x8xf32>
    %695 = arith.addf %693, %694 : vector<2x1x8xf32>
    %cst_244 = arith.constant dense<0xFF800000> : vector<2x1xf32>
    %696 = vector.multi_reduction <maximumf>, %695, %cst_244 [2] : vector<2x1x8xf32> to vector<2x1xf32>
    %697 = vector.shape_cast %696 : vector<2x1xf32> to vector<2x1x1xf32>
    %698 = vector.broadcast %697 : vector<2x1x1xf32> to vector<2x1x8xf32>
    %699 = arith.subf %695, %698 : vector<2x1x8xf32>
    %700 = math.exp %699 : vector<2x1x8xf32>
    %cst_245 = arith.constant dense<0.000000e+00> : vector<2x1xf32>
    %701 = vector.multi_reduction <add>, %700, %cst_245 [2] : vector<2x1x8xf32> to vector<2x1xf32>
    %702 = vector.shape_cast %701 : vector<2x1xf32> to vector<2x1x1xf32>
    %703 = tpu.reciprocal %702 {approx = true} : vector<2x1x1xf32> -> vector<2x1x1xf32>
    %704 = vector.broadcast %703 : vector<2x1x1xf32> to vector<2x1x8xf32>
    %705 = arith.mulf %700, %704 : vector<2x1x8xf32>
    "tpu.trace_start"() <{level = 10 : i32, message = "bqk,bkd->bqd"}> : () -> ()
    %cst_246 = arith.constant dense<0.000000e+00> : vector<2x1x8xf32>
    %706 = tpu.matmul %705, %692, %cst_246 {dimension_numbers = #tpu.dot_dimension_numbers<[2], [1], [1], [2], [0, 0, 0, 1, 1, 2], [0], [0]>} : vector<2x1x8xf32>, vector<2x8x8xf32>, vector<2x1x8xf32> -> vector<2x1x8xf32>
    "tpu.trace_stop"() : () -> ()
    %707 = vector.shape_cast %706 : vector<2x1x8xf32> to vector<2x8xf32>
    %708 = vector.extract_strided_slice %660 {offsets = [0, 16], sizes = [2, 8], strides = [1, 1]} : vector<2x32xf32> to vector<2x8xf32>
    %709 = vector.shape_cast %708 : vector<2x8xf32> to vector<2x1x8xf32>
    %710 = vector.extract_strided_slice %664 {offsets = [0, 16], sizes = [16, 8], strides = [1, 1]} : vector<16x32xf32> to vector<16x8xf32>
    %711 = vector.shape_cast %710 : vector<16x8xf32> to vector<2x8x8xf32>
    %712 = vector.extract_strided_slice %665 {offsets = [0, 16], sizes = [16, 8], strides = [1, 1]} : vector<16x32xf32> to vector<16x8xf32>
    %713 = vector.shape_cast %712 : vector<16x8xf32> to vector<2x8x8xf32>
    "tpu.trace_start"() <{level = 10 : i32, message = "bqd,bkd->bqk"}> : () -> ()
    %cst_247 = arith.constant dense<0.000000e+00> : vector<2x1x8xf32>
    %714 = tpu.matmul %709, %711, %cst_247 {dimension_numbers = #tpu.dot_dimension_numbers<[2], [2], [1], [1], [0, 0, 0, 1, 1, 1], [0], [0]>} : vector<2x1x8xf32>, vector<2x8x8xf32>, vector<2x1x8xf32> -> vector<2x1x8xf32>
    "tpu.trace_stop"() : () -> ()
    %715 = vector.shape_cast %0 : vector<2x8xf32> to vector<2x1x8xf32>
    %716 = arith.addf %714, %715 : vector<2x1x8xf32>
    %cst_248 = arith.constant dense<0xFF800000> : vector<2x1xf32>
    %717 = vector.multi_reduction <maximumf>, %716, %cst_248 [2] : vector<2x1x8xf32> to vector<2x1xf32>
    %718 = vector.shape_cast %717 : vector<2x1xf32> to vector<2x1x1xf32>
    %719 = vector.broadcast %718 : vector<2x1x1xf32> to vector<2x1x8xf32>
    %720 = arith.subf %716, %719 : vector<2x1x8xf32>
    %721 = math.exp %720 : vector<2x1x8xf32>
    %cst_249 = arith.constant dense<0.000000e+00> : vector<2x1xf32>
    %722 = vector.multi_reduction <add>, %721, %cst_249 [2] : vector<2x1x8xf32> to vector<2x1xf32>
    %723 = vector.shape_cast %722 : vector<2x1xf32> to vector<2x1x1xf32>
    %724 = tpu.reciprocal %723 {approx = true} : vector<2x1x1xf32> -> vector<2x1x1xf32>
    %725 = vector.broadcast %724 : vector<2x1x1xf32> to vector<2x1x8xf32>
    %726 = arith.mulf %721, %725 : vector<2x1x8xf32>
    "tpu.trace_start"() <{level = 10 : i32, message = "bqk,bkd->bqd"}> : () -> ()
    %cst_250 = arith.constant dense<0.000000e+00> : vector<2x1x8xf32>
    %727 = tpu.matmul %726, %713, %cst_250 {dimension_numbers = #tpu.dot_dimension_numbers<[2], [1], [1], [2], [0, 0, 0, 1, 1, 2], [0], [0]>} : vector<2x1x8xf32>, vector<2x8x8xf32>, vector<2x1x8xf32> -> vector<2x1x8xf32>
    "tpu.trace_stop"() : () -> ()
    %728 = vector.shape_cast %727 : vector<2x1x8xf32> to vector<2x8xf32>
    %729 = vector.extract_strided_slice %660 {offsets = [0, 24], sizes = [2, 8], strides = [1, 1]} : vector<2x32xf32> to vector<2x8xf32>
    %730 = vector.shape_cast %729 : vector<2x8xf32> to vector<2x1x8xf32>
    %731 = vector.extract_strided_slice %664 {offsets = [0, 24], sizes = [16, 8], strides = [1, 1]} : vector<16x32xf32> to vector<16x8xf32>
    %732 = vector.shape_cast %731 : vector<16x8xf32> to vector<2x8x8xf32>
    %733 = vector.extract_strided_slice %665 {offsets = [0, 24], sizes = [16, 8], strides = [1, 1]} : vector<16x32xf32> to vector<16x8xf32>
    %734 = vector.shape_cast %733 : vector<16x8xf32> to vector<2x8x8xf32>
    "tpu.trace_start"() <{level = 10 : i32, message = "bqd,bkd->bqk"}> : () -> ()
    %cst_251 = arith.constant dense<0.000000e+00> : vector<2x1x8xf32>
    %735 = tpu.matmul %730, %732, %cst_251 {dimension_numbers = #tpu.dot_dimension_numbers<[2], [2], [1], [1], [0, 0, 0, 1, 1, 1], [0], [0]>} : vector<2x1x8xf32>, vector<2x8x8xf32>, vector<2x1x8xf32> -> vector<2x1x8xf32>
    "tpu.trace_stop"() : () -> ()
    %736 = vector.shape_cast %0 : vector<2x8xf32> to vector<2x1x8xf32>
    %737 = arith.addf %735, %736 : vector<2x1x8xf32>
    %cst_252 = arith.constant dense<0xFF800000> : vector<2x1xf32>
    %738 = vector.multi_reduction <maximumf>, %737, %cst_252 [2] : vector<2x1x8xf32> to vector<2x1xf32>
    %739 = vector.shape_cast %738 : vector<2x1xf32> to vector<2x1x1xf32>
    %740 = vector.broadcast %739 : vector<2x1x1xf32> to vector<2x1x8xf32>
    %741 = arith.subf %737, %740 : vector<2x1x8xf32>
    %742 = math.exp %741 : vector<2x1x8xf32>
    %cst_253 = arith.constant dense<0.000000e+00> : vector<2x1xf32>
    %743 = vector.multi_reduction <add>, %742, %cst_253 [2] : vector<2x1x8xf32> to vector<2x1xf32>
    %744 = vector.shape_cast %743 : vector<2x1xf32> to vector<2x1x1xf32>
    %745 = tpu.reciprocal %744 {approx = true} : vector<2x1x1xf32> -> vector<2x1x1xf32>
    %746 = vector.broadcast %745 : vector<2x1x1xf32> to vector<2x1x8xf32>
    %747 = arith.mulf %742, %746 : vector<2x1x8xf32>
    "tpu.trace_start"() <{level = 10 : i32, message = "bqk,bkd->bqd"}> : () -> ()
    %cst_254 = arith.constant dense<0.000000e+00> : vector<2x1x8xf32>
    %748 = tpu.matmul %747, %734, %cst_254 {dimension_numbers = #tpu.dot_dimension_numbers<[2], [1], [1], [2], [0, 0, 0, 1, 1, 2], [0], [0]>} : vector<2x1x8xf32>, vector<2x8x8xf32>, vector<2x1x8xf32> -> vector<2x1x8xf32>
    "tpu.trace_stop"() : () -> ()
    %749 = vector.shape_cast %748 : vector<2x1x8xf32> to vector<2x8xf32>
    %750 = tpu.concatenate %686, %707, %728, %749 in 1 : vector<2x8xf32>, vector<2x8xf32>, vector<2x8xf32>, vector<2x8xf32> -> vector<2x32xf32>
    %c1_255 = arith.constant 1 : index
    %c0_256 = arith.constant 0 : index
    %c0_257 = arith.constant 0 : index
    %751 = vector.load %arg16[%c1_255, %c0_256, %c0_257] : memref<2x32x32xf32, #tpu.memory_space<vmem>>, vector<1x32x32xf32>
    %752 = vector.shape_cast %751 : vector<1x32x32xf32> to vector<32x32xf32>
    %cst_258 = arith.constant dense<0.000000e+00> : vector<2x32xf32>
    %753 = tpu.matmul %750, %752, %cst_258 {dimension_numbers = #tpu.dot_dimension_numbers<[1], [0], [0], [1], [0, 0, 1, 1], [], []>} : vector<2x32xf32>, vector<32x32xf32>, vector<2x32xf32> -> vector<2x32xf32>
    %754 = arith.addf %643, %753 : vector<2x32xf32>
    %c1_259 = arith.constant 1 : index
    %c0_260 = arith.constant 0 : index
    %c0_261 = arith.constant 0 : index
    %755 = vector.load %arg20[%c1_259, %c0_260, %c0_261] : memref<2x1x32xf32, #tpu.memory_space<vmem>>, vector<1x1x32xf32>
    %756 = vector.shape_cast %755 : vector<1x1x32xf32> to vector<1x32xf32>
    %757 = arith.mulf %754, %754 : vector<2x32xf32>
    %cst_262 = arith.constant dense<0.000000e+00> : vector<2xf32>
    %758 = vector.multi_reduction <add>, %757, %cst_262 [1] : vector<2x32xf32> to vector<2xf32>
    %759 = vector.shape_cast %758 : vector<2xf32> to vector<2x1xf32>
    %cst_263 = arith.constant 3.200000e+01 : f32
    %760 = vector.broadcast %cst_263 : f32 to vector<2x1xf32>
    %761 = arith.divf %759, %760 : vector<2x1xf32>
    %cst_264 = arith.constant 9.99999997E-7 : f32
    %762 = vector.broadcast %cst_264 : f32 to vector<2x1xf32>
    %763 = arith.addf %761, %762 : vector<2x1xf32>
    %764 = math.rsqrt %763 : vector<2x1xf32>
    %765 = vector.broadcast %764 : vector<2x1xf32> to vector<2x32xf32>
    %766 = arith.mulf %754, %765 : vector<2x32xf32>
    %767 = vector.broadcast %756 : vector<1x32xf32> to vector<2x32xf32>
    %768 = arith.mulf %766, %767 : vector<2x32xf32>
    %c1_265 = arith.constant 1 : index
    %c0_266 = arith.constant 0 : index
    %c0_267 = arith.constant 0 : index
    %769 = vector.load %arg18[%c1_265, %c0_266, %c0_267] : memref<2x32x64xf32, #tpu.memory_space<vmem>>, vector<1x32x64xf32>
    %770 = vector.shape_cast %769 : vector<1x32x64xf32> to vector<32x64xf32>
    %cst_268 = arith.constant dense<0.000000e+00> : vector<2x64xf32>
    %771 = tpu.matmul %768, %770, %cst_268 {dimension_numbers = #tpu.dot_dimension_numbers<[1], [0], [0], [1], [0, 0, 1, 1], [], []>} : vector<2x32xf32>, vector<32x64xf32>, vector<2x64xf32> -> vector<2x64xf32>
    %cst_269 = arith.constant 0.000000e+00 : f32
    %772 = vector.broadcast %cst_269 : f32 to vector<2x64xf32>
    %773 = arith.maximumf %771, %772 : vector<2x64xf32>
    %c1_270 = arith.constant 1 : index
    %c0_271 = arith.constant 0 : index
    %c0_272 = arith.constant 0 : index
    %774 = vector.load %arg19[%c1_270, %c0_271, %c0_272] : memref<2x64x32xf32, #tpu.memory_space<vmem>>, vector<1x64x32xf32>
    %775 = vector.shape_cast %774 : vector<1x64x32xf32> to vector<64x32xf32>
    %cst_273 = arith.constant dense<0.000000e+00> : vector<2x32xf32>
    %776 = tpu.matmul %773, %775, %cst_273 {dimension_numbers = #tpu.dot_dimension_numbers<[1], [0], [0], [1], [0, 0, 1, 1], [], []>} : vector<2x64xf32>, vector<64x32xf32>, vector<2x32xf32> -> vector<2x32xf32>
    %777 = arith.addf %754, %776 : vector<2x32xf32>
    %c0_274 = arith.constant 0 : index
    %c0_275 = arith.constant 0 : index
    %778 = vector.load %arg21[%c0_274, %c0_275] : memref<1x32xf32, #tpu.memory_space<vmem>>, vector<1x32xf32>
    %779 = arith.mulf %777, %777 : vector<2x32xf32>
    %cst_276 = arith.constant dense<0.000000e+00> : vector<2xf32>
    %780 = vector.multi_reduction <add>, %779, %cst_276 [1] : vector<2x32xf32> to vector<2xf32>
    %781 = vector.shape_cast %780 : vector<2xf32> to vector<2x1xf32>
    %cst_277 = arith.constant 3.200000e+01 : f32
    %782 = vector.broadcast %cst_277 : f32 to vector<2x1xf32>
    %783 = arith.divf %781, %782 : vector<2x1xf32>
    %cst_278 = arith.constant 9.99999997E-7 : f32
    %784 = vector.broadcast %cst_278 : f32 to vector<2x1xf32>
    %785 = arith.addf %783, %784 : vector<2x1xf32>
    %786 = math.rsqrt %785 : vector<2x1xf32>
    %787 = vector.broadcast %786 : vector<2x1xf32> to vector<2x32xf32>
    %788 = arith.mulf %777, %787 : vector<2x32xf32>
    %789 = vector.broadcast %778 : vector<1x32xf32> to vector<2x32xf32>
    %790 = arith.mulf %788, %789 : vector<2x32xf32>
    %c0_279 = arith.constant 0 : index
    %c0_280 = arith.constant 0 : index
    %791 = vector.load %arg22[%c0_279, %c0_280] : memref<32x2xf32, #tpu.memory_space<vmem>>, vector<32x2xf32>
    %cst_281 = arith.constant dense<0.000000e+00> : vector<2x2xf32>
    %792 = tpu.matmul %790, %791, %cst_281 {dimension_numbers = #tpu.dot_dimension_numbers<[1], [0], [0], [1], [0, 0, 1, 1], [], []>} : vector<2x32xf32>, vector<32x2xf32>, vector<2x2xf32> -> vector<2x2xf32>
    %c0_282 = arith.constant 0 : index
    %c0_283 = arith.constant 0 : index
    %793 = vector.load %arg23[%c0_282, %c0_283] : memref<1x2xf32, #tpu.memory_space<vmem>>, vector<1x2xf32>
    %794 = vector.broadcast %793 : vector<1x2xf32> to vector<2x2xf32>
    %795 = arith.addf %792, %794 : vector<2x2xf32>
    %c0_284 = arith.constant 0 : index
    %c0_285 = arith.constant 0 : index
    %796 = vector.load %arg24[%c0_284, %c0_285] : memref<2x2xf32, #tpu.memory_space<vmem>>, vector<2x2xf32>
    tpu.vector_store %arg24[%c0_284, %c0_285], %795 {strides = array<i32>} : memref<2x2xf32, #tpu.memory_space<vmem>>, vector<2x2xf32>,
    return
  }
}

</mosaic_0001>

<bundles_post_ra>
// kernel: t5_forward.1
= control target key start
LH: loop header
LB: loop body
LE: loop exit
PB: predicated region body
PF: predicated region fallthrough
CT: control target
= control target key end

     0   :  { %s12406_s0 = inlined_call_operand.vmem [shape: f32[16,32], index: 0, kind: input, shape index: {}]   ;;  %s12407_s1 = inlined_call_operand.vmem [shape: f32[2,8], index: 1, kind: input, shape index: {}]   ;;  %s12408_s2 = inlined_call_operand.vmem [shape: f32[4,8,8], index: 2, kind: input, shape index: {}]   ;;  %s12409_s3 = inlined_call_operand.vmem [shape: f32[2,32,96], index: 3, kind: input, shape index: {}]   ;;  %s12410_s4 = inlined_call_operand.vmem [shape: f32[2,32,32], index: 4, kind: input, shape index: {}]   ;;  %s12411_s5 = inlined_call_operand.vmem [shape: f32[2,1,32], index: 5, kind: input, shape index: {}]   ;;  %s12412_s6 = inlined_call_operand.vmem [shape: f32[2,32,64], index: 6, kind: input, shape index: {}]   ;;  %s12413_s7 = inlined_call_operand.vmem [shape: f32[2,64,32], index: 7, kind: input, shape index: {}]   ;;  %s12414_s8 = inlined_call_operand.vmem [shape: f32[2,1,32], index: 8, kind: input, shape index: {}]   ;;  %s12415_s9 = inlined_call_operand.vmem [shape: f32[1,32], index: 9, kind: input, shape index: {}]   ;;  %s12416_s10 = inlined_call_operand.vmem [shape: f32[2,32], index: 10, kind: input, shape index: {}]   ;;  %s12417_s11 = inlined_call_operand.vmem [shape: f32[2,32,96], index: 11, kind: input, shape index: {}]   ;;  %s12418_s12 = inlined_call_operand.vmem [shape: f32[2,32,32], index: 12, kind: input, shape index: {}]   ;;  %s12419_s13 = inlined_call_operand.vmem [shape: f32[2,1,32], index: 13, kind: input, shape index: {}]   ;;  %s12420_s14 = inlined_call_operand.vmem [shape: f32[2,32,32], index: 14, kind: input, shape index: {}]   ;;  %s12421_s15 = inlined_call_operand.vmem [shape: f32[2,32,64], index: 15, kind: input, shape index: {}]   ;;  %s12422_s16 = inlined_call_operand.vmem [shape: f32[2,32,32], index: 16, kind: input, shape index: {}]   ;;  %s12423_s17 = inlined_call_operand.vmem [shape: f32[2,1,32], index: 17, kind: input, shape index: {}]   ;;  %s12424_s18 = inlined_call_operand.vmem [shape: f32[2,32,64], index: 18, kind: input, shape index: {}]   ;;  %s12425_s19 = inlined_call_operand.vmem [shape: f32[2,64,32], index: 19, kind: input, shape index: {}]   ;;  %s12426_s20 = inlined_call_operand.vmem [shape: f32[2,1,32], index: 20, kind: input, shape index: {}]   ;;  %s12427_s21 = inlined_call_operand.vmem [shape: f32[1,32], index: 21, kind: input, shape index: {}]   ;;  %s12428_s22 = inlined_call_operand.vmem [shape: f32[32,2], index: 22, kind: input, shape index: {}]   ;;  %s12429_s23 = inlined_call_operand.vmem [shape: f32[1,2], index: 23, kind: input, shape index: {}]   ;;  %s12430_s24 = inlined_call_operand.hbm [shape: f32[2,2], index: 24, kind: output, shape index: {}]  }
   0x1   :  { %12473 = sst [smem:[#allocation5_spill]] %s12406_s0 }
   0x2   :  { %12474 = sst [smem:[#allocation6_spill]] %s12407_s1 }
   0x3   :  { %12475 = sst [smem:[#allocation7_spill]] %s12408_s2 }
   0x4   :  { %12476 = sst [smem:[#allocation8_spill]] %s12409_s3 }
   0x5   :  { %12477 = sst [smem:[#allocation9_spill]] %s12410_s4 }
   0x6   :  { %12478 = sst [smem:[#allocation10_spill]] %s12411_s5 }
   0x7   :  { %12479 = sst [smem:[#allocation11_spill]] %s12412_s6 }
   0x8   :  { %12480 = sst [smem:[#allocation12_spill]] %s12413_s7 }
   0x9   :  { %12481 = sst [smem:[#allocation13_spill]] %s12414_s8 }
   0xa   :  { %12482 = sst [smem:[#allocation14_spill]] %s12422_s16 }
   0xb   :  { %12483 = sst [smem:[#allocation15_spill]] %s12424_s18 }
   0xc   :  { %12484 = sst [smem:[#allocation16_spill]] %s12425_s19 }
   0xd   :  { %12485 = sst [smem:[#allocation17_spill]] %s12426_s20 }
   0xe   :  { %12486 = sst [smem:[#allocation18_spill]] %s12427_s21 }
   0xf   :  { %12487 = sst [smem:[#allocation19_spill]] %s12428_s22 }
  0x10   :  { %12488 = sst [smem:[#allocation20_spill]] %s12429_s23 }
  0x11   :  { %12489 = sst [smem:[#allocation21_spill]] %s12430_s24 }
  0x12   :  { %s12490_s27 = sld [smem:[#allocation5_spill]]  ;;  %vm84_vm0 = vcmask 261120  }
  0x18   :  { %v10949_v0 = vld [vmem:[%s12490_s27] sm:$0xff]  ;;  %v10954_v1 = vld [vmem:[%s12490_s27 + $0x8] sm:$0xff] }
  0x19   :  { %29 = vsyncpa [#allocation3], 0  ;;  %v82_v2 = vmul.f32 %v10949_v0, %v10949_v0  ;;  %v83_v3 = vmul.f32 %v10954_v1, %v10954_v1  ;;  %s12491_s0 = sld [smem:[#allocation8_spill]]  ;;  %v10803_v23 = vmov 0.0   ;;  %vm10804_vm1 = vmmov 0   ;;  %s12465_s27 = smov 96  }
  0x1a   :  { %s12492_s26 = sld [smem:[#allocation10_spill]]  ;;  %9863 = vmatprep.subr.mxu1 %v10803_v23  ;;  %9865 = vmatprep.mubr.msk.f32.mxu1 %vm10804_vm1, %v10803_v23  ;;  %vm234_vm2 = vcmask 64512   ;;  %v10806_v28 = vmov 1966171168   ;;  %v206_v30 = vlaneseq  ;;  %s12461_s3 = smov 88   ;;  %vm1591_vm3 = vcmask 195584  }
  0x1b   :  { %v85_v4 = vsel %vm84_vm0, %v82_v2, 0.0  ;;  %v88_v5 = vsel %vm84_vm0, %v83_v3, 0.0  ;;  %v204_v29 = vunpack.c.l.s4 %v10806_v28  ;;  %s12493_s2 = sld [smem:[#allocation6_spill]]  ;;  %s12463_s25 = smov 64   ;;  %vm1588_vm4 = vcmask 130048  }
  0x1c   :  { %86 = vadd.xlane.f32.xlu0 %v85_v4  ;;  %v207_v32 = vshrl.u32 %v206_v30, 7  ;;  %s12494_s30 = sld [smem:[#allocation7_spill]]  ;;  %s12459_s8 = smov 120   ;;  %vm1801_vm5 = vcmask 523264   ;;  %vm3667_vm6 = vcmask 254976   ;;  %vm3788_vm7 = vcmask 57344  }
  0x1d   :  { %v205_v31 = vunpack.c.0.s8 %v204_v29  ;;  %s12455_s5 = smov 56   ;;  %s12453_s28 = smov 80   ;;  %vm3821_vm8 = vcmask 1040384   ;;  %vm3817_vm9 = vcmask 7168   ;;  %vm4522_vm10 = vcmask 1041409  }
  0x1e   :  { %v11015_v36 = vsub.s32 0, %v207_v32  ;;  %s12451_s6 = smov 112   ;;  %s12449_s7 = smov 48   ;;  %vm9300_vm11 = vcmask 9216  }
  0x1f   :  { %v111_v6 = vld [vmem:[%s12491_s0 + $0x18] sm:$0xff]  ;;  %v110_v7 = vld [vmem:[%s12491_s0 + $0x10] sm:$0xff]  ;;  %v109_v8 = vld [vmem:[%s12491_s0 + $0x8] sm:$0xff]  ;;  %v11007_v33 = vsub.s32 %v205_v31, %v207_v32  ;;  %s12443_s4 = smov 72   ;;  %s12441_s1 = smov 104  }
  0x20   :  { %89 = vadd.xlane.f32.xlu0 %v88_v5  ;;  %9852 = vmatprep.subr.mxu0 %v111_v6  ;;  %v108_v9 = vld [vmem:[%s12491_s0] sm:$0xff]  ;;  %s12447_s29 = smov 16   ;;  %s12510_s24 = smov 16  }
  0x21   :  { %9853 = vmatpush3.msra.mxu0 %v111_v6  ;;  %v9316_v17 = vld [vmem:[%s12492_s26] ss:$0 sm:$0xff]  ;;  %s12511_s21 = smov 24   ;;  %s12514_s20 = sld [smem:[#allocation14_spill]] }
  0x22   :  { %9854 = vmatprep.subr.mxu0 %v110_v7  ;;  %v9319_v34 = vld.sshfl [vmem:[%s12493_s2] sm:$0x11 pattern:$0x75316420]  ;;  %s12445_s2 = smov 40   ;;  %s12515_s19 = sld [smem:[#allocation15_spill]] }
  0x23   :  { %9855 = vmatpush3.msra.mxu0 %v110_v7  ;;  %v11013_v35 = vrot.slane %v9319_v34, %v11007_v33  ;;  %v202_v37 = vcombine.high %v9319_v34, %v9319_v34  ;;  %v193_v40 = vld [vmem:[%s12494_s30] sm:$0xff]  ;;  %s12516_s18 = sld [smem:[#allocation16_spill]] }
  0x24   :  { %9856 = vmatprep.subr.mxu0 %v109_v8 }
  0x25   :  { %9857 = vmatpush3.msra.mxu0 %v109_v8  ;;  %v11019_v38 = vrot.slane %v11013_v35, %v11015_v36  ;;  %v11022_v39 = vrot.slane %v202_v37, %v11007_v33 }
  0x26   :  { %9858 = vmatprep.subr.mxu0 %v108_v9 }
  0x27   :  { %9859 = vmatpush3.msra.mxu0 %v108_v9  ;;  %v229_v41 = vadd.f32 %v11019_v38, %v193_v40  ;;  %v11030_v42 = vrot.slane %v11022_v39, %v11015_v36 }
  0x28   :  { %9883 = vmatprep.subr.mxu0 %v10803_v23 }
  0x29   :  { %v230_v45 = vadd.f32 %v11030_v42, %v193_v40 }
  0xa5   :  { %v87_v10 = vpop.xlane.xlu0 %86 }
  0xa6   :  { %v92_v11 = vmul.f32 0.03125, %v87_v10 }
  0xa8   :  { %v94_v12 = vadd.f32 1e-06, %v92_v11 }
  0xa9   :  { %v90_v13 = vpop.xlane.xlu0 %89 }
  0xaa   :  { %10555 = vrsqrt.f32 %v94_v12  ;;  %v93_v14 = vmul.f32 0.03125, %v90_v13  ;;  %v9326_v12 = vld [vmem:[%s12494_s30 + $0x8] sm:$0xff] }
  0xab   :  { %v562_v13 = vadd.f32 %v9326_v12, %v11019_v38 }
  0xac   :  { %v95_v15 = vadd.f32 1e-06, %v93_v14 }
  0xae   :  { %10557 = vrsqrt.f32 %v95_v15 }
  0xb7   :  { %v10556_v16 = vpop.eup %10555 }
  0xb8   :  { %v98_v18 = vmul.f32 %v10556_v16, %v10949_v0 }
  0xba   :  { %v106_v19 = vmul.f32 %v9316_v17, %v98_v18 }
  0xbb   :  { %v10558_v20 = vpop.eup %10557 }
  0xbc   :  { %v99_v21 = vmul.f32 %v10558_v20, %v10954_v1  ;;  %9860 = vmatprep.mubr.msk.f32.mxu0 %vm84_vm0, %v106_v19 }
  0xbe   :  { %v107_v22 = vmul.f32 %v9316_v17, %v99_v21  ;;  %v563_v21 = vadd.f32 %v9326_v12, %v11030_v42 }
  0xc0   :  { %9861 = vmatmul.mubr.msk.f32.vlgmr.msra.gmra.mxu0 %vm84_vm0, %v107_v22 }
  0xc1   :  { %9885 = vmatprep.mubr.msk.f32.mxu0 %vm10804_vm1, %v10803_v23 }
 0x180   :  { %v10987_v24 = vpop.f32.mrf.mxu0 }
 0x182   :  { %v10989_v25 = vpop.f32.mrf.mxu0 }
 0x183   :  { %232 = vrot.lane.b32.xlu1 %v10989_v25, %s12465_s27 }
 0x187   :  { %310 = vrot.lane.b32.xlu1 %v10987_v24, %s12465_s27 }
 0x1f5   :  { %v233_v26 = vpop.permute.xlu1 %232 }
 0x1f6   :  { %9864 = vmatpush3.xpose.msk.msra.mxu1 %vm234_vm2, %v233_v26 }
 0x1f7   :  { %9868 = vmatprep.subr.mxu1 %v10803_v23 }
 0x1f9   :  { %9866 = vmatmul.mubr.msk.f32.vlgmr.msra.gmra.mxu1 %vm234_vm2, %v10989_v25  ;;  %v311_v27 = vpop.permute.xlu1 %310 }
 0x1fa   :  { %9869 = vmatpush3.xpose.msk.msra.mxu1 %vm234_vm2, %v311_v27  ;;  %9870 = vmatprep.mubr.msk.f32.mxu1 %vm10804_vm1, %v10803_v23 }
 0x1fb   :  { %9873 = vmatprep.subr.mxu1 %v10803_v23 }
 0x1fd   :  { %9871 = vmatmul.mubr.msk.f32.vlgmr.msra.gmra.mxu1 %vm234_vm2, %v10987_v24 }
 0x1fe   :  { %9875 = vmatprep.mubr.msk.f32.mxu1 %vm10804_vm1, %v10803_v23 }
 0x2b9   :  { %v305_v43 = vpop.f32.mrf.mxu1 }
 0x2ba   :  { %v306_v44 = vadd.f32 %v305_v43, %v229_v41 }
 0x2bb   :  { %v9867_v46 = vpop.f32.mrf.mxu1 }
 0x2bc   :  { %v386_v47 = vsel %vm234_vm2, %v306_v44, -inf }
 0x2bd   :  { %v382_v48 = vpop.f32.mrf.mxu1  ;;  %387 = vmax.xlane.f32.xlu0 %v386_v47 }
 0x2be   :  { %v383_v49 = vadd.f32 %v382_v48, %v230_v45 }
 0x2bf   :  { %v9872_v50 = vpop.f32.mrf.mxu1 }
 0x2c0   :  { %v389_v51 = vsel %vm234_vm2, %v383_v49, -inf }
 0x2c1   :  { %390 = vmax.xlane.f32.xlu1 %v389_v51 }
 0x2d2   :  { %566 = vrot.lane.b32.xlu1 %v10989_v25, %s12461_s3 }
 0x2d3   :  { %408 = vrot.lane.b32.xlu0 %v10989_v25, %s12463_s25 }
 0x2d7   :  { %484 = vrot.lane.b32.xlu0 %v10987_v24, %s12463_s25  ;;  %s12501_s25 = smov 120  }
 0x2db   :  { %644 = vrot.lane.b32.xlu0 %v10987_v24, %s12461_s3  ;;  %s12506_s3 = smov 72  }
 0x346   :  { %v388_v52 = vpop.xlane.xlu0 %387 }
 0x347   :  { %v392_v53 = vsub.f32 %v306_v44, %v388_v52 }
 0x349   :  { %v394_v54 = vmul.f32 1.442695, %v392_v53 }
 0x34a   :  { %v409_v55 = vpop.permute.xlu0 %408  ;;  %v391_v56 = vpop.xlane.xlu1 %390 }
 0x34b   :  { %10559 = vpow2.f32 %v394_v54  ;;  %v393_v57 = vsub.f32 %v383_v49, %v391_v56  ;;  %9874 = vmatpush3.msra.mxu1 %v409_v55 }
 0x34c   :  { %9878 = vmatprep.subr.mxu1 %v10803_v23 }
 0x34d   :  { %v396_v58 = vmul.f32 1.442695, %v393_v57 }
 0x34e   :  { %v567_v59 = vpop.permute.xlu1 %566  ;;  %v485_v2 = vpop.permute.xlu0 %484 }
 0x34f   :  { %10561 = vpow2.f32 %v396_v58  ;;  %9884 = vmatpush3.xpose.msk.msra.mxu0 %vm234_vm2, %v567_v59 }
 0x350   :  { %9893 = vmatprep.subr.mxu0 %v10803_v23 }
 0x352   :  { %v645_v3 = vpop.permute.xlu0 %644 }
 0x358   :  { %v10560_v60 = vpop.eup %10559 }
 0x359   :  { %v398_v61 = vsel %vm234_vm2, %v10560_v60, 0.0 }
 0x35a   :  { %399 = vadd.xlane.f32.xlu0 %v398_v61 }
 0x35c   :  { %v10562_v62 = vpop.eup %10561 }
 0x35d   :  { %v401_v63 = vsel %vm234_vm2, %v10562_v62, 0.0 }
 0x35e   :  { %402 = vadd.xlane.f32.xlu0 %v401_v63 }
 0x374   :  { %564 = vrot.lane.b32.xlu0 %v10989_v25, %s12459_s8 }
 0x378   :  { %642 = vrot.lane.b32.xlu0 %v10987_v24, %s12459_s8  ;;  %s12502_s8 = smov 56  }
 0x3e3   :  { %v400_v4 = vpop.xlane.xlu0 %399 }
 0x3e4   :  { %10563 = vrcp.f32 %v400_v4 }
 0x3e7   :  { %v403_v5 = vpop.xlane.xlu0 %402 }
 0x3e8   :  { %10565 = vrcp.f32 %v403_v5 }
 0x3eb   :  { %v565_v6 = vpop.permute.xlu0 %564 }
 0x3ec   :  { %9886 = vmatmul.mubr.msk.f32.vlgmr.msra.gmra.mxu0 %vm234_vm2, %v565_v6 }
 0x3ed   :  { %9895 = vmatprep.mubr.msk.f32.mxu0 %vm10804_vm1, %v10803_v23 }
 0x3ef   :  { %v643_v11 = vpop.permute.xlu0 %642 }
 0x3f1   :  { %v10564_v7 = vpop.eup %10563 }
 0x3f2   :  { %v406_v8 = vmul.f32 %v10564_v7, %v10560_v60  ;;  %v9333_v60 = vld [vmem:[%s12494_s30 + $0x10] sm:$0xff] }
 0x3f3   :  { %v896_v61 = vadd.f32 %v9333_v60, %v11019_v38  ;;  %v897_v5 = vadd.f32 %v9333_v60, %v11030_v42 }
 0x3f4   :  { %9876 = vmatmul.mubr.msk.f32.vlgmr.msra.gmra.mxu1 %vm234_vm2, %v406_v8 }
 0x3f5   :  { %v10566_v9 = vpop.eup %10565  ;;  %9879 = vmatpush3.msra.mxu1 %v485_v2  ;;  %9880 = vmatprep.mubr.msk.f32.mxu1 %vm10804_vm1, %v10803_v23 }
 0x3f6   :  { %9888 = vmatprep.subr.mxu1 %v10803_v23  ;;  %v407_v10 = vmul.f32 %v10566_v9, %v10562_v62 }
 0x3f8   :  { %9881 = vmatmul.mubr.msk.f32.vlgmr.msra.gmra.mxu1 %vm234_vm2, %v407_v10 }
 0x3f9   :  { %9889 = vmatpush3.xpose.msk.msra.mxu1 %vm234_vm2, %v645_v3  ;;  %9890 = vmatprep.mubr.msk.f32.mxu1 %vm10804_vm1, %v10803_v23 }
 0x3fa   :  { %9898 = vmatprep.subr.mxu1 %v10803_v23 }
 0x3fc   :  { %9891 = vmatmul.mubr.msk.f32.vlgmr.msra.gmra.mxu1 %vm234_vm2, %v643_v11 }
 0x3fd   :  { %9900 = vmatprep.mubr.msk.f32.mxu1 %vm10804_vm1, %v10803_v23 }
 0x4ac   :  { %v638_v14 = vpop.f32.mrf.mxu0 }
 0x4ad   :  { %v639_v15 = vadd.f32 %v638_v14, %v562_v13 }
 0x4ae   :  { %v9887_v16 = vpop.f32.mrf.mxu0 }
 0x4af   :  { %v720_v17 = vsel %vm234_vm2, %v639_v15, -inf }
 0x4b0   :  { %721 = vmax.xlane.f32.xlu0 %v720_v17 }
 0x4b4   :  { %v11072_v18 = vpop.f32.mrf.mxu1 }
 0x4b6   :  { %v9877_v19 = vpop.f32.mrf.mxu1 }
 0x4b8   :  { %v11074_v20 = vpop.f32.mrf.mxu1 }
 0x4ba   :  { %v9882_v22 = vpop.f32.mrf.mxu1 }
 0x4bc   :  { %v716_v26 = vpop.f32.mrf.mxu1 }
 0x4bd   :  { %v717_v27 = vadd.f32 %v716_v26, %v563_v21 }
 0x4be   :  { %v9892_v28 = vpop.f32.mrf.mxu1 }
 0x4bf   :  { %v723_v29 = vsel %vm234_vm2, %v717_v27, -inf }
 0x4c0   :  { %724 = vmax.xlane.f32.xlu1 %v723_v29 }
 0x4d1   :  { %818 = vrot.lane.b32.xlu1 %v10987_v24, %s12455_s5 }
 0x4d5   :  { %900 = vrot.lane.b32.xlu1 %v10989_v25, %s12453_s28 }
 0x4d9   :  { %978 = vrot.lane.b32.xlu1 %v10987_v24, %s12453_s28  ;;  %s12505_s28 = smov 48  }
 0x4dd   :  { %976 = vrot.lane.b32.xlu1 %v10987_v24, %s12451_s6 }
 0x539   :  { %v722_v30 = vpop.xlane.xlu0 %721 }
 0x53a   :  { %v726_v31 = vsub.f32 %v639_v15, %v722_v30 }
 0x53c   :  { %v728_v32 = vmul.f32 1.442695, %v726_v31 }
 0x53e   :  { %10567 = vpow2.f32 %v728_v32 }
 0x549   :  { %v725_v34 = vpop.xlane.xlu1 %724 }
 0x54a   :  { %v727_v43 = vsub.f32 %v717_v27, %v725_v34 }
 0x54b   :  { %v10568_v37 = vpop.eup %10567 }
 0x54c   :  { %v732_v40 = vsel %vm234_vm2, %v10568_v37, 0.0  ;;  %v730_v44 = vmul.f32 1.442695, %v727_v43 }
 0x54d   :  { %733 = vadd.xlane.f32.xlu0 %v732_v40  ;;  %v819_v41 = vpop.permute.xlu1 %818 }
 0x54e   :  { %9899 = vmatpush3.msra.mxu1 %v819_v41  ;;  %10569 = vpow2.f32 %v730_v44 }
 0x54f   :  { %9908 = vmatprep.subr.mxu1 %v10803_v23 }
 0x551   :  { %v901_v51 = vpop.permute.xlu1 %900 }
 0x555   :  { %v979_v55 = vpop.permute.xlu1 %978 }
 0x559   :  { %v977_v57 = vpop.permute.xlu1 %976 }
 0x55b   :  { %v10570_v45 = vpop.eup %10569 }
 0x55c   :  { %v735_v46 = vsel %vm234_vm2, %v10570_v45, 0.0 }
 0x563   :  { %742 = vrot.lane.b32.xlu0 %v10989_v25, %s12455_s5  ;;  %s12504_s5 = smov 112  }
 0x582   :  { %736 = vadd.xlane.f32.xlu0 %v735_v46  ;;  %v9340_v46 = vld [vmem:[%s12494_s30 + $0x18] sm:$0xff]  ;;  %s12439_s30 = smov 8  }
 0x598   :  { %898 = vrot.lane.b32.xlu0 %v10989_v25, %s12451_s6  ;;  %s12496_s6 = sld [smem:[#allocation11_spill]] }
 0x5d6   :  { %v734_v47 = vpop.xlane.xlu0 %733 }
 0x5d7   :  { %10571 = vrcp.f32 %v734_v47  ;;  %v1230_v47 = vadd.f32 %v9340_v46, %v11019_v38 }
 0x5da   :  { %v743_v48 = vpop.permute.xlu0 %742 }
 0x5db   :  { %9894 = vmatpush3.msra.mxu0 %v743_v48 }
 0x5dc   :  { %9903 = vmatprep.subr.mxu0 %v10803_v23 }
 0x5e4   :  { %v10572_v49 = vpop.eup %10571 }
 0x5e5   :  { %v740_v50 = vmul.f32 %v10572_v49, %v10568_v37 }
 0x5e7   :  { %9896 = vmatmul.mubr.msk.f32.vlgmr.msra.gmra.mxu0 %vm234_vm2, %v740_v50 }
 0x5e8   :  { %9904 = vmatpush3.xpose.msk.msra.mxu0 %vm234_vm2, %v901_v51  ;;  %9905 = vmatprep.mubr.msk.f32.mxu0 %vm10804_vm1, %v10803_v23 }
 0x5e9   :  { %9913 = vmatprep.subr.mxu0 %v10803_v23 }
 0x60b   :  { %v737_v52 = vpop.xlane.xlu0 %736 }
 0x60c   :  { %10573 = vrcp.f32 %v737_v52 }
 0x60f   :  { %v899_v53 = vpop.permute.xlu0 %898 }
 0x610   :  { %9906 = vmatmul.mubr.msk.f32.vlgmr.msra.gmra.mxu0 %vm234_vm2, %v899_v53  ;;  %v1231_v53 = vadd.f32 %v9340_v46, %v11030_v42 }
 0x611   :  { %9915 = vmatprep.mubr.msk.f32.mxu0 %vm10804_vm1, %v10803_v23 }
 0x619   :  { %v10574_v54 = vpop.eup %10573 }
 0x61a   :  { %v741_v56 = vmul.f32 %v10574_v54, %v10570_v45 }
 0x61c   :  { %9901 = vmatmul.mubr.msk.f32.vlgmr.msra.gmra.mxu1 %vm234_vm2, %v741_v56 }
 0x61d   :  { %9909 = vmatpush3.xpose.msk.msra.mxu1 %vm234_vm2, %v979_v55  ;;  %9910 = vmatprep.mubr.msk.f32.mxu1 %vm10804_vm1, %v10803_v23 }
 0x61e   :  { %9918 = vmatprep.subr.mxu1 %v10803_v23 }
 0x620   :  { %9911 = vmatmul.mubr.msk.f32.vlgmr.msra.gmra.mxu1 %vm234_vm2, %v977_v57 }
 0x621   :  { %9920 = vmatprep.mubr.msk.f32.mxu1 %vm10804_vm1, %v10803_v23 }
 0x6a7   :  { %v11110_v58 = vpop.f32.mrf.mxu0 }
 0x6a9   :  { %v9897_v59 = vpop.f32.mrf.mxu0 }
 0x6d0   :  { %v972_v62 = vpop.f32.mrf.mxu0 }
 0x6d1   :  { %v973_v63 = vadd.f32 %v972_v62, %v896_v61 }
 0x6d2   :  { %v9907_v2 = vpop.f32.mrf.mxu0 }
 0x6d3   :  { %v1054_v3 = vsel %vm234_vm2, %v973_v63, -inf }
 0x6d4   :  { %1055 = vmax.xlane.f32.xlu0 %v1054_v3 }
 0x6dc   :  { %v11117_v4 = vpop.f32.mrf.mxu1 }
 0x6de   :  { %v9902_v6 = vpop.f32.mrf.mxu1 }
 0x6e0   :  { %v1050_v7 = vpop.f32.mrf.mxu1 }
 0x6e1   :  { %v1051_v8 = vadd.f32 %v1050_v7, %v897_v5 }
 0x6e2   :  { %v9912_v9 = vpop.f32.mrf.mxu1 }
 0x6e3   :  { %v1057_v10 = vsel %vm234_vm2, %v1051_v8, -inf }
 0x6e4   :  { %1058 = vmax.xlane.f32.xlu1 %v1057_v10 }
 0x6f5   :  { %1152 = vrot.lane.b32.xlu1 %v10987_v24, %s12449_s7 }
 0x6f9   :  { %1234 = vrot.lane.b32.xlu1 %v10989_v25, %s12443_s4 }
 0x6fd   :  { %1312 = vrot.lane.b32.xlu1 %v10987_v24, %s12443_s4  ;;  %s12495_s4 = sld [smem:[#allocation9_spill]] }
 0x701   :  { %1310 = vrot.lane.b32.xlu1 %v10987_v24, %s12441_s1 }
 0x75d   :  { %v1056_v11 = vpop.xlane.xlu0 %1055 }
 0x75e   :  { %v1060_v12 = vsub.f32 %v973_v63, %v1056_v11 }
 0x760   :  { %v1062_v13 = vmul.f32 1.442695, %v1060_v12 }
 0x762   :  { %10575 = vpow2.f32 %v1062_v13 }
 0x76d   :  { %v1059_v14 = vpop.xlane.xlu1 %1058 }
 0x76e   :  { %v1061_v19 = vsub.f32 %v1051_v8, %v1059_v14  ;;  %v1596_v14 = vld [vmem:[%s12495_s4 + $0x10] sm:$0xff] }
 0x76f   :  { %v10576_v15 = vpop.eup %10575 }
 0x770   :  { %v1066_v16 = vsel %vm234_vm2, %v10576_v15, 0.0  ;;  %v1064_v21 = vmul.f32 1.442695, %v1061_v19 }
 0x771   :  { %1067 = vadd.xlane.f32.xlu0 %v1066_v16  ;;  %v1153_v17 = vpop.permute.xlu1 %1152  ;;  %v1594_v16 = vld [vmem:[%s12495_s4] sm:$0xff] }
 0x772   :  { %9919 = vmatpush3.msra.mxu1 %v1153_v17  ;;  %10577 = vpow2.f32 %v1064_v21 }
 0x773   :  { %9928 = vmatprep.subr.mxu1 %v10803_v23 }
 0x775   :  { %v1235_v31 = vpop.permute.xlu1 %1234 }
 0x779   :  { %v1313_v40 = vpop.permute.xlu1 %1312 }
 0x77d   :  { %v1311_v43 = vpop.permute.xlu1 %1310 }
 0x77f   :  { %v10578_v22 = vpop.eup %10577 }
 0x780   :  { %v1069_v26 = vsel %vm234_vm2, %v10578_v22, 0.0 }
 0x787   :  { %1076 = vrot.lane.b32.xlu0 %v10989_v25, %s12449_s7  ;;  %s12497_s7 = sld [smem:[#allocation12_spill]] }
 0x7a6   :  { %1070 = vadd.xlane.f32.xlu0 %v1069_v26 }
 0x7bc   :  { %1232 = vrot.lane.b32.xlu0 %v10989_v25, %s12441_s1  ;;  %s12457_s1 = smov 24  }
 0x7fa   :  { %v1068_v27 = vpop.xlane.xlu0 %1067 }
 0x7fb   :  { %10579 = vrcp.f32 %v1068_v27 }
 0x7fe   :  { %v1077_v28 = vpop.permute.xlu0 %1076 }
 0x7ff   :  { %9914 = vmatpush3.msra.mxu0 %v1077_v28 }
 0x800   :  { %9923 = vmatprep.subr.mxu0 %v10803_v23 }
 0x808   :  { %v10580_v29 = vpop.eup %10579 }
 0x809   :  { %v1074_v30 = vmul.f32 %v10580_v29, %v10576_v15  ;;  %v1595_v15 = vld [vmem:[%s12495_s4 + $0x8] sm:$0xff] }
 0x80b   :  { %9916 = vmatmul.mubr.msk.f32.vlgmr.msra.gmra.mxu0 %vm234_vm2, %v1074_v30 }
 0x80c   :  { %9924 = vmatpush3.xpose.msk.msra.mxu0 %vm234_vm2, %v1235_v31  ;;  %9925 = vmatprep.mubr.msk.f32.mxu0 %vm10804_vm1, %v10803_v23 }
 0x80d   :  { %9933 = vmatprep.subr.mxu0 %v10803_v23 }
 0x82f   :  { %v1071_v32 = vpop.xlane.xlu0 %1070 }
 0x830   :  { %10581 = vrcp.f32 %v1071_v32 }
 0x833   :  { %v1233_v34 = vpop.permute.xlu0 %1232 }
 0x834   :  { %9926 = vmatmul.mubr.msk.f32.vlgmr.msra.gmra.mxu0 %vm234_vm2, %v1233_v34 }
 0x835   :  { %9935 = vmatprep.mubr.msk.f32.mxu0 %vm10804_vm1, %v10803_v23 }
 0x83d   :  { %v10582_v37 = vpop.eup %10581 }
 0x83e   :  { %v1075_v41 = vmul.f32 %v10582_v37, %v10578_v22 }
 0x840   :  { %9921 = vmatmul.mubr.msk.f32.vlgmr.msra.gmra.mxu1 %vm234_vm2, %v1075_v41 }
 0x841   :  { %9929 = vmatpush3.xpose.msk.msra.mxu1 %vm234_vm2, %v1313_v40  ;;  %9930 = vmatprep.mubr.msk.f32.mxu1 %vm10804_vm1, %v10803_v23 }
 0x842   :  { %9938 = vmatprep.subr.mxu1 %v10803_v23 }
 0x844   :  { %9931 = vmatmul.mubr.msk.f32.vlgmr.msra.gmra.mxu1 %vm234_vm2, %v1311_v43 }
 0x845   :  { %9940 = vmatprep.mubr.msk.f32.mxu1 %vm10804_vm1, %v10803_v23 }
 0x8cb   :  { %v1148_v44 = vpop.f32.mrf.mxu0 }
 0x8cd   :  { %v9917_v45 = vpop.f32.mrf.mxu0 }
 0x8f4   :  { %v1306_v48 = vpop.f32.mrf.mxu0 }
 0x8f5   :  { %v1307_v49 = vadd.f32 %v1306_v48, %v1230_v47 }
 0x8f6   :  { %v9927_v50 = vpop.f32.mrf.mxu0 }
 0x8f7   :  { %v1388_v51 = vsel %vm234_vm2, %v1307_v49, -inf  ;;  %v1707_v50 = vld [vmem:[%s12496_s6 + $0x8] sm:$0xff] }
 0x8f8   :  { %1389 = vmax.xlane.f32.xlu0 %v1388_v51  ;;  %v1706_v51 = vld [vmem:[%s12496_s6] sm:$0xff] }
 0x900   :  { %v1224_v52 = vpop.f32.mrf.mxu1 }
 0x902   :  { %v9922_v54 = vpop.f32.mrf.mxu1 }
 0x903   :  { %v1798_v54 = vld [vmem:[%s12497_s7 + $0x28] sm:$0xff] }
 0x904   :  { %v1384_v55 = vpop.f32.mrf.mxu1 }
 0x905   :  { %v1385_v56 = vadd.f32 %v1384_v55, %v1231_v53  ;;  %v1799_v53 = vld [vmem:[%s12497_s7 + $0x30] sm:$0xff]  ;;  %v1797_v55 = vld [vmem:[%s12497_s7 + $0x20] sm:$0xff] }
 0x906   :  { %v9932_v57 = vpop.f32.mrf.mxu1 }
 0x907   :  { %v1391_v59 = vsel %vm234_vm2, %v1385_v56, -inf }
 0x908   :  { %1392 = vmax.xlane.f32.xlu1 %v1391_v59 }
 0x919   :  { %1486 = vrot.lane.b32.xlu1 %v10987_v24, %s12445_s2 }
 0x91d   :  { %1564 = vrot.lane.b32.xlu1 %v11110_v58, %s12439_s30 }
 0x921   :  { %1566 = vrot.lane.b32.xlu1 %v11117_v4, %s12439_s30  ;;  %s12498_s30 = sld [smem:[#allocation13_spill]] }
 0x925   :  { %1574 = vrot.lane.b32.xlu1 %v1224_v52, %s12447_s29  ;;  %v1800_v52 = vld [vmem:[%s12497_s7 + $0x38] sm:$0xff] }
 0x981   :  { %v1390_v60 = vpop.xlane.xlu0 %1389 }
 0x982   :  { %v1394_v61 = vsub.f32 %v1307_v49, %v1390_v60 }
 0x984   :  { %v1396_v62 = vmul.f32 1.442695, %v1394_v61 }
 0x986   :  { %10583 = vpow2.f32 %v1396_v62 }
 0x991   :  { %v1393_v63 = vpop.xlane.xlu1 %1392 }
 0x992   :  { %v1395_v2 = vsub.f32 %v1385_v56, %v1393_v63  ;;  %v1796_v56 = vld [vmem:[%s12497_s7 + $0x18] sm:$0xff] }
 0x993   :  { %v10584_v3 = vpop.eup %10583 }
 0x994   :  { %v1398_v5 = vmul.f32 1.442695, %v1395_v2  ;;  %v1400_v24 = vsel %vm234_vm2, %v10584_v3, 0.0 }
 0x995   :  { %1401 = vadd.xlane.f32.xlu0 %v1400_v24  ;;  %v1487_v6 = vpop.permute.xlu1 %1486  ;;  %v9349_v24 = vld [vmem:[%s12498_s30] ss:$0 sm:$0xff] }
 0x996   :  { %10585 = vpow2.f32 %v1398_v5  ;;  %9939 = vmatpush3.msra.mxu1 %v1487_v6 }
 0x999   :  { %v1565_v26 = vpop.permute.xlu1 %1564 }
 0x99a   :  { %v1586_v28 = vsel %vm234_vm2, %v11072_v18, %v1565_v26  ;;  %v9359_v26 = vld [vmem:[%s12491_s0 + $0x38] sm:$0xff] }
 0x99d   :  { %v1567_v31 = vpop.permute.xlu1 %1566 }
 0x99e   :  { %v1587_v37 = vsel %vm234_vm2, %v11074_v20, %v1567_v31 }
 0x9a1   :  { %v1575_v34 = vpop.permute.xlu1 %1574 }
 0x9a2   :  { %v1590_v40 = vsel %vm1588_vm4, %v1587_v37, %v1575_v34 }
 0x9a3   :  { %v10586_v58 = vpop.eup %10585 }
 0x9a4   :  { %v1403_v4 = vsel %vm234_vm2, %v10586_v58, 0.0 }
 0x9a5   :  { %1404 = vadd.xlane.f32.xlu0 %v1403_v4 }
 0x9bb   :  { %1410 = vrot.lane.b32.xlu0 %v10989_v25, %s12445_s2  ;;  %v1597_v25 = vld [vmem:[%s12495_s4 + $0x18] sm:$0xff]  ;;  %s12507_s2 = smov 104  }
 0x9bf   :  { %1572 = vrot.lane.b32.xlu0 %v1148_v44, %s12447_s29  ;;  %s12508_s29 = smov 40  }
 0xa1e   :  { %v1402_v7 = vpop.xlane.xlu0 %1401 }
 0xa1f   :  { %10587 = vrcp.f32 %v1402_v7  ;;  %v1795_v7 = vld [vmem:[%s12497_s7 + $0x10] sm:$0xff] }
 0xa2c   :  { %v10588_v9 = vpop.eup %10587 }
 0xa2d   :  { %v1408_v11 = vmul.f32 %v10588_v9, %v10584_v3  ;;  %v1793_v9 = vld [vmem:[%s12497_s7] sm:$0xff] }
 0xa2e   :  { %v1405_v8 = vpop.xlane.xlu0 %1404 }
 0xa2f   :  { %10589 = vrcp.f32 %v1405_v8  ;;  %v1794_v8 = vld [vmem:[%s12497_s7 + $0x8] sm:$0xff] }
 0xa32   :  { %v1411_v10 = vpop.permute.xlu0 %1410 }
 0xa33   :  { %9934 = vmatpush3.msra.mxu0 %v1411_v10 }
 0xa34   :  { %9936 = vmatmul.mubr.msk.f32.vlgmr.msra.gmra.mxu0 %vm234_vm2, %v1408_v11  ;;  %9943 = vmatprep.subr.mxu0 %v1597_v25 }
 0xa35   :  { %9944 = vmatpush3.msra.mxu0 %v1597_v25 }
 0xa36   :  { %9945 = vmatprep.subr.mxu0 %v1596_v14  ;;  %v1573_v27 = vpop.permute.xlu0 %1572 }
 0xa37   :  { %9946 = vmatpush3.msra.mxu0 %v1596_v14  ;;  %v1589_v29 = vsel %vm1588_vm4, %v1586_v28, %v1573_v27  ;;  %v9358_v27 = vld [vmem:[%s12491_s0 + $0x30] sm:$0xff]  ;;  %v9357_v28 = vld [vmem:[%s12491_s0 + $0x28] sm:$0xff] }
 0xa38   :  { %9947 = vmatprep.subr.mxu0 %v1595_v15 }
 0xa39   :  { %9948 = vmatpush3.msra.mxu0 %v1595_v15 }
 0xa3a   :  { %9949 = vmatprep.subr.mxu0 %v1594_v16 }
 0xa3b   :  { %9950 = vmatpush3.msra.mxu0 %v1594_v16 }
 0xa3c   :  { %v10590_v12 = vpop.eup %10589  ;;  %9965 = vmatprep.subr.mxu0 %v1800_v52 }
 0xa3d   :  { %v1409_v13 = vmul.f32 %v10590_v12, %v10586_v58 }
 0xa3f   :  { %9941 = vmatmul.mubr.msk.f32.vlgmr.msra.gmra.mxu1 %vm234_vm2, %v1409_v13 }
 0xaf4   :  { %v1482_v17 = vpop.f32.mrf.mxu0 }
 0xaf5   :  { %1580 = vrot.lane.b32.xlu0 %v1482_v17, %s12457_s1 }
 0xaf6   :  { %v9937_v19 = vpop.f32.mrf.mxu0 }
 0xaff   :  { %v1558_v21 = vpop.f32.mrf.mxu1 }
 0xb00   :  { %1582 = vrot.lane.b32.xlu1 %v1558_v21, %s12457_s1  ;;  %s12503_s1 = smov 80  }
 0xb01   :  { %v9942_v22 = vpop.f32.mrf.mxu1 }
 0xb67   :  { %v1581_v30 = vpop.permute.xlu0 %1580 }
 0xb68   :  { %v1592_v32 = vsel %vm1591_vm3, %v1589_v29, %v1581_v30  ;;  %v9356_v29 = vld [vmem:[%s12491_s0 + $0x20] sm:$0xff]  ;;  %s12499_s0 = smov 64  }
 0xb69   :  { %9951 = vmatprep.mubr.msk.f32.mxu0 %vm84_vm0, %v1592_v32 }
 0xb72   :  { %v1583_v41 = vpop.permute.xlu1 %1582 }
 0xb73   :  { %v1593_v43 = vsel %vm1591_vm3, %v1590_v40, %v1583_v41 }
 0xb74   :  { %9952 = vmatmul.mubr.msk.f32.vlgmr.msra.gmra.mxu0 %vm84_vm0, %v1593_v43  ;;  %v9355_v43 = vld [vmem:[%s12492_s26 + $0x1] ss:$0 sm:$0xff]  ;;  %s12500_s26 = smov 88  }
 0xb75   :  { %9966 = vmatpush3.msra.mxu0 %v1800_v52 }
 0xb76   :  { %9967 = vmatprep.subr.mxu0 %v1799_v53 }
 0xb77   :  { %9968 = vmatpush3.msra.mxu0 %v1799_v53 }
 0xb78   :  { %9969 = vmatprep.subr.mxu0 %v1798_v54 }
 0xb79   :  { %9970 = vmatpush3.msra.mxu0 %v1798_v54 }
 0xb7a   :  { %9971 = vmatprep.subr.mxu0 %v1797_v55 }
 0xb7b   :  { %9972 = vmatpush3.msra.mxu0 %v1797_v55 }
 0xb7c   :  { %9973 = vmatprep.subr.mxu0 %v1796_v56 }
 0xb7d   :  { %9974 = vmatpush3.msra.mxu0 %v1796_v56 }
 0xb7e   :  { %9975 = vmatprep.subr.mxu0 %v1795_v7 }
 0xb7f   :  { %9976 = vmatpush3.msra.mxu0 %v1795_v7 }
 0xb80   :  { %9977 = vmatprep.subr.mxu0 %v1794_v8 }
 0xb81   :  { %9978 = vmatpush3.msra.mxu0 %v1794_v8 }
 0xb82   :  { %9979 = vmatprep.subr.mxu0 %v1793_v9 }
 0xb83   :  { %9980 = vmatpush3.msra.mxu0 %v1793_v9 }
 0xb84   :  { %10005 = vmatprep.subr.mxu0 %v10803_v23 }
 0xc34   :  { %v9953_v18 = vpop.f32.mrf.mxu0 }
 0xc35   :  { %v11199_v44 = vadd.f32 %v9953_v18, %v10954_v1  ;;  %v1709_v1 = vld [vmem:[%s12496_s6 + $0x18] sm:$0xff] }
 0xc36   :  { %v1670_v45 = vpop.f32.mrf.mxu0  ;;  %9954 = vmatprep.subr.mxu1 %v1709_v1 }
 0xc37   :  { %v11202_v46 = vadd.f32 %v1670_v45, %v10949_v0  ;;  %v1683_v47 = vmul.f32 %v11199_v44, %v11199_v44  ;;  %v1708_v0 = vld [vmem:[%s12496_s6 + $0x10] sm:$0xff]  ;;  %9955 = vmatpush3.msra.mxu1 %v1709_v1 }
 0xc38   :  { %9956 = vmatprep.subr.mxu1 %v1708_v0 }
 0xc39   :  { %v1687_v20 = vsel %vm84_vm0, %v1683_v47, 0.0  ;;  %v1682_v48 = vmul.f32 %v11202_v46, %v11202_v46  ;;  %9957 = vmatpush3.msra.mxu1 %v1708_v0 }
 0xc3a   :  { %1688 = vadd.xlane.f32.xlu1 %v1687_v20  ;;  %9958 = vmatprep.subr.mxu1 %v1707_v50 }
 0xc3b   :  { %v1684_v49 = vsel %vm84_vm0, %v1682_v48, 0.0  ;;  %9959 = vmatpush3.msra.mxu1 %v1707_v50 }
 0xc3c   :  { %1685 = vadd.xlane.f32.xlu0 %v1684_v49  ;;  %9960 = vmatprep.subr.mxu1 %v1706_v51 }
 0xc3d   :  { %9961 = vmatpush3.msra.mxu1 %v1706_v51 }
 0xc3e   :  { %9984 = vmatprep.subr.mxu1 %v9359_v26 }
 0xcc3   :  { %v1689_v57 = vpop.xlane.xlu1 %1688 }
 0xcc4   :  { %v1691_v59 = vmul.f32 0.03125, %v1689_v57 }
 0xcc5   :  { %v1686_v60 = vpop.xlane.xlu0 %1685 }
 0xcc6   :  { %v1693_v61 = vadd.f32 1e-06, %v1691_v59  ;;  %v1690_v62 = vmul.f32 0.03125, %v1686_v60 }
 0xcc8   :  { %10591 = vrsqrt.f32 %v1693_v61  ;;  %v1692_v63 = vadd.f32 1e-06, %v1690_v62 }
 0xcca   :  { %10593 = vrsqrt.f32 %v1692_v63 }
 0xcd5   :  { %v10592_v2 = vpop.eup %10591 }
 0xcd6   :  { %v1697_v5 = vmul.f32 %v10592_v2, %v11199_v44 }
 0xcd7   :  { %v10594_v3 = vpop.eup %10593 }
 0xcd8   :  { %v1696_v6 = vmul.f32 %v10594_v3, %v11202_v46  ;;  %v1705_v4 = vmul.f32 %v9349_v24, %v1697_v5 }
 0xcda   :  { %v1704_v58 = vmul.f32 %v9349_v24, %v1696_v6 }
 0xcdc   :  { %9962 = vmatprep.mubr.msk.f32.mxu1 %vm84_vm0, %v1704_v58 }
 0xcdd   :  { %9963 = vmatmul.mubr.msk.f32.vlgmr.msra.gmra.mxu1 %vm84_vm0, %v1705_v4 }
 0xcde   :  { %9985 = vmatpush3.msra.mxu1 %v9359_v26 }
 0xcdf   :  { %9986 = vmatprep.subr.mxu1 %v9358_v27 }
 0xce0   :  { %9987 = vmatpush3.msra.mxu1 %v9358_v27 }
 0xce1   :  { %9988 = vmatprep.subr.mxu1 %v9357_v28 }
 0xce2   :  { %9989 = vmatpush3.msra.mxu1 %v9357_v28 }
 0xce3   :  { %9990 = vmatprep.subr.mxu1 %v9356_v29 }
 0xce4   :  { %9991 = vmatpush3.msra.mxu1 %v9356_v29 }
 0xce5   :  { %9995 = vmatprep.subr.mxu1 %v10803_v23 }
 0xd9d   :  { %v9964_v10 = vpop.f32.mrf.mxu1 }
 0xd9e   :  { %v1792_v13 = vmax.f32 %v9964_v10, 0.0 }
 0xd9f   :  { %v1782_v11 = vpop.f32.mrf.mxu1 }
 0xda0   :  { %v1791_v12 = vmax.f32 %v1782_v11, 0.0 }
 0xda2   :  { %9981 = vmatprep.mubr.msk.f32.mxu0 %vm1801_vm5, %v1791_v12 }
 0xda3   :  { %9982 = vmatmul.mubr.msk.f32.vlgmr.msra.gmra.mxu0 %vm1801_vm5, %v1792_v13 }
 0xda4   :  { %10007 = vmatprep.mubr.msk.f32.mxu0 %vm10804_vm1, %v10803_v23 }
 0xe63   :  { %v9983_v25 = vpop.f32.mrf.mxu0 }
 0xe64   :  { %v11259_v15 = vadd.f32 %v9983_v25, %v11199_v44 }
 0xe65   :  { %v1874_v14 = vpop.f32.mrf.mxu0 }
 0xe66   :  { %v11262_v16 = vadd.f32 %v1874_v14, %v11202_v46  ;;  %v1888_v21 = vmul.f32 %v11259_v15, %v11259_v15 }
 0xe68   :  { %v1887_v17 = vmul.f32 %v11262_v16, %v11262_v16  ;;  %v1892_v22 = vsel %vm84_vm0, %v1888_v21, 0.0 }
 0xe6a   :  { %v1889_v19 = vsel %vm84_vm0, %v1887_v17, 0.0 }
 0xe6b   :  { %1890 = vadd.xlane.f32.xlu0 %v1889_v19 }
 0xe6f   :  { %1893 = vadd.xlane.f32.xlu0 %v1892_v22 }
 0xef4   :  { %v1891_v30 = vpop.xlane.xlu0 %1890 }
 0xef5   :  { %v1895_v31 = vmul.f32 0.03125, %v1891_v30 }
 0xef7   :  { %v1897_v32 = vadd.f32 1e-06, %v1895_v31 }
 0xef8   :  { %v1894_v34 = vpop.xlane.xlu0 %1893 }
 0xef9   :  { %10595 = vrsqrt.f32 %v1897_v32  ;;  %v1896_v37 = vmul.f32 0.03125, %v1894_v34 }
 0xefb   :  { %v1898_v40 = vadd.f32 1e-06, %v1896_v37 }
 0xefd   :  { %10597 = vrsqrt.f32 %v1898_v40 }
 0xf06   :  { %v10596_v41 = vpop.eup %10595 }
 0xf07   :  { %v1901_v18 = vmul.f32 %v10596_v41, %v11262_v16 }
 0xf09   :  { %v1909_v44 = vmul.f32 %v9355_v43, %v1901_v18 }
 0xf0a   :  { %v10598_v45 = vpop.eup %10597 }
 0xf0b   :  { %v1902_v46 = vmul.f32 %v10598_v45, %v11259_v15  ;;  %9992 = vmatprep.mubr.msk.f32.mxu1 %vm84_vm0, %v1909_v44 }
 0xf0d   :  { %v1910_v47 = vmul.f32 %v9355_v43, %v1902_v46 }
 0xf0f   :  { %9993 = vmatmul.mubr.msk.f32.vlgmr.msra.gmra.mxu1 %vm84_vm0, %v1910_v47 }
 0xf10   :  { %9997 = vmatprep.mubr.msk.f32.mxu1 %vm10804_vm1, %v10803_v23 }
 0xfcf   :  { %v11292_v20 = vpop.f32.mrf.mxu1 }
 0xfd0   :  { %2075 = vrot.lane.b32.xlu1 %v11292_v20, %s12465_s27 }
 0xfd1   :  { %v11296_v48 = vpop.f32.mrf.mxu1 }
 0xfd2   :  { %1998 = vrot.lane.b32.xlu0 %v11296_v48, %s12465_s27  ;;  %s12509_s27 = smov 8  }
0x1042   :  { %v2076_v1 = vpop.permute.xlu1 %2075 }
0x1044   :  { %v1999_v49 = vpop.permute.xlu0 %1998 }
0x1045   :  { %9996 = vmatpush3.xpose.msk.msra.mxu1 %vm234_vm2, %v1999_v49 }
0x1046   :  { %10000 = vmatprep.subr.mxu1 %v10803_v23 }
0x1048   :  { %9998 = vmatmul.mubr.msk.f32.vlgmr.msra.gmra.mxu1 %vm234_vm2, %v11296_v48 }
0x1049   :  { %10001 = vmatpush3.xpose.msk.msra.mxu1 %vm234_vm2, %v2076_v1  ;;  %10002 = vmatprep.mubr.msk.f32.mxu1 %vm10804_vm1, %v10803_v23 }
0x104a   :  { %10010 = vmatprep.subr.mxu1 %v10803_v23 }
0x104c   :  { %10003 = vmatmul.mubr.msk.f32.vlgmr.msra.gmra.mxu1 %vm234_vm2, %v11292_v20 }
0x104d   :  { %10012 = vmatprep.mubr.msk.f32.mxu1 %vm10804_vm1, %v10803_v23 }
0x1108   :  { %v2070_v0 = vpop.f32.mrf.mxu1 }
0x1109   :  { %v2071_v50 = vadd.f32 %v2070_v0, %v11019_v38 }
0x110a   :  { %v9999_v51 = vpop.f32.mrf.mxu1 }
0x110b   :  { %v2151_v52 = vsel %vm234_vm2, %v2071_v50, -inf }
0x110c   :  { %2152 = vmax.xlane.f32.xlu1 %v2151_v52  ;;  %v2147_v53 = vpop.f32.mrf.mxu1 }
0x110d   :  { %v2148_v54 = vadd.f32 %v2147_v53, %v11030_v42 }
0x110e   :  { %v10004_v55 = vpop.f32.mrf.mxu1 }
0x110f   :  { %v2154_v56 = vsel %vm234_vm2, %v2148_v54, -inf }
0x1110   :  { %2155 = vmax.xlane.f32.xlu0 %v2154_v56 }
0x111d   :  { %2249 = vrot.lane.b32.xlu1 %v11292_v20, %s12499_s0 }
0x1121   :  { %2327 = vrot.lane.b32.xlu1 %v11296_v48, %s12500_s26 }
0x1125   :  { %2405 = vrot.lane.b32.xlu1 %v11292_v20, %s12500_s26 }
0x1195   :  { %v2153_v57 = vpop.xlane.xlu1 %2152 }
0x1196   :  { %v2157_v59 = vsub.f32 %v2071_v50, %v2153_v57 }
0x1198   :  { %v2159_v60 = vmul.f32 1.442695, %v2157_v59 }
0x1199   :  { %v2250_v61 = vpop.permute.xlu1 %2249  ;;  %v2156_v62 = vpop.xlane.xlu0 %2155 }
0x119a   :  { %10599 = vpow2.f32 %v2159_v60  ;;  %v2158_v63 = vsub.f32 %v2148_v54, %v2156_v62  ;;  %10011 = vmatpush3.msra.mxu1 %v2250_v61 }
0x119b   :  { %10020 = vmatprep.subr.mxu1 %v10803_v23 }
0x119c   :  { %v2161_v2 = vmul.f32 1.442695, %v2158_v63 }
0x119d   :  { %v2328_v58 = vpop.permute.xlu1 %2327 }
0x119e   :  { %10601 = vpow2.f32 %v2161_v2 }
0x11a1   :  { %v2406_v4 = vpop.permute.xlu1 %2405 }
0x11a7   :  { %v10600_v3 = vpop.eup %10599 }
0x11a8   :  { %v2163_v5 = vsel %vm234_vm2, %v10600_v3, 0.0 }
0x11a9   :  { %2164 = vadd.xlane.f32.xlu0 %v2163_v5 }
0x11ab   :  { %v10602_v24 = vpop.eup %10601 }
0x11ac   :  { %v2166_v6 = vsel %vm234_vm2, %v10602_v24, 0.0 }
0x11ad   :  { %2167 = vadd.xlane.f32.xlu1 %v2166_v6 }
0x11be   :  { %2403 = vrot.lane.b32.xlu1 %v11292_v20, %s12501_s25 }
0x11bf   :  { %2173 = vrot.lane.b32.xlu0 %v11296_v48, %s12499_s0 }
0x11c3   :  { %2325 = vrot.lane.b32.xlu0 %v11296_v48, %s12501_s25 }
0x1232   :  { %v2165_v7 = vpop.xlane.xlu0 %2164 }
0x1233   :  { %10603 = vrcp.f32 %v2165_v7 }
0x1236   :  { %v2168_v8 = vpop.xlane.xlu1 %2167  ;;  %v2174_v9 = vpop.permute.xlu0 %2173 }
0x1237   :  { %10605 = vrcp.f32 %v2168_v8  ;;  %10006 = vmatpush3.msra.mxu0 %v2174_v9 }
0x1238   :  { %10015 = vmatprep.subr.mxu0 %v10803_v23 }
0x123a   :  { %v2326_v25 = vpop.permute.xlu0 %2325  ;;  %v2404_v14 = vpop.permute.xlu1 %2403 }
0x1240   :  { %v10604_v10 = vpop.eup %10603 }
0x1241   :  { %v2171_v11 = vmul.f32 %v10604_v10, %v10600_v3 }
0x1243   :  { %10008 = vmatmul.mubr.msk.f32.vlgmr.msra.gmra.mxu0 %vm234_vm2, %v2171_v11 }
0x1244   :  { %v10606_v12 = vpop.eup %10605  ;;  %10016 = vmatpush3.xpose.msk.msra.mxu0 %vm234_vm2, %v2328_v58  ;;  %10017 = vmatprep.mubr.msk.f32.mxu0 %vm10804_vm1, %v10803_v23 }
0x1245   :  { %v2172_v13 = vmul.f32 %v10606_v12, %v10602_v24  ;;  %10025 = vmatprep.subr.mxu0 %v10803_v23 }
0x1247   :  { %10013 = vmatmul.mubr.msk.f32.vlgmr.msra.gmra.mxu1 %vm234_vm2, %v2172_v13  ;;  %10018 = vmatmul.mubr.msk.f32.vlgmr.msra.gmra.mxu0 %vm234_vm2, %v2326_v25 }
0x1248   :  { %10021 = vmatpush3.xpose.msk.msra.mxu1 %vm234_vm2, %v2406_v4  ;;  %10022 = vmatprep.mubr.msk.f32.mxu1 %vm10804_vm1, %v10803_v23 }
0x1249   :  { %10030 = vmatprep.subr.mxu1 %v10803_v23  ;;  %10027 = vmatprep.mubr.msk.f32.mxu0 %vm10804_vm1, %v10803_v23 }
0x124b   :  { %10023 = vmatmul.mubr.msk.f32.vlgmr.msra.gmra.mxu1 %vm234_vm2, %v2404_v14 }
0x124c   :  { %10032 = vmatprep.mubr.msk.f32.mxu1 %vm10804_vm1, %v10803_v23 }
0x1303   :  { %v11348_v17 = vpop.f32.mrf.mxu0 }
0x1305   :  { %v10009_v19 = vpop.f32.mrf.mxu0 }
0x1307   :  { %v11350_v21 = vpop.f32.mrf.mxu1  ;;  %v2399_v22 = vpop.f32.mrf.mxu0 }
0x1308   :  { %v2400_v26 = vadd.f32 %v2399_v22, %v11019_v38 }
0x1309   :  { %v10014_v27 = vpop.f32.mrf.mxu1  ;;  %v10019_v28 = vpop.f32.mrf.mxu0 }
0x130a   :  { %v2481_v29 = vsel %vm234_vm2, %v2400_v26, -inf }
0x130b   :  { %2482 = vmax.xlane.f32.xlu0 %v2481_v29  ;;  %v2477_v30 = vpop.f32.mrf.mxu1 }
0x130c   :  { %v2478_v31 = vadd.f32 %v2477_v30, %v11030_v42 }
0x130d   :  { %v10024_v32 = vpop.f32.mrf.mxu1 }
0x130e   :  { %v2484_v34 = vsel %vm234_vm2, %v2478_v31, -inf }
0x130f   :  { %2485 = vmax.xlane.f32.xlu1 %v2484_v34 }
0x1320   :  { %2579 = vrot.lane.b32.xlu1 %v11292_v20, %s12502_s8 }
0x1321   :  { %2503 = vrot.lane.b32.xlu0 %v11296_v48, %s12502_s8 }
0x1324   :  { %2657 = vrot.lane.b32.xlu1 %v11296_v48, %s12503_s1 }
0x1328   :  { %2735 = vrot.lane.b32.xlu1 %v11292_v20, %s12503_s1 }
0x132c   :  { %2733 = vrot.lane.b32.xlu1 %v11292_v20, %s12504_s5 }
0x1394   :  { %v2483_v37 = vpop.xlane.xlu0 %2482 }
0x1395   :  { %v2487_v40 = vsub.f32 %v2400_v26, %v2483_v37 }
0x1397   :  { %v2489_v41 = vmul.f32 1.442695, %v2487_v40 }
0x1398   :  { %v2504_v43 = vpop.permute.xlu0 %2503  ;;  %v2486_v18 = vpop.xlane.xlu1 %2485 }
0x1399   :  { %10607 = vpow2.f32 %v2489_v41  ;;  %v2488_v44 = vsub.f32 %v2478_v31, %v2486_v18  ;;  %10026 = vmatpush3.msra.mxu0 %v2504_v43 }
0x139a   :  { %10035 = vmatprep.subr.mxu0 %v10803_v23 }
0x139b   :  { %v2491_v45 = vmul.f32 1.442695, %v2488_v44 }
0x139c   :  { %v2580_v46 = vpop.permute.xlu1 %2579 }
0x139d   :  { %10609 = vpow2.f32 %v2491_v45  ;;  %10031 = vmatpush3.msra.mxu1 %v2580_v46 }
0x139e   :  { %10040 = vmatprep.subr.mxu1 %v10803_v23 }
0x13a0   :  { %v2658_v52 = vpop.permute.xlu1 %2657 }
0x13a4   :  { %v2736_v56 = vpop.permute.xlu1 %2735 }
0x13a6   :  { %v10608_v47 = vpop.eup %10607 }
0x13a7   :  { %v2493_v49 = vsel %vm234_vm2, %v10608_v47, 0.0 }
0x13a8   :  { %2494 = vadd.xlane.f32.xlu0 %v2493_v49  ;;  %v2734_v60 = vpop.permute.xlu1 %2733 }
0x13aa   :  { %v10610_v1 = vpop.eup %10609 }
0x13ab   :  { %v2496_v0 = vsel %vm234_vm2, %v10610_v1, 0.0 }
0x13ac   :  { %2497 = vadd.xlane.f32.xlu0 %v2496_v0 }
0x13c2   :  { %2655 = vrot.lane.b32.xlu0 %v11296_v48, %s12504_s5 }
0x1431   :  { %v2495_v50 = vpop.xlane.xlu0 %2494 }
0x1432   :  { %10611 = vrcp.f32 %v2495_v50 }
0x1435   :  { %v2498_v51 = vpop.xlane.xlu0 %2497 }
0x1436   :  { %10613 = vrcp.f32 %v2498_v51 }
0x1439   :  { %v2656_v59 = vpop.permute.xlu0 %2655 }
0x143f   :  { %v10612_v53 = vpop.eup %10611 }
0x1440   :  { %v2501_v54 = vmul.f32 %v10612_v53, %v10608_v47 }
0x1442   :  { %10028 = vmatmul.mubr.msk.f32.vlgmr.msra.gmra.mxu0 %vm234_vm2, %v2501_v54 }
0x1443   :  { %v10614_v55 = vpop.eup %10613  ;;  %10036 = vmatpush3.xpose.msk.msra.mxu0 %vm234_vm2, %v2658_v52  ;;  %10037 = vmatprep.mubr.msk.f32.mxu0 %vm10804_vm1, %v10803_v23 }
0x1444   :  { %v2502_v57 = vmul.f32 %v10614_v55, %v10610_v1  ;;  %10045 = vmatprep.subr.mxu0 %v10803_v23 }
0x1446   :  { %10033 = vmatmul.mubr.msk.f32.vlgmr.msra.gmra.mxu1 %vm234_vm2, %v2502_v57  ;;  %10038 = vmatmul.mubr.msk.f32.vlgmr.msra.gmra.mxu0 %vm234_vm2, %v2656_v59 }
0x1447   :  { %10041 = vmatpush3.xpose.msk.msra.mxu1 %vm234_vm2, %v2736_v56  ;;  %10042 = vmatprep.mubr.msk.f32.mxu1 %vm10804_vm1, %v10803_v23 }
0x1448   :  { %10050 = vmatprep.subr.mxu1 %v10803_v23  ;;  %10047 = vmatprep.mubr.msk.f32.mxu0 %vm10804_vm1, %v10803_v23 }
0x144a   :  { %10043 = vmatmul.mubr.msk.f32.vlgmr.msra.gmra.mxu1 %vm234_vm2, %v2734_v60 }
0x144b   :  { %10052 = vmatprep.mubr.msk.f32.mxu1 %vm10804_vm1, %v10803_v23 }
0x1502   :  { %v11388_v61 = vpop.f32.mrf.mxu0 }
0x1504   :  { %v10029_v62 = vpop.f32.mrf.mxu0 }
0x1506   :  { %v11390_v63 = vpop.f32.mrf.mxu1  ;;  %v2729_v2 = vpop.f32.mrf.mxu0 }
0x1507   :  { %v2730_v3 = vadd.f32 %v2729_v2, %v11019_v38 }
0x1508   :  { %v10034_v5 = vpop.f32.mrf.mxu1  ;;  %v10039_v24 = vpop.f32.mrf.mxu0 }
0x1509   :  { %v2811_v6 = vsel %vm234_vm2, %v2730_v3, -inf }
0x150a   :  { %2812 = vmax.xlane.f32.xlu0 %v2811_v6  ;;  %v2807_v58 = vpop.f32.mrf.mxu1 }
0x150b   :  { %v2808_v4 = vadd.f32 %v2807_v58, %v11030_v42 }
0x150c   :  { %v10044_v7 = vpop.f32.mrf.mxu1 }
0x150d   :  { %v2814_v8 = vsel %vm234_vm2, %v2808_v4, -inf  ;;  %v9388_v7 = vld [vmem:[%s12495_s4 + $0x30] sm:$0xff] }
0x150e   :  { %2815 = vmax.xlane.f32.xlu1 %v2814_v8  ;;  %v9387_v8 = vld [vmem:[%s12495_s4 + $0x28] sm:$0xff] }
0x151f   :  { %2909 = vrot.lane.b32.xlu1 %v11292_v20, %s12505_s28 }
0x1520   :  { %2833 = vrot.lane.b32.xlu0 %v11296_v48, %s12505_s28 }
0x1523   :  { %2987 = vrot.lane.b32.xlu1 %v11296_v48, %s12506_s3 }
0x1527   :  { %3065 = vrot.lane.b32.xlu1 %v11292_v20, %s12506_s3 }
0x152b   :  { %3063 = vrot.lane.b32.xlu1 %v11292_v20, %s12507_s2 }
0x1593   :  { %v2813_v9 = vpop.xlane.xlu0 %2812 }
0x1594   :  { %v2817_v10 = vsub.f32 %v2730_v3, %v2813_v9  ;;  %v9386_v9 = vld [vmem:[%s12495_s4 + $0x20] sm:$0xff] }
0x1596   :  { %v2819_v11 = vmul.f32 1.442695, %v2817_v10 }
0x1597   :  { %v2834_v12 = vpop.permute.xlu0 %2833  ;;  %v2816_v13 = vpop.xlane.xlu1 %2815 }
0x1598   :  { %10615 = vpow2.f32 %v2819_v11  ;;  %v2818_v25 = vsub.f32 %v2808_v4, %v2816_v13  ;;  %10046 = vmatpush3.msra.mxu0 %v2834_v12 }
0x1599   :  { %10055 = vmatprep.subr.mxu0 %v10803_v23 }
0x159a   :  { %v2821_v14 = vmul.f32 1.442695, %v2818_v25 }
0x159b   :  { %v2910_v19 = vpop.permute.xlu1 %2909 }
0x159c   :  { %10617 = vpow2.f32 %v2821_v14  ;;  %10051 = vmatpush3.msra.mxu1 %v2910_v19 }
0x159d   :  { %10060 = vmatprep.subr.mxu1 %v10803_v23 }
0x159f   :  { %v2988_v31 = vpop.permute.xlu1 %2987 }
0x15a3   :  { %v3066_v40 = vpop.permute.xlu1 %3065 }
0x15a5   :  { %v10616_v22 = vpop.eup %10615 }
0x15a6   :  { %v2823_v26 = vsel %vm234_vm2, %v10616_v22, 0.0 }
0x15a7   :  { %2824 = vadd.xlane.f32.xlu0 %v2823_v26  ;;  %v3064_v18 = vpop.permute.xlu1 %3063 }
0x15a9   :  { %v10618_v27 = vpop.eup %10617 }
0x15aa   :  { %v2826_v28 = vsel %vm234_vm2, %v10618_v27, 0.0 }
0x15ab   :  { %2827 = vadd.xlane.f32.xlu0 %v2826_v28 }
0x15c1   :  { %2985 = vrot.lane.b32.xlu0 %v11296_v48, %s12507_s2 }
0x1630   :  { %v2825_v29 = vpop.xlane.xlu0 %2824 }
0x1631   :  { %10619 = vrcp.f32 %v2825_v29 }
0x1634   :  { %v2828_v30 = vpop.xlane.xlu0 %2827 }
0x1635   :  { %10621 = vrcp.f32 %v2828_v30 }
0x1638   :  { %v2986_v43 = vpop.permute.xlu0 %2985 }
0x163e   :  { %v10620_v32 = vpop.eup %10619 }
0x163f   :  { %v2831_v34 = vmul.f32 %v10620_v32, %v10616_v22 }
0x1641   :  { %10048 = vmatmul.mubr.msk.f32.vlgmr.msra.gmra.mxu0 %vm234_vm2, %v2831_v34 }
0x1642   :  { %v10622_v37 = vpop.eup %10621  ;;  %10056 = vmatpush3.xpose.msk.msra.mxu0 %vm234_vm2, %v2988_v31  ;;  %10057 = vmatprep.mubr.msk.f32.mxu0 %vm10804_vm1, %v10803_v23 }
0x1643   :  { %v2832_v41 = vmul.f32 %v10622_v37, %v10618_v27  ;;  %10065 = vmatprep.subr.mxu0 %v10803_v23 }
0x1645   :  { %10053 = vmatmul.mubr.msk.f32.vlgmr.msra.gmra.mxu1 %vm234_vm2, %v2832_v41  ;;  %10058 = vmatmul.mubr.msk.f32.vlgmr.msra.gmra.mxu0 %vm234_vm2, %v2986_v43  ;;  %v11476_v41 = vld [vmem:[%s12416_s10] sm:$0x3]  ;;  %s12513_s10 = smov 72  }
0x1646   :  { %10061 = vmatpush3.xpose.msk.msra.mxu1 %vm234_vm2, %v3066_v40  ;;  %10062 = vmatprep.mubr.msk.f32.mxu1 %vm10804_vm1, %v10803_v23 }
0x1647   :  { %10070 = vmatprep.subr.mxu1 %v10803_v23  ;;  %10067 = vmatprep.mubr.msk.f32.mxu0 %vm10804_vm1, %v10803_v23 }
0x1649   :  { %10063 = vmatmul.mubr.msk.f32.vlgmr.msra.gmra.mxu1 %vm234_vm2, %v3064_v18 }
0x164a   :  { %10072 = vmatprep.mubr.msk.f32.mxu1 %vm10804_vm1, %v10803_v23 }
0x1701   :  { %v2905_v44 = vpop.f32.mrf.mxu0 }
0x1703   :  { %v10049_v45 = vpop.f32.mrf.mxu0 }
0x1705   :  { %v2981_v46 = vpop.f32.mrf.mxu1  ;;  %v3059_v47 = vpop.f32.mrf.mxu0 }
0x1706   :  { %v3060_v49 = vadd.f32 %v3059_v47, %v11019_v38  ;;  %v9396_v47 = vld [vmem:[%s12496_s6 + $0x30] sm:$0xff] }
0x1707   :  { %v10054_v1 = vpop.f32.mrf.mxu1  ;;  %v10059_v0 = vpop.f32.mrf.mxu0 }
0x1708   :  { %v3141_v50 = vsel %vm234_vm2, %v3060_v49, -inf  ;;  %v9394_v1 = vld [vmem:[%s12496_s6 + $0x20] sm:$0xff]  ;;  %v9407_v0 = vld [vmem:[%s12497_s7 + $0x78] sm:$0xff] }
0x1709   :  { %3142 = vmax.xlane.f32.xlu0 %v3141_v50  ;;  %v3137_v51 = vpop.f32.mrf.mxu1  ;;  %v9406_v50 = vld [vmem:[%s12497_s7 + $0x70] sm:$0xff] }
0x170a   :  { %v3138_v52 = vadd.f32 %v3137_v51, %v11030_v42  ;;  %v9405_v51 = vld [vmem:[%s12497_s7 + $0x68] sm:$0xff] }
0x170b   :  { %v10064_v53 = vpop.f32.mrf.mxu1 }
0x170c   :  { %v3144_v54 = vsel %vm234_vm2, %v3138_v52, -inf  ;;  %v9403_v53 = vld [vmem:[%s12497_s7 + $0x58] sm:$0xff] }
0x170d   :  { %3145 = vmax.xlane.f32.xlu1 %v3144_v54 }
0x171e   :  { %3239 = vrot.lane.b32.xlu1 %v11292_v20, %s12508_s29 }
0x1722   :  { %3317 = vrot.lane.b32.xlu1 %v11388_v61, %s12509_s27 }
0x1726   :  { %3319 = vrot.lane.b32.xlu1 %v11390_v63, %s12509_s27 }
0x172a   :  { %3327 = vrot.lane.b32.xlu1 %v2981_v46, %s12510_s24 }
0x1792   :  { %v3143_v38 = vpop.xlane.xlu0 %3142 }
0x1793   :  { %v3147_v55 = vsub.f32 %v3060_v49, %v3143_v38  ;;  %v9395_v49 = vld [vmem:[%s12496_s6 + $0x28] sm:$0xff] }
0x1795   :  { %v3149_v56 = vmul.f32 1.442695, %v3147_v55 }
0x1796   :  { %v3146_v57 = vpop.xlane.xlu1 %3145 }
0x1797   :  { %10623 = vpow2.f32 %v3149_v56  ;;  %v3148_v42 = vsub.f32 %v3138_v52, %v3146_v57  ;;  %v9404_v52 = vld [vmem:[%s12497_s7 + $0x60] sm:$0xff] }
0x1799   :  { %v3151_v59 = vmul.f32 1.442695, %v3148_v42 }
0x179a   :  { %v3240_v60 = vpop.permute.xlu1 %3239 }
0x179b   :  { %10625 = vpow2.f32 %v3151_v59  ;;  %10071 = vmatpush3.msra.mxu1 %v3240_v60 }
0x179e   :  { %v3318_v25 = vpop.permute.xlu1 %3317 }
0x179f   :  { %v3339_v22 = vsel %vm234_vm2, %v11348_v17, %v3318_v25 }
0x17a2   :  { %v3320_v14 = vpop.permute.xlu1 %3319 }
0x17a3   :  { %v3340_v30 = vsel %vm234_vm2, %v11350_v21, %v3320_v14 }
0x17a4   :  { %v10624_v62 = vpop.eup %10623 }
0x17a5   :  { %v3153_v20 = vsel %vm234_vm2, %v10624_v62, 0.0 }
0x17a6   :  { %3154 = vadd.xlane.f32.xlu0 %v3153_v20  ;;  %v3328_v26 = vpop.permute.xlu1 %3327 }
0x17a7   :  { %v3342_v31 = vsel %vm1588_vm4, %v3340_v30, %v3328_v26 }
0x17a8   :  { %v10626_v61 = vpop.eup %10625 }
0x17a9   :  { %v3156_v2 = vsel %vm234_vm2, %v10626_v61, 0.0 }
0x17aa   :  { %3157 = vadd.xlane.f32.xlu0 %v3156_v2 }
0x17c0   :  { %3163 = vrot.lane.b32.xlu0 %v11296_v48, %s12508_s29  ;;  %v9389_v48 = vld [vmem:[%s12495_s4 + $0x38] sm:$0xff] }
0x17c4   :  { %3325 = vrot.lane.b32.xlu0 %v2905_v44, %s12510_s24 }
0x182f   :  { %v3155_v63 = vpop.xlane.xlu0 %3154 }
0x1830   :  { %10627 = vrcp.f32 %v3155_v63  ;;  %v9393_v63 = vld [vmem:[%s12498_s30 + $0x1] ss:$0 sm:$0xff] }
0x1833   :  { %v3158_v3 = vpop.xlane.xlu0 %3157 }
0x1834   :  { %10629 = vrcp.f32 %v3158_v3 }
0x1837   :  { %v3164_v5 = vpop.permute.xlu0 %3163 }
0x1838   :  { %10066 = vmatpush3.msra.mxu0 %v3164_v5 }
0x1839   :  { %10075 = vmatprep.subr.mxu0 %v9389_v48 }
0x183b   :  { %v3326_v19 = vpop.permute.xlu0 %3325 }
0x183c   :  { %v3341_v27 = vsel %vm1588_vm4, %v3339_v22, %v3326_v19 }
0x183d   :  { %v10628_v24 = vpop.eup %10627 }
0x183e   :  { %v3161_v6 = vmul.f32 %v10628_v24, %v10624_v62 }
0x1840   :  { %10068 = vmatmul.mubr.msk.f32.vlgmr.msra.gmra.mxu0 %vm234_vm2, %v3161_v6 }
0x1841   :  { %v10630_v58 = vpop.eup %10629  ;;  %10076 = vmatpush3.msra.mxu0 %v9389_v48 }
0x1842   :  { %v3162_v4 = vmul.f32 %v10630_v58, %v10626_v61  ;;  %10077 = vmatprep.subr.mxu0 %v9388_v7  ;;  %v3685_v58 = vld [vmem:[%s12417_s11 + $0x18] sm:$0xff] }
0x1843   :  { %10078 = vmatpush3.msra.mxu0 %v9388_v7  ;;  %v9411_v7 = vld [vmem:[%s12419_s13] ss:$0 sm:$0xff] }
0x1844   :  { %10073 = vmatmul.mubr.msk.f32.vlgmr.msra.gmra.mxu1 %vm234_vm2, %v3162_v4  ;;  %10079 = vmatprep.subr.mxu0 %v9387_v8  ;;  %v3684_v4 = vld [vmem:[%s12417_s11 + $0x10] sm:$0xff] }
0x1845   :  { %10080 = vmatpush3.msra.mxu0 %v9387_v8  ;;  %v3683_v8 = vld [vmem:[%s12417_s11 + $0x8] sm:$0xff] }
0x1846   :  { %10081 = vmatprep.subr.mxu0 %v9386_v9 }
0x1847   :  { %10082 = vmatpush3.msra.mxu0 %v9386_v9  ;;  %v3682_v9 = vld [vmem:[%s12417_s11] sm:$0xff] }
0x1848   :  { %10097 = vmatprep.subr.mxu0 %v9407_v0 }
0x1900   :  { %v3235_v10 = vpop.f32.mrf.mxu0 }
0x1901   :  { %3333 = vrot.lane.b32.xlu0 %v3235_v10, %s12511_s21 }
0x1902   :  { %v10069_v11 = vpop.f32.mrf.mxu0 }
0x1903   :  { %v9402_v11 = vld [vmem:[%s12497_s7 + $0x50] sm:$0xff] }
0x1904   :  { %v3311_v12 = vpop.f32.mrf.mxu1 }
0x1905   :  { %3335 = vrot.lane.b32.xlu1 %v3311_v12, %s12511_s21  ;;  %v9401_v12 = vld [vmem:[%s12497_s7 + $0x48] sm:$0xff] }
0x1906   :  { %v10074_v13 = vpop.f32.mrf.mxu1 }
0x1907   :  { %v9400_v13 = vld [vmem:[%s12497_s7 + $0x40] sm:$0xff]  ;;  %s12512_s7 = smov 96  }
0x1973   :  { %v3334_v28 = vpop.permute.xlu0 %3333 }
0x1974   :  { %v3343_v29 = vsel %vm1591_vm3, %v3341_v27, %v3334_v28 }
0x1975   :  { %10083 = vmatprep.mubr.msk.f32.mxu0 %vm84_vm0, %v3343_v29 }
0x1977   :  { %v3336_v32 = vpop.permute.xlu1 %3335 }
0x1978   :  { %v3344_v34 = vsel %vm1591_vm3, %v3342_v31, %v3336_v32 }
0x1979   :  { %10084 = vmatmul.mubr.msk.f32.vlgmr.msra.gmra.mxu0 %vm84_vm0, %v3344_v34 }
0x197a   :  { %10098 = vmatpush3.msra.mxu0 %v9407_v0 }
0x197b   :  { %10099 = vmatprep.subr.mxu0 %v9406_v50 }
0x197c   :  { %10100 = vmatpush3.msra.mxu0 %v9406_v50 }
0x197d   :  { %10101 = vmatprep.subr.mxu0 %v9405_v51 }
0x197e   :  { %10102 = vmatpush3.msra.mxu0 %v9405_v51 }
0x197f   :  { %10103 = vmatprep.subr.mxu0 %v9404_v52 }
0x1980   :  { %10104 = vmatpush3.msra.mxu0 %v9404_v52 }
0x1981   :  { %10105 = vmatprep.subr.mxu0 %v9403_v53 }
0x1982   :  { %10106 = vmatpush3.msra.mxu0 %v9403_v53 }
0x1983   :  { %10107 = vmatprep.subr.mxu0 %v9402_v11 }
0x1984   :  { %10108 = vmatpush3.msra.mxu0 %v9402_v11 }
0x1985   :  { %10109 = vmatprep.subr.mxu0 %v9401_v12 }
0x1986   :  { %10110 = vmatpush3.msra.mxu0 %v9401_v12 }
0x1987   :  { %10111 = vmatprep.subr.mxu0 %v9400_v13 }
0x1988   :  { %10112 = vmatpush3.msra.mxu0 %v9400_v13 }
0x1989   :  { %10137 = vmatprep.subr.mxu0 %v10803_v23 }
0x1a39   :  { %v10085_v37 = vpop.f32.mrf.mxu0 }
0x1a3a   :  { %v11471_v17 = vadd.f32 %v10085_v37, %v11259_v15  ;;  %v3666_v15 = vmul.f32 %v11476_v41, %v11476_v41 }
0x1a3b   :  { %v3422_v40 = vpop.f32.mrf.mxu0 }
0x1a3c   :  { %v11479_v43 = vadd.f32 %v3422_v40, %v11262_v16  ;;  %v3436_v21 = vmul.f32 %v11471_v17, %v11471_v17  ;;  %v3668_v46 = vsel %vm3667_vm6, %v3666_v15, 0.0  ;;  %v9397_v16 = vld [vmem:[%s12496_s6 + $0x38] sm:$0xff]  ;;  %s12517_s6 = sld [smem:[#allocation17_spill]] }
0x1a3d   :  { %10086 = vmatprep.subr.mxu1 %v9397_v16 }
0x1a3e   :  { %v3440_v18 = vsel %vm84_vm0, %v3436_v21, 0.0  ;;  %v3435_v44 = vmul.f32 %v11479_v43, %v11479_v43  ;;  %10087 = vmatpush3.msra.mxu1 %v9397_v16 }
0x1a3f   :  { %3441 = vadd.xlane.f32.xlu1 %v3440_v18  ;;  %10088 = vmatprep.subr.mxu1 %v9396_v47 }
0x1a40   :  { %v3437_v45 = vsel %vm84_vm0, %v3435_v44, 0.0  ;;  %10089 = vmatpush3.msra.mxu1 %v9396_v47 }
0x1a41   :  { %3438 = vadd.xlane.f32.xlu0 %v3437_v45  ;;  %10090 = vmatprep.subr.mxu1 %v9395_v49 }
0x1a42   :  { %10091 = vmatpush3.msra.mxu1 %v9395_v49 }
0x1a43   :  { %10092 = vmatprep.subr.mxu1 %v9394_v1 }
0x1a44   :  { %10093 = vmatpush3.msra.mxu1 %v9394_v1 }
0x1a45   :  { %3669 = vadd.xlane.f32.xlu0 %v3668_v46  ;;  %10116 = vmatprep.subr.mxu1 %v10803_v23 }
0x1ac8   :  { %v3442_v54 = vpop.xlane.xlu1 %3441 }
0x1ac9   :  { %v3444_v38 = vmul.f32 0.03125, %v3442_v54 }
0x1aca   :  { %v3439_v55 = vpop.xlane.xlu0 %3438 }
0x1acb   :  { %v3446_v56 = vadd.f32 1e-06, %v3444_v38  ;;  %v3443_v57 = vmul.f32 0.03125, %v3439_v55 }
0x1acd   :  { %10631 = vrsqrt.f32 %v3446_v56  ;;  %v3445_v42 = vadd.f32 1e-06, %v3443_v57 }
0x1ace   :  { %v3670_v59 = vpop.xlane.xlu0 %3669 }
0x1acf   :  { %10633 = vrsqrt.f32 %v3445_v42  ;;  %v3671_v60 = vmul.f32 0.03125, %v3670_v59 }
0x1ad1   :  { %v3672_v62 = vadd.f32 1e-06, %v3671_v60 }
0x1ad3   :  { %10635 = vrsqrt.f32 %v3672_v62 }
0x1ada   :  { %v10632_v20 = vpop.eup %10631 }
0x1adb   :  { %v3450_v2 = vmul.f32 %v10632_v20, %v11471_v17 }
0x1adc   :  { %v10634_v61 = vpop.eup %10633 }
0x1add   :  { %v3449_v3 = vmul.f32 %v10634_v61, %v11479_v43  ;;  %v3458_v6 = vmul.f32 %v9393_v63, %v3450_v2 }
0x1adf   :  { %v3457_v5 = vmul.f32 %v9393_v63, %v3449_v3 }
0x1ae0   :  { %v10636_v24 = vpop.eup %10635 }
0x1ae1   :  { %10094 = vmatprep.mubr.msk.f32.mxu1 %vm84_vm0, %v3457_v5  ;;  %v3674_v48 = vmul.f32 %v10636_v24, %v11476_v41 }
0x1ae2   :  { %10095 = vmatmul.mubr.msk.f32.vlgmr.msra.gmra.mxu1 %vm84_vm0, %v3458_v6 }
0x1ae3   :  { %10117 = vmatpush3.msra.mxu1 %v3685_v58  ;;  %10124 = vmatprep.mubr.msk.f32.mxu1 %vm10804_vm1, %v10803_v23  ;;  %v3681_v10 = vmul.f32 %v9411_v7, %v3674_v48 }
0x1ae4   :  { %10118 = vmatprep.subr.mxu1 %v10803_v23 }
0x1ae5   :  { %10119 = vmatpush3.msra.mxu1 %v3684_v4 }
0x1ae6   :  { %10120 = vmatprep.subr.mxu1 %v10803_v23 }
0x1ae7   :  { %10121 = vmatpush3.msra.mxu1 %v3683_v8 }
0x1ae8   :  { %10122 = vmatprep.subr.mxu1 %v10803_v23 }
0x1ae9   :  { %10123 = vmatpush3.msra.mxu1 %v3682_v9 }
0x1aea   :  { %10125 = vmatmul.mubr.msk.f32.vlgmr.msra.gmra.mxu1 %vm84_vm0, %v3681_v10  ;;  %10127 = vmatprep.subr.mxu1 %v10803_v23 }
0x1aeb   :  { %10129 = vmatprep.mubr.msk.f32.mxu1 %vm10804_vm1, %v10803_v23 }
0x1ba2   :  { %v10096_v25 = vpop.f32.mrf.mxu1 }
0x1ba3   :  { %v3546_v22 = vmax.f32 %v10096_v25, 0.0 }
0x1ba4   :  { %v3536_v14 = vpop.f32.mrf.mxu1 }
0x1ba5   :  { %v3545_v19 = vmax.f32 %v3536_v14, 0.0 }
0x1ba7   :  { %10113 = vmatprep.mubr.msk.f32.mxu0 %vm1801_vm5, %v3545_v19 }
0x1ba8   :  { %10114 = vmatmul.mubr.msk.f32.vlgmr.msra.gmra.mxu0 %vm1801_vm5, %v3546_v22 }
0x1ba9   :  { %10139 = vmatprep.mubr.msk.f32.mxu0 %vm10804_vm1, %v10803_v23 }
0x1baa   :  { %v3755_v26 = vpop.f32.mrf.mxu1 }
0x1bab   :  { %v3766_v27 = vrot.slane %v3755_v26, %v11007_v33 }
0x1bac   :  { %v10126_v28 = vpop.f32.mrf.mxu1 }
0x1bad   :  { %v3767_v29 = vcombine.high %v3766_v27, %v3766_v27  ;;  %v3774_v30 = vrot.slane %v3766_v27, %v11007_v33 }
0x1baf   :  { %v3781_v31 = vrot.slane %v3767_v29, %v11007_v33  ;;  %3784 = vrot.lane.b32.xlu1 %v3774_v30, %s12512_s7  ;;  %v3814_v45 = vrot.slane %v3774_v30, %v11015_v36 }
0x1bb1   :  { %3792 = vrot.lane.b32.xlu0 %v3781_v31, %s12512_s7  ;;  %v3897_v55 = vrot.slane %v3781_v31, %v11015_v36 }
0x1c21   :  { %v3785_v32 = vpop.permute.xlu1 %3784 }
0x1c22   :  { %v3787_v34 = vmul.f32 %v3785_v32, %v3774_v30 }
0x1c23   :  { %v3793_v37 = vpop.permute.xlu0 %3792 }
0x1c24   :  { %v3979_v40 = vrot.slane %v3787_v34, %v11015_v36  ;;  %v3795_v21 = vmul.f32 %v3793_v37, %v3781_v31  ;;  %v3789_v15 = vsel %vm3788_vm7, %v3787_v34, 0.0 }
0x1c26   :  { %v3990_v18 = vrot.slane %v3795_v21, %v11015_v36  ;;  %3980 = vrot.lane.b32.xlu0 %v3979_v40, %s12501_s25  ;;  %v3796_v44 = vsel %vm3788_vm7, %v3795_v21, 0.0 }
0x1c28   :  { %3991 = vrot.lane.b32.xlu1 %v3990_v18, %s12501_s25 }
0x1c2a   :  { %4163 = vrot.lane.b32.xlu0 %v3979_v40, %s12504_s5 }
0x1c2c   :  { %4169 = vrot.lane.b32.xlu1 %v3990_v18, %s12504_s5 }
0x1c2e   :  { %4341 = vrot.lane.b32.xlu0 %v3979_v40, %s12507_s2 }
0x1c30   :  { %4347 = vrot.lane.b32.xlu1 %v3990_v18, %s12507_s2 }
0x1c4d   :  { %3797 = vadd.xlane.f32.xlu0 %v3796_v44 }
0x1c54   :  { %3790 = vadd.xlane.f32.xlu1 %v3789_v15 }
0x1c65   :  { %3815 = vrot.lane.b32.xlu1 %v3814_v45, %s12499_s0 }
0x1c98   :  { %v3981_v46 = vpop.permute.xlu0 %3980 }
0x1c99   :  { %v3983_v50 = vsel %vm3788_vm7, %v3981_v46, 0.0 }
0x1c9a   :  { %v3992_v16 = vpop.permute.xlu1 %3991 }
0x1c9b   :  { %v3994_v47 = vsel %vm3788_vm7, %v3992_v16, 0.0 }
0x1c9c   :  { %3995 = vadd.xlane.f32.xlu0 %v3994_v47  ;;  %v4164_v49 = vpop.permute.xlu0 %4163 }
0x1c9d   :  { %v4166_v53 = vsel %vm3788_vm7, %v4164_v49, 0.0 }
0x1c9e   :  { %v4170_v1 = vpop.permute.xlu1 %4169 }
0x1c9f   :  { %v4172_v0 = vsel %vm3788_vm7, %v4170_v1, 0.0 }
0x1ca0   :  { %4173 = vadd.xlane.f32.xlu1 %v4172_v0  ;;  %3984 = vadd.xlane.f32.xlu0 %v3983_v50  ;;  %v4342_v54 = vpop.permute.xlu0 %4341 }
0x1ca1   :  { %v4344_v38 = vsel %vm3788_vm7, %v4342_v54, 0.0 }
0x1ca2   :  { %v4348_v51 = vpop.permute.xlu1 %4347 }
0x1ca3   :  { %v4350_v52 = vsel %vm3788_vm7, %v4348_v51, 0.0 }
0x1ca4   :  { %4351 = vadd.xlane.f32.xlu1 %v4350_v52  ;;  %4167 = vadd.xlane.f32.xlu0 %v4166_v53 }
0x1ca8   :  { %4345 = vadd.xlane.f32.xlu0 %v4344_v38 }
0x1cb5   :  { %4086 = vrot.lane.b32.xlu1 %v3897_v55, %s12502_s8 }
0x1cb9   :  { %4009 = vrot.lane.b32.xlu1 %v3814_v45, %s12502_s8 }
0x1cbd   :  { %4264 = vrot.lane.b32.xlu1 %v3897_v55, %s12505_s28 }
0x1cbe   :  { %3898 = vrot.lane.b32.xlu0 %v3897_v55, %s12499_s0 }
0x1cc1   :  { %4442 = vrot.lane.b32.xlu1 %v3897_v55, %s12508_s29 }
0x1cc2   :  { %4187 = vrot.lane.b32.xlu0 %v3814_v45, %s12505_s28 }
0x1cc6   :  { %4365 = vrot.lane.b32.xlu0 %v3814_v45, %s12508_s29 }
0x1cd6   :  { %v3798_v61 = vpop.xlane.xlu0 %3797 }
0x1cd7   :  { %v3800_v2 = vsub.f32 %v3798_v61, %v3798_v61  ;;  %v4551_v61 = vld [vmem:[%s12418_s12 + $0x10] sm:$0xff] }
0x1cd9   :  { %v3803_v63 = vmul.f32 1.442695, %v3800_v2  ;;  %v4550_v2 = vld [vmem:[%s12418_s12 + $0x8] sm:$0xff] }
0x1cdd   :  { %v3791_v56 = vpop.xlane.xlu1 %3790 }
0x1cde   :  { %v3799_v57 = vsub.f32 %v3791_v56, %v3791_v56 }
0x1ce0   :  { %v3801_v42 = vmul.f32 1.442695, %v3799_v57 }
0x1ce1   :  { %v3816_v59 = vpop.permute.xlu1 %3815 }
0x1ce2   :  { %10637 = vpow2.f32 %v3801_v42  ;;  %10128 = vmatpush3.msk.msra.mxu1 %vm3821_vm8, %v3816_v59 }
0x1ce3   :  { %10132 = vmatprep.subr.mxu1 %v10803_v23 }
0x1cef   :  { %v10638_v60 = vpop.eup %10637 }
0x1cf0   :  { %10639 = vrcp.f32 %v10638_v60 }
0x1cf1   :  { %10641 = vpow2.f32 %v3803_v63  ;;  %v10115_v63 = vpop.f32.mrf.mxu0 }
0x1cfd   :  { %v10640_v62 = vpop.eup %10639 }
0x1cfe   :  { %v3809_v20 = vmul.f32 %v10640_v62, %v10638_v60  ;;  %v10642_v3 = vpop.eup %10641 }
0x1cff   :  { %10643 = vrcp.f32 %v10642_v3 }
0x1d00   :  { %10130 = vmatmul.mubr.msk.f32.vlgmr.msra.gmra.mxu1 %vm3817_vm9, %v3809_v20  ;;  %v4552_v20 = vld [vmem:[%s12418_s12 + $0x18] sm:$0xff] }
0x1d01   :  { %10134 = vmatprep.mubr.msk.f32.mxu1 %vm10804_vm1, %v10803_v23 }
0x1d0c   :  { %v10644_v26 = vpop.eup %10643 }
0x1d0d   :  { %v3810_v31 = vmul.f32 %v10644_v26, %v10642_v3 }
0x1d25   :  { %v3996_v5 = vpop.xlane.xlu0 %3995 }
0x1d26   :  { %v3998_v24 = vsub.f32 %v3996_v5, %v3996_v5 }
0x1d28   :  { %v4001_v6 = vmul.f32 1.442695, %v3998_v24  ;;  %v4549_v24 = vld [vmem:[%s12418_s12] sm:$0xff] }
0x1d29   :  { %v4174_v58 = vpop.xlane.xlu1 %4173  ;;  %v3985_v4 = vpop.xlane.xlu0 %3984 }
0x1d2a   :  { %10645 = vpow2.f32 %v4001_v6  ;;  %v4176_v48 = vsub.f32 %v4174_v58, %v4174_v58  ;;  %v3997_v7 = vsub.f32 %v3985_v4, %v3985_v4  ;;  %v3628_v6 = vpop.f32.mrf.mxu0 }
0x1d2c   :  { %v4179_v8 = vmul.f32 1.442695, %v4176_v48  ;;  %v3999_v9 = vmul.f32 1.442695, %v3997_v7 }
0x1d2d   :  { %v4352_v10 = vpop.xlane.xlu1 %4351  ;;  %v4168_v11 = vpop.xlane.xlu0 %4167 }
0x1d2e   :  { %10647 = vpow2.f32 %v4179_v8  ;;  %v4354_v12 = vsub.f32 %v4352_v10, %v4352_v10  ;;  %v4175_v13 = vsub.f32 %v4168_v11, %v4168_v11 }
0x1d2f   :  { %10649 = vpow2.f32 %v3999_v9 }
0x1d30   :  { %v4357_v25 = vmul.f32 1.442695, %v4354_v12  ;;  %v4177_v14 = vmul.f32 1.442695, %v4175_v13 }
0x1d31   :  { %v4346_v19 = vpop.xlane.xlu0 %4345  ;;  %v4087_v22 = vpop.permute.xlu1 %4086 }
0x1d32   :  { %10651 = vpow2.f32 %v4357_v25  ;;  %v4353_v27 = vsub.f32 %v4346_v19, %v4346_v19 }
0x1d33   :  { %10653 = vpow2.f32 %v4177_v14 }
0x1d34   :  { %v4355_v28 = vmul.f32 1.442695, %v4353_v27 }
0x1d35   :  { %v4010_v29 = vpop.permute.xlu1 %4009  ;;  %v3899_v30 = vpop.permute.xlu0 %3898 }
0x1d36   :  { %10655 = vpow2.f32 %v4355_v28  ;;  %10133 = vmatpush3.msk.msra.mxu1 %vm3821_vm8, %v3899_v30  ;;  %10138 = vmatpush3.msk.msra.mxu0 %vm3821_vm8, %v4010_v29  ;;  %v3637_v28 = vadd.f32 %v3628_v6, %v11479_v43 }
0x1d37   :  { %v10646_v32 = vpop.eup %10645  ;;  %10135 = vmatmul.mubr.msk.f32.vlgmr.msra.gmra.mxu1 %vm3817_vm9, %v3810_v31  ;;  %10142 = vmatprep.subr.mxu1 %v10803_v23  ;;  %v3638_v31 = vadd.f32 %v10115_v63, %v11471_v17  ;;  %v4722_v17 = vld [vmem:[%s12421_s15 + $0x10] sm:$0xff] }
0x1d38   :  { %10657 = vrcp.f32 %v10646_v32  ;;  %10143 = vmatpush3.msk.msra.mxu1 %vm3821_vm8, %v4087_v22  ;;  %10144 = vmatprep.mubr.msk.f32.mxu1 %vm10804_vm1, %v10803_v23  ;;  %v3640_v29 = vmul.f32 %v3637_v28, %v3637_v28 }
0x1d39   :  { %10152 = vmatprep.subr.mxu1 %v10803_v23  ;;  %10147 = vmatprep.subr.mxu0 %v10803_v23  ;;  %v4265_v15 = vpop.permute.xlu1 %4264  ;;  %v4188_v49 = vpop.permute.xlu0 %4187 }
0x1d3a   :  { %v3642_v30 = vsel %vm84_vm0, %v3640_v29, 0.0 }
0x1d3b   :  { %v10648_v34 = vpop.eup %10647 }
0x1d3c   :  { %v10650_v37 = vpop.eup %10649  ;;  %10659 = vrcp.f32 %v10648_v34 }
0x1d3d   :  { %10661 = vrcp.f32 %v10650_v37  ;;  %v4443_v0 = vpop.permute.xlu1 %4442  ;;  %v4366_v38 = vpop.permute.xlu0 %4365 }
0x1d3f   :  { %v10652_v40 = vpop.eup %10651 }
0x1d40   :  { %v10654_v21 = vpop.eup %10653  ;;  %10663 = vrcp.f32 %v10652_v40 }
0x1d41   :  { %10665 = vrcp.f32 %v10654_v21 }
0x1d43   :  { %v10656_v18 = vpop.eup %10655 }
0x1d44   :  { %10667 = vrcp.f32 %v10656_v18 }
0x1d45   :  { %v10658_v44 = vpop.eup %10657 }
0x1d46   :  { %v4008_v45 = vmul.f32 %v10658_v44, %v10646_v32  ;;  %v3641_v32 = vmul.f32 %v3638_v31, %v3638_v31 }
0x1d48   :  { %10145 = vmatmul.mubr.msk.f32.vlgmr.msra.gmra.mxu1 %vm3817_vm9, %v4008_v45  ;;  %v4721_v45 = vld [vmem:[%s12421_s15 + $0x8] sm:$0xff] }
0x1d49   :  { %v10660_v46 = vpop.eup %10659  ;;  %10153 = vmatpush3.msk.msra.mxu1 %vm3821_vm8, %v4265_v15  ;;  %10154 = vmatprep.mubr.msk.f32.mxu1 %vm10804_vm1, %v10803_v23 }
0x1d4a   :  { %v10662_v16 = vpop.eup %10661  ;;  %10162 = vmatprep.subr.mxu1 %v10803_v23  ;;  %v4186_v47 = vmul.f32 %v10660_v46, %v10648_v34  ;;  %v3645_v34 = vsel %vm84_vm0, %v3641_v32, 0.0  ;;  %v4720_v46 = vld [vmem:[%s12421_s15] sm:$0xff] }
0x1d4b   :  { %v4007_v1 = vmul.f32 %v10662_v16, %v10650_v37  ;;  %v4723_v37 = vld [vmem:[%s12421_s15 + $0x18] sm:$0xff] }
0x1d4c   :  { %10155 = vmatmul.mubr.msk.f32.vlgmr.msra.gmra.mxu1 %vm3817_vm9, %v4186_v47 }
0x1d4d   :  { %v10664_v50 = vpop.eup %10663  ;;  %10140 = vmatmul.mubr.msk.f32.vlgmr.msra.gmra.mxu0 %vm3817_vm9, %v4007_v1  ;;  %10163 = vmatpush3.msk.msra.mxu1 %vm3821_vm8, %v4443_v0 }
0x1d4e   :  { %v10666_v51 = vpop.eup %10665  ;;  %10148 = vmatpush3.msk.msra.mxu0 %vm3821_vm8, %v4188_v49  ;;  %10149 = vmatprep.mubr.msk.f32.mxu0 %vm10804_vm1, %v10803_v23  ;;  %v4364_v52 = vmul.f32 %v10664_v50, %v10652_v40 }
0x1d4f   :  { %10157 = vmatprep.subr.mxu0 %v10803_v23  ;;  %10164 = vmatprep.mubr.msk.f32.mxu1 %vm10804_vm1, %v10803_v23  ;;  %v4185_v53 = vmul.f32 %v10666_v51, %v10654_v21 }
0x1d50   :  { %10165 = vmatmul.mubr.msk.f32.vlgmr.msra.gmra.mxu1 %vm3817_vm9, %v4364_v52  ;;  %10178 = vmatprep.subr.mxu1 %v10803_v23  ;;  %v9410_v52 = vld [vmem:[%s12415_s9] ss:$0 sm:$0xff]  ;;  %s12520_s9 = sld [smem:[#allocation18_spill]] }
0x1d51   :  { %v10668_v54 = vpop.eup %10667  ;;  %10150 = vmatmul.mubr.msk.f32.vlgmr.msra.gmra.mxu0 %vm3817_vm9, %v4185_v53  ;;  %10186 = vmatprep.mubr.msk.f32.mxu1 %vm10804_vm1, %v10803_v23 }
0x1d52   :  { %10158 = vmatpush3.msk.msra.mxu0 %vm3821_vm8, %v4366_v38  ;;  %10159 = vmatprep.mubr.msk.f32.mxu0 %vm10804_vm1, %v10803_v23  ;;  %v4363_v55 = vmul.f32 %v10668_v54, %v10656_v18 }
0x1d53   :  { %10167 = vmatprep.subr.mxu0 %v10803_v23 }
0x1d55   :  { %10160 = vmatmul.mubr.msk.f32.vlgmr.msra.gmra.mxu0 %vm3817_vm9, %v4363_v55 }
0x1d56   :  { %10175 = vmatprep.mubr.msk.f32.mxu0 %vm10804_vm1, %v10803_v23  ;;  %10168 = vmatpush3.msra.mxu0 %v4552_v20  ;;  %v4646_v20 = vld [vmem:[%s12420_s14 + $0x18] sm:$0xff] }
0x1d57   :  { %10169 = vmatprep.subr.mxu0 %v10803_v23  ;;  %10179 = vmatpush3.msra.mxu1 %v4646_v20 }
0x1d58   :  { %10170 = vmatpush3.msra.mxu0 %v4551_v61  ;;  %v4645_v61 = vld [vmem:[%s12420_s14 + $0x10] sm:$0xff]  ;;  %10180 = vmatprep.subr.mxu1 %v10803_v23 }
0x1d59   :  { %10171 = vmatprep.subr.mxu0 %v10803_v23  ;;  %10181 = vmatpush3.msra.mxu1 %v4645_v61 }
0x1d5a   :  { %10172 = vmatpush3.msra.mxu0 %v4550_v2  ;;  %10182 = vmatprep.subr.mxu1 %v10803_v23  ;;  %v4643_v2 = vld [vmem:[%s12420_s14] sm:$0xff] }
0x1d5b   :  { %10173 = vmatprep.subr.mxu0 %v10803_v23 }
0x1d5c   :  { %10174 = vmatpush3.msra.mxu0 %v4549_v24 }
0x1d5d   :  { %10189 = vmatprep.subr.mxu0 %v4723_v37 }
0x1dc0   :  { %v3890_v56 = vpop.f32.mrf.mxu1 }
0x1dc2   :  { %v10131_v57 = vpop.f32.mrf.mxu1 }
0x1df7   :  { %v3971_v42 = vpop.f32.mrf.mxu1 }
0x1df8   :  { %v4521_v59 = vrot.slane %v3971_v42, 7 }
0x1df9   :  { %v10136_v60 = vpop.f32.mrf.mxu1 }
0x1dfa   :  { %v4523_v62 = vsel %vm4522_vm10, %v4521_v59, %v3890_v56 }
0x1e08   :  { %v4159_v3 = vpop.f32.mrf.mxu1 }
0x1e09   :  { %v4527_v58 = vrot.slane %v4159_v3, 7 }
0x1e0a   :  { %v10146_v5 = vpop.f32.mrf.mxu1 }
0x1e0c   :  { %v4337_v4 = vpop.f32.mrf.mxu1 }
0x1e0d   :  { %v4082_v48 = vpop.f32.mrf.mxu0  ;;  %v4534_v10 = vrot.slane %v4337_v4, 7  ;;  %v9430_v4 = vld [vmem:[%s12423_s17] ss:$0 sm:$0xff] }
0x1e0e   :  { %v4528_v7 = vsel %vm4522_vm10, %v4527_v58, %v4082_v48  ;;  %v10156_v8 = vpop.f32.mrf.mxu1 }
0x1e0f   :  { %4529 = vrot.lane.b32.xlu1 %v4528_v7, %s12509_s27  ;;  %v10141_v9 = vpop.f32.mrf.mxu0 }
0x1e10   :  { %v4515_v11 = vpop.f32.mrf.mxu1 }
0x1e11   :  { %v4260_v12 = vpop.f32.mrf.mxu0  ;;  %v4541_v19 = vrot.slane %v4515_v11, 7 }
0x1e12   :  { %v4535_v13 = vsel %vm4522_vm10, %v4534_v10, %v4260_v12  ;;  %v10166_v25 = vpop.f32.mrf.mxu1 }
0x1e13   :  { %4536 = vrot.lane.b32.xlu0 %v4535_v13, %s12510_s24  ;;  %v10151_v14 = vpop.f32.mrf.mxu0 }
0x1e15   :  { %v4438_v22 = vpop.f32.mrf.mxu0 }
0x1e16   :  { %v4542_v26 = vsel %vm4522_vm10, %v4541_v19, %v4438_v22 }
0x1e17   :  { %4543 = vrot.lane.b32.xlu1 %v4542_v26, %s12511_s21  ;;  %v10161_v27 = vpop.f32.mrf.mxu0 }
0x1e32   :  { %3643 = vadd.xlane.f32.xlu0 %v3642_v30 }
0x1e3b   :  { %3646 = vadd.xlane.f32.xlu1 %v3645_v34 }
0x1e81   :  { %v4530_v40 = vpop.permute.xlu1 %4529 }
0x1e82   :  { %v4546_v18 = vsel %vm234_vm2, %v4523_v62, %v4530_v40 }
0x1e85   :  { %v4537_v21 = vpop.permute.xlu0 %4536 }
0x1e86   :  { %v4547_v43 = vsel %vm1588_vm4, %v4546_v18, %v4537_v21 }
0x1e89   :  { %v4544_v44 = vpop.permute.xlu1 %4543 }
0x1e8a   :  { %v4548_v15 = vsel %vm1591_vm3, %v4547_v43, %v4544_v44 }
0x1e8b   :  { %10176 = vmatmul.mubr.msk.f32.vlgmr.msra.gmra.mxu0 %vm84_vm0, %v4548_v15 }
0x1e8c   :  { %10190 = vmatpush3.msra.mxu0 %v4723_v37 }
0x1e8d   :  { %10191 = vmatprep.subr.mxu0 %v4722_v17 }
0x1e8e   :  { %10192 = vmatpush3.msra.mxu0 %v4722_v17 }
0x1e8f   :  { %10193 = vmatprep.subr.mxu0 %v4721_v45 }
0x1e90   :  { %10194 = vmatpush3.msra.mxu0 %v4721_v45 }
0x1e91   :  { %10195 = vmatprep.subr.mxu0 %v4720_v46 }
0x1e92   :  { %10196 = vmatpush3.msra.mxu0 %v4720_v46 }
0x1e93   :  { %10210 = vmatprep.subr.mxu0 %v10803_v23 }
0x1ebb   :  { %v3644_v16 = vpop.xlane.xlu0 %3643 }
0x1ebc   :  { %v3648_v47 = vmul.f32 0.03125, %v3644_v16 }
0x1ebe   :  { %v3650_v49 = vadd.f32 1e-06, %v3648_v47 }
0x1ec0   :  { %10669 = vrsqrt.f32 %v3650_v49 }
0x1ec4   :  { %v3647_v1 = vpop.xlane.xlu1 %3646 }
0x1ec5   :  { %v3649_v0 = vmul.f32 0.03125, %v3647_v1 }
0x1ec7   :  { %v3651_v50 = vadd.f32 1e-06, %v3649_v0 }
0x1ec9   :  { %10671 = vrsqrt.f32 %v3651_v50 }
0x1ecd   :  { %v10670_v51 = vpop.eup %10669 }
0x1ece   :  { %v3654_v53 = vmul.f32 %v10670_v51, %v3637_v28 }
0x1ed0   :  { %v11681_v54 = vmul.f32 %v9410_v52, %v3654_v53 }
0x1ed2   :  { %10197 = vmatprep.mubr.msk.f32.mxu0 %vm84_vm0, %v11681_v54 }
0x1ed6   :  { %v10672_v38 = vpop.eup %10671 }
0x1ed7   :  { %v3655_v55 = vmul.f32 %v10672_v38, %v3638_v31 }
0x1ed9   :  { %v11685_v56 = vmul.f32 %v9410_v52, %v3655_v55 }
0x1edb   :  { %10198 = vmatmul.mubr.msk.f32.vlgmr.msra.gmra.mxu0 %vm84_vm0, %v11685_v56 }
0x1edc   :  { %10212 = vmatprep.mubr.msk.f32.mxu0 %vm10804_vm1, %v10803_v23 }
0x1f4b   :  { %v4622_v57 = vpop.f32.mrf.mxu0 }
0x1f4c   :  { %v11692_v42 = vadd.f32 %v4622_v57, %v11476_v41  ;;  %v4644_v41 = vld [vmem:[%s12420_s14 + $0x8] sm:$0xff] }
0x1f4d   :  { %v10177_v59 = vpop.f32.mrf.mxu0  ;;  %10183 = vmatpush3.msra.mxu1 %v4644_v41 }
0x1f4e   :  { %v4628_v60 = vmul.f32 %v11692_v42, %v11692_v42  ;;  %10184 = vmatprep.subr.mxu1 %v10803_v23 }
0x1f4f   :  { %10185 = vmatpush3.msra.mxu1 %v4643_v2 }
0x1f50   :  { %v4629_v62 = vsel %vm3667_vm6, %v4628_v60, 0.0  ;;  %10200 = vmatprep.subr.mxu1 %v10803_v23 }
0x1f51   :  { %4630 = vadd.xlane.f32.xlu0 %v4629_v62 }
0x1f9b   :  { %v11713_v63 = vpop.f32.mrf.mxu0 }
0x1f9c   :  { %5076 = vrot.lane.b32.xlu1 %v11713_v63, %s12512_s7 }
0x1f9d   :  { %v11719_v3 = vpop.f32.mrf.mxu0 }
0x1fa0   :  { %5240 = vrot.lane.b32.xlu1 %v11713_v63, %s12501_s25 }
0x1fa4   :  { %5158 = vrot.lane.b32.xlu1 %v11719_v3, %s12501_s25 }
0x1fda   :  { %v4631_v5 = vpop.xlane.xlu0 %4630 }
0x1fdb   :  { %v4632_v24 = vmul.f32 0.03125, %v4631_v5 }
0x1fdd   :  { %v4633_v6 = vadd.f32 1e-06, %v4632_v24 }
0x1fdf   :  { %10673 = vrsqrt.f32 %v4633_v6 }
0x1fec   :  { %v10674_v58 = vpop.eup %10673 }
0x1fed   :  { %v4635_v48 = vmul.f32 %v10674_v58, %v11692_v42 }
0x1fef   :  { %v4642_v7 = vmul.f32 %v9430_v4, %v4635_v48 }
0x1ff1   :  { %10187 = vmatmul.mubr.msk.f32.vlgmr.msra.gmra.mxu1 %vm84_vm0, %v4642_v7 }
0x1ff2   :  { %10201 = vmatpush3.xpose.msk.msra.mxu1 %vm234_vm2, %v11719_v3  ;;  %10202 = vmatprep.mubr.msk.f32.mxu1 %vm10804_vm1, %v10803_v23 }
0x1ff3   :  { %10205 = vmatprep.subr.mxu1 %v10803_v23 }
0x200e   :  { %v5077_v25 = vpop.permute.xlu1 %5076 }
0x2012   :  { %v5241_v46 = vpop.permute.xlu1 %5240 }
0x2016   :  { %v5159_v16 = vpop.permute.xlu1 %5158 }
0x20b1   :  { %v4716_v8 = vpop.f32.mrf.mxu1 }
0x20b2   :  { %v4812_v9 = vrot.slane %v4716_v8, %v11007_v33 }
0x20b3   :  { %v10188_v10 = vpop.f32.mrf.mxu1 }
0x20b4   :  { %v4813_v11 = vcombine.high %v4812_v9, %v4812_v9  ;;  %v4820_v12 = vrot.slane %v4812_v9, %v11007_v33 }
0x20b6   :  { %10203 = vmatmul.mubr.msk.f32.vlgmr.msra.gmra.mxu1 %vm234_vm2, %v4820_v12  ;;  %v4827_v13 = vrot.slane %v4813_v11, %v11007_v33  ;;  %v11760_v45 = vrot.slane %v4820_v12, %v11015_v36 }
0x20b7   :  { %10206 = vmatpush3.xpose.msk.msra.mxu1 %vm234_vm2, %v11713_v63  ;;  %10207 = vmatprep.mubr.msk.f32.mxu1 %vm10804_vm1, %v10803_v23 }
0x20b8   :  { %10215 = vmatprep.subr.mxu1 %v10803_v23  ;;  %v11753_v17 = vrot.slane %v4827_v13, %v11015_v36 }
0x20ba   :  { %10208 = vmatmul.mubr.msk.f32.vlgmr.msra.gmra.mxu1 %vm234_vm2, %v4827_v13 }
0x20bb   :  { %10216 = vmatpush3.msra.mxu1 %v5077_v25  ;;  %10217 = vmatprep.mubr.msk.f32.mxu1 %vm10804_vm1, %v10803_v23 }
0x20bc   :  { %10225 = vmatprep.subr.mxu1 %v10803_v23 }
0x2176   :  { %v4899_v14 = vpop.f32.mrf.mxu1 }
0x2177   :  { %v4900_v28 = vadd.f32 %v4899_v14, %v11013_v35 }
0x2178   :  { %v10204_v19 = vpop.f32.mrf.mxu1 }
0x2179   :  { %v4978_v30 = vsel %vm3788_vm7, %v4900_v28, -inf }
0x217a   :  { %v4974_v22 = vpop.f32.mrf.mxu1 }
0x217b   :  { %v4975_v26 = vadd.f32 %v4974_v22, %v11022_v39 }
0x217c   :  { %v10209_v27 = vpop.f32.mrf.mxu1 }
0x217d   :  { %v4981_v29 = vsel %vm3788_vm7, %v4975_v26, -inf }
0x217e   :  { %4982 = vmax.xlane.f32.xlu0 %v4981_v29 }
0x2182   :  { %4979 = vmax.xlane.f32.xlu0 %v4978_v30 }
0x2207   :  { %v4983_v31 = vpop.xlane.xlu0 %4982 }
0x2208   :  { %v4985_v32 = vsub.f32 %v4975_v26, %v4983_v31 }
0x220a   :  { %v4988_v34 = vmul.f32 1.442695, %v4985_v32 }
0x220b   :  { %v4980_v37 = vpop.xlane.xlu0 %4979 }
0x220c   :  { %10675 = vpow2.f32 %v4988_v34  ;;  %v4984_v40 = vsub.f32 %v4900_v28, %v4980_v37 }
0x220e   :  { %v4986_v21 = vmul.f32 1.442695, %v4984_v40 }
0x2210   :  { %10677 = vpow2.f32 %v4986_v21 }
0x2219   :  { %v10676_v18 = vpop.eup %10675 }
0x221a   :  { %v4993_v43 = vsel %vm3788_vm7, %v10676_v18, 0.0 }
0x221b   :  { %4994 = vadd.xlane.f32.xlu1 %v4993_v43 }
0x221d   :  { %v10678_v44 = vpop.eup %10677 }
0x221e   :  { %v4990_v15 = vsel %vm3788_vm7, %v10678_v44, 0.0 }
0x221f   :  { %4991 = vadd.xlane.f32.xlu0 %v4990_v15 }
0x222c   :  { %5238 = vrot.lane.b32.xlu1 %v11753_v17, %s12501_s25 }
0x2235   :  { %5000 = vrot.lane.b32.xlu0 %v11719_v3, %s12512_s7 }
0x2239   :  { %5156 = vrot.lane.b32.xlu0 %v11760_v45, %s12501_s25 }
0x22a4   :  { %v4995_v47 = vpop.xlane.xlu1 %4994 }
0x22a5   :  { %10679 = vrcp.f32 %v4995_v47 }
0x22a8   :  { %v4992_v49 = vpop.xlane.xlu0 %4991  ;;  %v5239_v53 = vpop.permute.xlu1 %5238 }
0x22a9   :  { %10681 = vrcp.f32 %v4992_v49 }
0x22ac   :  { %v5001_v1 = vpop.permute.xlu0 %5000 }
0x22ad   :  { %10211 = vmatpush3.msra.mxu0 %v5001_v1 }
0x22ae   :  { %10220 = vmatprep.subr.mxu0 %v10803_v23 }
0x22b0   :  { %v5157_v38 = vpop.permute.xlu0 %5156 }
0x22b2   :  { %v10680_v0 = vpop.eup %10679 }
0x22b3   :  { %v4999_v50 = vmul.f32 %v10680_v0, %v10676_v18 }
0x22b5   :  { %10218 = vmatmul.mubr.msk.f32.vlgmr.msra.gmra.mxu1 %vm234_vm2, %v4999_v50 }
0x22b6   :  { %v10682_v51 = vpop.eup %10681  ;;  %10226 = vmatpush3.xpose.msk.msra.mxu1 %vm234_vm2, %v5241_v46  ;;  %10227 = vmatprep.mubr.msk.f32.mxu1 %vm10804_vm1, %v10803_v23 }
0x22b7   :  { %v4998_v52 = vmul.f32 %v10682_v51, %v10678_v44  ;;  %10235 = vmatprep.subr.mxu1 %v10803_v23 }
0x22b9   :  { %10213 = vmatmul.mubr.msk.f32.vlgmr.msra.gmra.mxu0 %vm234_vm2, %v4998_v52  ;;  %10228 = vmatmul.mubr.msk.f32.vlgmr.msra.gmra.mxu1 %vm234_vm2, %v5239_v53 }
0x22ba   :  { %10221 = vmatpush3.xpose.msk.msra.mxu0 %vm234_vm2, %v5159_v16  ;;  %10222 = vmatprep.mubr.msk.f32.mxu0 %vm10804_vm1, %v10803_v23 }
0x22bb   :  { %10230 = vmatprep.subr.mxu0 %v10803_v23  ;;  %10237 = vmatprep.mubr.msk.f32.mxu1 %vm10804_vm1, %v10803_v23 }
0x22bd   :  { %10223 = vmatmul.mubr.msk.f32.vlgmr.msra.gmra.mxu0 %vm234_vm2, %v5157_v38 }
0x22be   :  { %10232 = vmatprep.mubr.msk.f32.mxu0 %vm10804_vm1, %v10803_v23 }
0x2375   :  { %v5148_v55 = vpop.f32.mrf.mxu1 }
0x2376   :  { %v6152_v59 = vrot.slane %v5148_v55, 7 }
0x2377   :  { %v10219_v57 = vpop.f32.mrf.mxu1 }
0x2379   :  { %v5072_v60 = vpop.f32.mrf.mxu0  ;;  %v5312_v62 = vpop.f32.mrf.mxu1 }
0x237a   :  { %v11782_v20 = vsel %vm4522_vm10, %v6152_v59, %v5072_v60  ;;  %v5313_v61 = vadd.f32 %v5312_v62, %v11022_v39 }
0x237b   :  { %v10214_v41 = vpop.f32.mrf.mxu0  ;;  %v10229_v2 = vpop.f32.mrf.mxu1 }
0x237c   :  { %v5319_v5 = vsel %vm3788_vm7, %v5313_v61, -inf }
0x237d   :  { %v5230_v24 = vpop.f32.mrf.mxu0  ;;  %5320 = vmax.xlane.f32.xlu1 %v5319_v5 }
0x237e   :  { %v5231_v6 = vadd.f32 %v5230_v24, %v11013_v35 }
0x237f   :  { %v10224_v58 = vpop.f32.mrf.mxu0 }
0x2380   :  { %v5316_v4 = vsel %vm3788_vm7, %v5231_v6, -inf }
0x2381   :  { %5317 = vmax.xlane.f32.xlu0 %v5316_v4 }
0x238e   :  { %5414 = vrot.lane.b32.xlu1 %v11713_v63, %s12500_s26 }
0x2392   :  { %5570 = vrot.lane.b32.xlu1 %v11713_v63, %s12504_s5 }
0x2396   :  { %5492 = vrot.lane.b32.xlu1 %v11719_v3, %s12504_s5 }
0x239a   :  { %5568 = vrot.lane.b32.xlu1 %v11753_v17, %s12504_s5 }
0x2406   :  { %v5321_v48 = vpop.xlane.xlu1 %5320 }
0x2407   :  { %v5323_v7 = vsub.f32 %v5313_v61, %v5321_v48 }
0x2409   :  { %v5326_v11 = vmul.f32 1.442695, %v5323_v7 }
0x240a   :  { %v5318_v8 = vpop.xlane.xlu0 %5317  ;;  %v5415_v9 = vpop.permute.xlu1 %5414 }
0x240b   :  { %v5322_v10 = vsub.f32 %v5231_v6, %v5318_v8  ;;  %10236 = vmatpush3.msra.mxu1 %v5415_v9 }
0x240c   :  { %10245 = vmatprep.subr.mxu1 %v10803_v23 }
0x240d   :  { %v5324_v12 = vmul.f32 1.442695, %v5322_v10 }
0x240e   :  { %v5571_v28 = vpop.permute.xlu1 %5570 }
0x240f   :  { %10683 = vpow2.f32 %v5324_v12 }
0x2410   :  { %10685 = vpow2.f32 %v5326_v11 }
0x2412   :  { %v5493_v31 = vpop.permute.xlu1 %5492 }
0x2416   :  { %v5569_v40 = vpop.permute.xlu1 %5568 }
0x241c   :  { %v10684_v13 = vpop.eup %10683 }
0x241d   :  { %v5328_v25 = vsel %vm3788_vm7, %v10684_v13, 0.0  ;;  %v10686_v14 = vpop.eup %10685 }
0x241e   :  { %5329 = vadd.xlane.f32.xlu0 %v5328_v25  ;;  %v5331_v19 = vsel %vm3788_vm7, %v10686_v14, 0.0 }
0x2422   :  { %5332 = vadd.xlane.f32.xlu0 %v5331_v19 }
0x2438   :  { %5338 = vrot.lane.b32.xlu0 %v11719_v3, %s12500_s26 }
0x243c   :  { %5490 = vrot.lane.b32.xlu0 %v11760_v45, %s12504_s5 }
0x24a7   :  { %v5330_v22 = vpop.xlane.xlu0 %5329 }
0x24a8   :  { %10687 = vrcp.f32 %v5330_v22 }
0x24ab   :  { %v5333_v26 = vpop.xlane.xlu0 %5332 }
0x24ac   :  { %10689 = vrcp.f32 %v5333_v26 }
0x24af   :  { %v5339_v27 = vpop.permute.xlu0 %5338 }
0x24b0   :  { %10231 = vmatpush3.msra.mxu0 %v5339_v27 }
0x24b1   :  { %10240 = vmatprep.subr.mxu0 %v10803_v23 }
0x24b3   :  { %v5491_v37 = vpop.permute.xlu0 %5490 }
0x24b5   :  { %v10688_v29 = vpop.eup %10687 }
0x24b6   :  { %v5336_v30 = vmul.f32 %v10688_v29, %v10684_v13 }
0x24b8   :  { %10233 = vmatmul.mubr.msk.f32.vlgmr.msra.gmra.mxu0 %vm234_vm2, %v5336_v30 }
0x24b9   :  { %v10690_v32 = vpop.eup %10689  ;;  %10241 = vmatpush3.xpose.msk.msra.mxu0 %vm234_vm2, %v5493_v31  ;;  %10242 = vmatprep.mubr.msk.f32.mxu0 %vm10804_vm1, %v10803_v23 }
0x24ba   :  { %v5337_v34 = vmul.f32 %v10690_v32, %v10686_v14  ;;  %10250 = vmatprep.subr.mxu0 %v10803_v23 }
0x24bc   :  { %10238 = vmatmul.mubr.msk.f32.vlgmr.msra.gmra.mxu1 %vm234_vm2, %v5337_v34  ;;  %10243 = vmatmul.mubr.msk.f32.vlgmr.msra.gmra.mxu0 %vm234_vm2, %v5491_v37 }
0x24bd   :  { %10246 = vmatpush3.xpose.msk.msra.mxu1 %vm234_vm2, %v5571_v28  ;;  %10247 = vmatprep.mubr.msk.f32.mxu1 %vm10804_vm1, %v10803_v23 }
0x24be   :  { %10255 = vmatprep.subr.mxu1 %v10803_v23  ;;  %10252 = vmatprep.mubr.msk.f32.mxu0 %vm10804_vm1, %v10803_v23 }
0x24c0   :  { %10248 = vmatmul.mubr.msk.f32.vlgmr.msra.gmra.mxu1 %vm234_vm2, %v5569_v40 }
0x24c1   :  { %10257 = vmatprep.mubr.msk.f32.mxu1 %vm10804_vm1, %v10803_v23 }
0x2578   :  { %v5410_v21 = vpop.f32.mrf.mxu0 }
0x257a   :  { %v10234_v18 = vpop.f32.mrf.mxu0 }
0x257c   :  { %v5486_v43 = vpop.f32.mrf.mxu1  ;;  %v5564_v44 = vpop.f32.mrf.mxu0 }
0x257d   :  { %v6157_v15 = vrot.slane %v5486_v43, 7  ;;  %v5565_v46 = vadd.f32 %v5564_v44, %v11013_v35 }
0x257e   :  { %v10239_v16 = vpop.f32.mrf.mxu1  ;;  %v10244_v47 = vpop.f32.mrf.mxu0 }
0x257f   :  { %v5646_v49 = vsel %vm3788_vm7, %v5565_v46, -inf  ;;  %v11823_v1 = vsel %vm4522_vm10, %v6157_v15, %v5410_v21 }
0x2580   :  { %5647 = vmax.xlane.f32.xlu0 %v5646_v49  ;;  %v5642_v0 = vpop.f32.mrf.mxu1 }
0x2581   :  { %v5643_v50 = vadd.f32 %v5642_v0, %v11022_v39 }
0x2582   :  { %v10249_v51 = vpop.f32.mrf.mxu1 }
0x2583   :  { %v5649_v52 = vsel %vm3788_vm7, %v5643_v50, -inf }
0x2584   :  { %5650 = vmax.xlane.f32.xlu1 %v5649_v52 }
0x2595   :  { %5744 = vrot.lane.b32.xlu1 %v11713_v63, %s12503_s1 }
0x2599   :  { %5900 = vrot.lane.b32.xlu1 %v11713_v63, %s12507_s2 }
0x259d   :  { %5822 = vrot.lane.b32.xlu1 %v11719_v3, %s12507_s2 }
0x25a1   :  { %5898 = vrot.lane.b32.xlu1 %v11753_v17, %s12507_s2 }
0x2609   :  { %v5648_v53 = vpop.xlane.xlu0 %5647 }
0x260a   :  { %v5652_v38 = vsub.f32 %v5565_v46, %v5648_v53  ;;  %v6181_v53 = vld [vmem:[%s12514_s20 + $0x10] sm:$0xff] }
0x260c   :  { %v5654_v55 = vmul.f32 1.442695, %v5652_v38  ;;  %v6180_v38 = vld [vmem:[%s12514_s20 + $0x8] sm:$0xff] }
0x260d   :  { %v5651_v57 = vpop.xlane.xlu1 %5650 }
0x260e   :  { %10691 = vpow2.f32 %v5654_v55  ;;  %v5653_v59 = vsub.f32 %v5643_v50, %v5651_v57  ;;  %v6179_v55 = vld [vmem:[%s12514_s20] sm:$0xff] }
0x2610   :  { %v5656_v60 = vmul.f32 1.442695, %v5653_v59 }
0x2611   :  { %v5745_v62 = vpop.permute.xlu1 %5744 }
0x2612   :  { %10693 = vpow2.f32 %v5656_v60  ;;  %10256 = vmatpush3.msra.mxu1 %v5745_v62 }
0x2613   :  { %10265 = vmatprep.subr.mxu1 %v10803_v23 }
0x2615   :  { %v5901_v58 = vpop.permute.xlu1 %5900 }
0x2619   :  { %v5823_v7 = vpop.permute.xlu1 %5822 }
0x261b   :  { %v10692_v61 = vpop.eup %10691 }
0x261c   :  { %v5658_v41 = vsel %vm3788_vm7, %v10692_v61, 0.0 }
0x261d   :  { %5659 = vadd.xlane.f32.xlu0 %v5658_v41  ;;  %v5899_v10 = vpop.permute.xlu1 %5898 }
0x261f   :  { %v10694_v2 = vpop.eup %10693 }
0x2620   :  { %v5661_v5 = vsel %vm3788_vm7, %v10694_v2, 0.0 }
0x2621   :  { %5662 = vadd.xlane.f32.xlu0 %v5661_v5 }
0x2637   :  { %5668 = vrot.lane.b32.xlu0 %v11719_v3, %s12503_s1 }
0x263b   :  { %5820 = vrot.lane.b32.xlu0 %v11760_v45, %s12507_s2 }
0x26a6   :  { %v5660_v17 = vpop.xlane.xlu0 %5659 }
0x26a7   :  { %10695 = vrcp.f32 %v5660_v17 }
0x26aa   :  { %v5663_v24 = vpop.xlane.xlu0 %5662 }
0x26ab   :  { %10697 = vrcp.f32 %v5663_v24 }
0x26ae   :  { %v5669_v6 = vpop.permute.xlu0 %5668 }
0x26af   :  { %10251 = vmatpush3.msra.mxu0 %v5669_v6 }
0x26b0   :  { %10260 = vmatprep.subr.mxu0 %v10803_v23 }
0x26b2   :  { %v5821_v9 = vpop.permute.xlu0 %5820 }
0x26b4   :  { %v10696_v4 = vpop.eup %10695 }
0x26b5   :  { %v5666_v48 = vmul.f32 %v10696_v4, %v10692_v61 }
0x26b7   :  { %10253 = vmatmul.mubr.msk.f32.vlgmr.msra.gmra.mxu0 %vm234_vm2, %v5666_v48 }
0x26b8   :  { %v10698_v8 = vpop.eup %10697  ;;  %10261 = vmatpush3.xpose.msk.msra.mxu0 %vm234_vm2, %v5823_v7  ;;  %10262 = vmatprep.mubr.msk.f32.mxu0 %vm10804_vm1, %v10803_v23 }
0x26b9   :  { %v5667_v45 = vmul.f32 %v10698_v8, %v10694_v2  ;;  %10270 = vmatprep.subr.mxu0 %v10803_v23 }
0x26bb   :  { %10258 = vmatmul.mubr.msk.f32.vlgmr.msra.gmra.mxu1 %vm234_vm2, %v5667_v45  ;;  %10263 = vmatmul.mubr.msk.f32.vlgmr.msra.gmra.mxu0 %vm234_vm2, %v5821_v9  ;;  %v6275_v9 = vld [vmem:[%s12515_s19 + $0x10] sm:$0xff] }
0x26bc   :  { %10266 = vmatpush3.xpose.msk.msra.mxu1 %vm234_vm2, %v5901_v58  ;;  %10267 = vmatprep.mubr.msk.f32.mxu1 %vm10804_vm1, %v10803_v23 }
0x26bd   :  { %10275 = vmatprep.subr.mxu1 %v10803_v23  ;;  %10272 = vmatprep.mubr.msk.f32.mxu0 %vm10804_vm1, %v10803_v23 }
0x26bf   :  { %10268 = vmatmul.mubr.msk.f32.vlgmr.msra.gmra.mxu1 %vm234_vm2, %v5899_v10  ;;  %v6273_v10 = vld [vmem:[%s12515_s19] sm:$0xff] }
0x26c0   :  { %10277 = vmatprep.mubr.msk.f32.mxu1 %vm10804_vm1, %v10803_v23 }
0x2777   :  { %v5740_v11 = vpop.f32.mrf.mxu0 }
0x2779   :  { %v10254_v12 = vpop.f32.mrf.mxu0 }
0x277a   :  { %v6357_v12 = vld [vmem:[%s12516_s18 + $0x30] sm:$0xff] }
0x277b   :  { %v5816_v13 = vpop.f32.mrf.mxu1  ;;  %v5894_v25 = vpop.f32.mrf.mxu0 }
0x277c   :  { %v5895_v14 = vadd.f32 %v5894_v25, %v11013_v35  ;;  %v6164_v31 = vrot.slane %v5816_v13, 7  ;;  %v6356_v13 = vld [vmem:[%s12516_s18 + $0x28] sm:$0xff]  ;;  %v6355_v25 = vld [vmem:[%s12516_s18 + $0x20] sm:$0xff] }
0x277d   :  { %v10259_v19 = vpop.f32.mrf.mxu1  ;;  %v10264_v22 = vpop.f32.mrf.mxu0 }
0x277e   :  { %v5976_v26 = vsel %vm3788_vm7, %v5895_v14, -inf  ;;  %v6165_v32 = vsel %vm4522_vm10, %v6164_v31, %v5740_v11  ;;  %v6358_v11 = vld [vmem:[%s12516_s18 + $0x38] sm:$0xff]  ;;  %v6353_v19 = vld [vmem:[%s12516_s18 + $0x10] sm:$0xff] }
0x277f   :  { %5977 = vmax.xlane.f32.xlu0 %v5976_v26  ;;  %v5972_v27 = vpop.f32.mrf.mxu1 }
0x2780   :  { %v5973_v28 = vadd.f32 %v5972_v27, %v11022_v39 }
0x2781   :  { %v10269_v29 = vpop.f32.mrf.mxu1 }
0x2782   :  { %v5979_v30 = vsel %vm3788_vm7, %v5973_v28, -inf  ;;  %v9459_v29 = vld [vmem:[%s12517_s6] ss:$0 sm:$0xff] }
0x2783   :  { %5980 = vmax.xlane.f32.xlu1 %v5979_v30 }
0x2794   :  { %6074 = vrot.lane.b32.xlu1 %v11713_v63, %s12513_s10 }
0x2798   :  { %6159 = vrot.lane.b32.xlu1 %v11823_v1, %s12509_s27 }
0x279c   :  { %6166 = vrot.lane.b32.xlu1 %v6165_v32, %s12510_s24  ;;  %v6352_v32 = vld [vmem:[%s12516_s18 + $0x8] sm:$0xff] }
0x2808   :  { %v5978_v34 = vpop.xlane.xlu0 %5977 }
0x2809   :  { %v5982_v37 = vsub.f32 %v5895_v14, %v5978_v34  ;;  %v6354_v14 = vld [vmem:[%s12516_s18 + $0x18] sm:$0xff]  ;;  %v6351_v34 = vld [vmem:[%s12516_s18] sm:$0xff] }
0x280b   :  { %v5984_v40 = vmul.f32 1.442695, %v5982_v37 }
0x280c   :  { %v5981_v21 = vpop.xlane.xlu1 %5980 }
0x280d   :  { %10699 = vpow2.f32 %v5984_v40  ;;  %v5983_v18 = vsub.f32 %v5973_v28, %v5981_v21 }
0x280f   :  { %v5986_v43 = vmul.f32 1.442695, %v5983_v18 }
0x2810   :  { %v6075_v44 = vpop.permute.xlu1 %6074 }
0x2811   :  { %10701 = vpow2.f32 %v5986_v43  ;;  %10276 = vmatpush3.msra.mxu1 %v6075_v44 }
0x2812   :  { %10291 = vmatprep.subr.mxu1 %v10803_v23 }
0x2814   :  { %v6160_v2 = vpop.permute.xlu1 %6159 }
0x2815   :  { %v6176_v17 = vsel %vm234_vm2, %v11782_v20, %v6160_v2  ;;  %v6276_v20 = vld [vmem:[%s12515_s19 + $0x18] sm:$0xff] }
0x2818   :  { %v6167_v5 = vpop.permute.xlu1 %6166 }
0x2819   :  { %v6177_v24 = vsel %vm1588_vm4, %v6176_v17, %v6167_v5 }
0x281a   :  { %v10700_v63 = vpop.eup %10699 }
0x281b   :  { %v5988_v15 = vsel %vm3788_vm7, %v10700_v63, 0.0 }
0x281c   :  { %5989 = vadd.xlane.f32.xlu0 %v5988_v15 }
0x281e   :  { %v10702_v46 = vpop.eup %10701 }
0x281f   :  { %v5991_v16 = vsel %vm3788_vm7, %v10702_v46, 0.0 }
0x2820   :  { %5992 = vadd.xlane.f32.xlu0 %v5991_v16  ;;  %v9466_v16 = vld [vmem:[%s12417_s11 + $0x30] sm:$0xff] }
0x2836   :  { %5998 = vrot.lane.b32.xlu0 %v11719_v3, %s12513_s10  ;;  %v6182_v3 = vld [vmem:[%s12514_s20 + $0x18] sm:$0xff] }
0x28a5   :  { %v5990_v47 = vpop.xlane.xlu0 %5989 }
0x28a6   :  { %10703 = vrcp.f32 %v5990_v47  ;;  %v9465_v47 = vld [vmem:[%s12417_s11 + $0x28] sm:$0xff] }
0x28a9   :  { %v5993_v49 = vpop.xlane.xlu0 %5992 }
0x28aa   :  { %10705 = vrcp.f32 %v5993_v49  ;;  %v9464_v49 = vld [vmem:[%s12417_s11 + $0x20] sm:$0xff] }
0x28ad   :  { %v5999_v1 = vpop.permute.xlu0 %5998 }
0x28ae   :  { %10271 = vmatpush3.msra.mxu0 %v5999_v1 }
0x28af   :  { %10280 = vmatprep.subr.mxu0 %v10803_v23 }
0x28b3   :  { %v10704_v0 = vpop.eup %10703 }
0x28b4   :  { %v5996_v50 = vmul.f32 %v10704_v0, %v10700_v63 }
0x28b6   :  { %10273 = vmatmul.mubr.msk.f32.vlgmr.msra.gmra.mxu0 %vm234_vm2, %v5996_v50 }
0x28b7   :  { %v10706_v51 = vpop.eup %10705  ;;  %10288 = vmatprep.mubr.msk.f32.mxu0 %vm10804_vm1, %v10803_v23  ;;  %10281 = vmatpush3.msra.mxu0 %v6182_v3 }
0x28b8   :  { %v5997_v52 = vmul.f32 %v10706_v51, %v10702_v46  ;;  %10282 = vmatprep.subr.mxu0 %v10803_v23  ;;  %v9467_v46 = vld [vmem:[%s12417_s11 + $0x38] sm:$0xff]  ;;  %s12521_s11 = sld [smem:[#allocation20_spill]] }
0x28b9   :  { %10283 = vmatpush3.msra.mxu0 %v6181_v53 }
0x28ba   :  { %10278 = vmatmul.mubr.msk.f32.vlgmr.msra.gmra.mxu1 %vm234_vm2, %v5997_v52  ;;  %10284 = vmatprep.subr.mxu0 %v10803_v23  ;;  %v9463_v52 = vld [vmem:[%s12419_s13 + $0x1] ss:$0 sm:$0xff] }
0x28bb   :  { %10299 = vmatprep.mubr.msk.f32.mxu1 %vm10804_vm1, %v10803_v23  ;;  %10285 = vmatpush3.msra.mxu0 %v6180_v38 }
0x28bc   :  { %10286 = vmatprep.subr.mxu0 %v10803_v23  ;;  %10292 = vmatpush3.msra.mxu1 %v6276_v20 }
0x28bd   :  { %10287 = vmatpush3.msra.mxu0 %v6179_v55  ;;  %10293 = vmatprep.subr.mxu1 %v10803_v23 }
0x28be   :  { %10302 = vmatprep.subr.mxu0 %v10803_v23  ;;  %10294 = vmatpush3.msra.mxu1 %v6275_v9 }
0x28bf   :  { %10295 = vmatprep.subr.mxu1 %v10803_v23 }
0x2976   :  { %v6070_v57 = vpop.f32.mrf.mxu0 }
0x2978   :  { %v10274_v59 = vpop.f32.mrf.mxu0 }
0x297a   :  { %v6146_v60 = vpop.f32.mrf.mxu1 }
0x297b   :  { %v6171_v62 = vrot.slane %v6146_v60, 7 }
0x297c   :  { %v10279_v61 = vpop.f32.mrf.mxu1 }
0x297d   :  { %v6172_v41 = vsel %vm4522_vm10, %v6171_v62, %v6070_v57 }
0x297e   :  { %6173 = vrot.lane.b32.xlu1 %v6172_v41, %s12511_s21 }
0x29f0   :  { %v6174_v6 = vpop.permute.xlu1 %6173 }
0x29f1   :  { %v6178_v58 = vsel %vm1591_vm3, %v6177_v24, %v6174_v6 }
0x29f2   :  { %10289 = vmatmul.mubr.msk.f32.vlgmr.msra.gmra.mxu0 %vm84_vm0, %v6178_v58 }
0x29f3   :  { %10318 = vmatprep.mubr.msk.f32.mxu0 %vm10804_vm1, %v10803_v23  ;;  %10303 = vmatpush3.msra.mxu0 %v6358_v11 }
0x29f4   :  { %10304 = vmatprep.subr.mxu0 %v10803_v23 }
0x29f5   :  { %10305 = vmatpush3.msra.mxu0 %v6357_v12 }
0x29f6   :  { %10306 = vmatprep.subr.mxu0 %v10803_v23 }
0x29f7   :  { %10307 = vmatpush3.msra.mxu0 %v6356_v13 }
0x29f8   :  { %10308 = vmatprep.subr.mxu0 %v10803_v23 }
0x29f9   :  { %10309 = vmatpush3.msra.mxu0 %v6355_v25 }
0x29fa   :  { %10310 = vmatprep.subr.mxu0 %v10803_v23 }
0x29fb   :  { %10311 = vmatpush3.msra.mxu0 %v6354_v14 }
0x29fc   :  { %10312 = vmatprep.subr.mxu0 %v10803_v23 }
0x29fd   :  { %10313 = vmatpush3.msra.mxu0 %v6353_v19 }
0x29fe   :  { %10314 = vmatprep.subr.mxu0 %v10803_v23 }
0x29ff   :  { %10315 = vmatpush3.msra.mxu0 %v6352_v32 }
0x2a00   :  { %10316 = vmatprep.subr.mxu0 %v10803_v23 }
0x2a01   :  { %10317 = vmatpush3.msra.mxu0 %v6351_v34 }
0x2a02   :  { %10342 = vmatprep.subr.mxu0 %v10803_v23 }
0x2ab2   :  { %v6252_v4 = vpop.f32.mrf.mxu0 }
0x2ab3   :  { %v6256_v48 = vadd.f32 %v6252_v4, %v11692_v42  ;;  %v6274_v42 = vld [vmem:[%s12515_s19 + $0x8] sm:$0xff] }
0x2ab4   :  { %v10290_v7 = vpop.f32.mrf.mxu0  ;;  %10296 = vmatpush3.msra.mxu1 %v6274_v42 }
0x2ab5   :  { %v6258_v8 = vmul.f32 %v6256_v48, %v6256_v48  ;;  %10297 = vmatprep.subr.mxu1 %v10803_v23 }
0x2ab6   :  { %10298 = vmatpush3.msra.mxu1 %v6273_v10 }
0x2ab7   :  { %v6259_v45 = vsel %vm3667_vm6, %v6258_v8, 0.0  ;;  %10321 = vmatprep.subr.mxu1 %v10803_v23 }
0x2ab8   :  { %6260 = vadd.xlane.f32.xlu0 %v6259_v45 }
0x2b41   :  { %v6261_v22 = vpop.xlane.xlu0 %6260 }
0x2b42   :  { %v6262_v26 = vmul.f32 0.03125, %v6261_v22 }
0x2b44   :  { %v6263_v27 = vadd.f32 1e-06, %v6262_v26 }
0x2b46   :  { %10707 = vrsqrt.f32 %v6263_v27 }
0x2b53   :  { %v10708_v28 = vpop.eup %10707 }
0x2b54   :  { %v6265_v30 = vmul.f32 %v10708_v28, %v6256_v48 }
0x2b56   :  { %v6272_v31 = vmul.f32 %v9459_v29, %v6265_v30 }
0x2b58   :  { %10300 = vmatmul.mubr.msk.f32.vlgmr.msra.gmra.mxu1 %vm84_vm0, %v6272_v31 }
0x2b59   :  { %10329 = vmatprep.mubr.msk.f32.mxu1 %vm10804_vm1, %v10803_v23  ;;  %10322 = vmatpush3.msra.mxu1 %v9467_v46 }
0x2b5a   :  { %10323 = vmatprep.subr.mxu1 %v10803_v23 }
0x2b5b   :  { %10324 = vmatpush3.msra.mxu1 %v9466_v16 }
0x2b5c   :  { %10325 = vmatprep.subr.mxu1 %v10803_v23 }
0x2b5d   :  { %10326 = vmatpush3.msra.mxu1 %v9465_v47 }
0x2b5e   :  { %10327 = vmatprep.subr.mxu1 %v10803_v23 }
0x2b5f   :  { %10328 = vmatpush3.msra.mxu1 %v9464_v49 }
0x2b60   :  { %10332 = vmatprep.subr.mxu1 %v10803_v23 }
0x2c18   :  { %v6346_v37 = vpop.f32.mrf.mxu1 }
0x2c19   :  { %v6350_v40 = vmax.f32 %v6346_v37, 0.0 }
0x2c1a   :  { %v10301_v21 = vpop.f32.mrf.mxu1 }
0x2c1b   :  { %10319 = vmatmul.mubr.msk.f32.vlgmr.msra.gmra.mxu0 %vm1801_vm5, %v6350_v40 }
0x2c1c   :  { %10344 = vmatprep.mubr.msk.f32.mxu0 %vm10804_vm1, %v10803_v23 }
0x2cdb   :  { %v6428_v18 = vpop.f32.mrf.mxu0 }
0x2cdc   :  { %v11965_v43 = vadd.f32 %v6428_v18, %v6256_v48 }
0x2cdd   :  { %v10320_v44 = vpop.f32.mrf.mxu0 }
0x2cde   :  { %v6435_v63 = vmul.f32 %v11965_v43, %v11965_v43 }
0x2ce0   :  { %v6436_v15 = vsel %vm3667_vm6, %v6435_v63, 0.0 }
0x2ce1   :  { %6437 = vadd.xlane.f32.xlu1 %v6436_v15 }
0x2d6a   :  { %v6438_v1 = vpop.xlane.xlu1 %6437 }
0x2d6b   :  { %v6439_v0 = vmul.f32 0.03125, %v6438_v1 }
0x2d6d   :  { %v6440_v50 = vadd.f32 1e-06, %v6439_v0 }
0x2d6f   :  { %10709 = vrsqrt.f32 %v6440_v50 }
0x2d7c   :  { %v10710_v51 = vpop.eup %10709 }
0x2d7d   :  { %v6442_v3 = vmul.f32 %v10710_v51, %v11965_v43 }
0x2d7f   :  { %v6449_v53 = vmul.f32 %v9463_v52, %v6442_v3 }
0x2d81   :  { %10330 = vmatmul.mubr.msk.f32.vlgmr.msra.gmra.mxu1 %vm84_vm0, %v6449_v53 }
0x2d82   :  { %10334 = vmatprep.mubr.msk.f32.mxu1 %vm10804_vm1, %v10803_v23 }
0x2e41   :  { %v6524_v38 = vpop.f32.mrf.mxu1 }
0x2e42   :  { %v6535_v55 = vrot.slane %v6524_v38, %v11007_v33 }
0x2e43   :  { %v10331_v57 = vpop.f32.mrf.mxu1 }
0x2e44   :  { %v6536_v59 = vcombine.high %v6535_v55, %v6535_v55  ;;  %v6543_v60 = vrot.slane %v6535_v55, %v11007_v33 }
0x2e46   :  { %v6550_v62 = vrot.slane %v6536_v59, %v11007_v33  ;;  %6553 = vrot.lane.b32.xlu1 %v6543_v60, %s12512_s7  ;;  %v6582_v14 = vrot.slane %v6543_v60, %v11015_v36 }
0x2e48   :  { %6560 = vrot.lane.b32.xlu0 %v6550_v62, %s12512_s7  ;;  %v6663_v25 = vrot.slane %v6550_v62, %v11015_v36 }
0x2eb8   :  { %v6554_v61 = vpop.permute.xlu1 %6553 }
0x2eb9   :  { %v6556_v41 = vmul.f32 %v6554_v61, %v6543_v60 }
0x2eba   :  { %v6561_v2 = vpop.permute.xlu0 %6560 }
0x2ebb   :  { %v6745_v5 = vrot.slane %v6556_v41, %v11015_v36  ;;  %v6563_v17 = vmul.f32 %v6561_v2, %v6550_v62  ;;  %v6557_v6 = vsel %vm3788_vm7, %v6556_v41, 0.0 }
0x2ebd   :  { %v6756_v24 = vrot.slane %v6563_v17, %v11015_v36  ;;  %6746 = vrot.lane.b32.xlu1 %v6745_v5, %s12501_s25  ;;  %v6564_v58 = vsel %vm3788_vm7, %v6563_v17, 0.0 }
0x2ebf   :  { %6757 = vrot.lane.b32.xlu0 %v6756_v24, %s12501_s25 }
0x2ec1   :  { %6929 = vrot.lane.b32.xlu1 %v6745_v5, %s12504_s5 }
0x2ec3   :  { %6935 = vrot.lane.b32.xlu0 %v6756_v24, %s12504_s5 }
0x2ec5   :  { %7107 = vrot.lane.b32.xlu1 %v6745_v5, %s12507_s2 }
0x2ec7   :  { %7113 = vrot.lane.b32.xlu0 %v6756_v24, %s12507_s2 }
0x2ee6   :  { %6558 = vadd.xlane.f32.xlu0 %v6557_v6 }
0x2ee9   :  { %6565 = vadd.xlane.f32.xlu1 %v6564_v58 }
0x2f2f   :  { %v6747_v4 = vpop.permute.xlu1 %6746 }
0x2f30   :  { %v6749_v48 = vsel %vm3788_vm7, %v6747_v4, 0.0 }
0x2f31   :  { %6750 = vadd.xlane.f32.xlu0 %v6749_v48  ;;  %v6758_v7 = vpop.permute.xlu0 %6757 }
0x2f32   :  { %v6760_v45 = vsel %vm3788_vm7, %v6758_v7, 0.0 }
0x2f33   :  { %v6930_v8 = vpop.permute.xlu1 %6929 }
0x2f34   :  { %v6932_v20 = vsel %vm3788_vm7, %v6930_v8, 0.0 }
0x2f35   :  { %6761 = vadd.xlane.f32.xlu0 %v6760_v45  ;;  %v6936_v9 = vpop.permute.xlu0 %6935  ;;  %6933 = vadd.xlane.f32.xlu1 %v6932_v20 }
0x2f36   :  { %v6938_v10 = vsel %vm3788_vm7, %v6936_v9, 0.0 }
0x2f37   :  { %v7108_v42 = vpop.permute.xlu1 %7107 }
0x2f38   :  { %v7110_v11 = vsel %vm3788_vm7, %v7108_v42, 0.0 }
0x2f39   :  { %6939 = vadd.xlane.f32.xlu0 %v6938_v10  ;;  %v7114_v12 = vpop.permute.xlu0 %7113  ;;  %7111 = vadd.xlane.f32.xlu1 %v7110_v11 }
0x2f3a   :  { %v7116_v13 = vsel %vm3788_vm7, %v7114_v12, 0.0 }
0x2f3d   :  { %7117 = vadd.xlane.f32.xlu0 %v7116_v13 }
0x2f4a   :  { %6664 = vrot.lane.b32.xlu1 %v6663_v25, %s12499_s0 }
0x2f4e   :  { %6852 = vrot.lane.b32.xlu1 %v6663_v25, %s12502_s8 }
0x2f52   :  { %6775 = vrot.lane.b32.xlu1 %v6582_v14, %s12502_s8 }
0x2f53   :  { %6583 = vrot.lane.b32.xlu0 %v6582_v14, %s12499_s0 }
0x2f56   :  { %6953 = vrot.lane.b32.xlu1 %v6582_v14, %s12505_s28 }
0x2f57   :  { %7030 = vrot.lane.b32.xlu0 %v6663_v25, %s12505_s28 }
0x2f5a   :  { %7131 = vrot.lane.b32.xlu1 %v6582_v14, %s12508_s29 }
0x2f5b   :  { %7208 = vrot.lane.b32.xlu0 %v6663_v25, %s12508_s29 }
0x2f6f   :  { %v6559_v19 = vpop.xlane.xlu0 %6558 }
0x2f70   :  { %v6567_v22 = vsub.f32 %v6559_v19, %v6559_v19 }
0x2f72   :  { %v6566_v26 = vpop.xlane.xlu1 %6565  ;;  %v6569_v27 = vmul.f32 1.442695, %v6567_v22 }
0x2f73   :  { %v6568_v28 = vsub.f32 %v6566_v26, %v6566_v26 }
0x2f74   :  { %10711 = vpow2.f32 %v6569_v27 }
0x2f75   :  { %v6571_v29 = vmul.f32 1.442695, %v6568_v28 }
0x2f77   :  { %10713 = vpow2.f32 %v6571_v29 }
0x2f81   :  { %v10712_v30 = vpop.eup %10711 }
0x2f82   :  { %10715 = vrcp.f32 %v10712_v30 }
0x2f84   :  { %v10714_v32 = vpop.eup %10713 }
0x2f85   :  { %10717 = vrcp.f32 %v10714_v32 }
0x2f8f   :  { %v10716_v52 = vpop.eup %10715 }
0x2f90   :  { %v6577_v57 = vmul.f32 %v10716_v52, %v10712_v30  ;;  %v9488_v30 = vld [vmem:[%s12418_s12 + $0x38] sm:$0xff] }
0x2f92   :  { %v10718_v59 = vpop.eup %10717 }
0x2f93   :  { %v6578_v61 = vmul.f32 %v10718_v59, %v10714_v32  ;;  %v9486_v32 = vld [vmem:[%s12418_s12 + $0x28] sm:$0xff] }
0x2fba   :  { %v6751_v31 = vpop.xlane.xlu0 %6750 }
0x2fbb   :  { %v6763_v34 = vsub.f32 %v6751_v31, %v6751_v31  ;;  %v9487_v31 = vld [vmem:[%s12418_s12 + $0x30] sm:$0xff] }
0x2fbd   :  { %v6765_v37 = vmul.f32 1.442695, %v6763_v34  ;;  %v9485_v34 = vld [vmem:[%s12418_s12 + $0x20] sm:$0xff] }
0x2fbe   :  { %v6762_v40 = vpop.xlane.xlu0 %6761  ;;  %v6934_v21 = vpop.xlane.xlu1 %6933 }
0x2fbf   :  { %10719 = vpow2.f32 %v6765_v37  ;;  %v6764_v18 = vsub.f32 %v6762_v40, %v6762_v40  ;;  %v6941_v44 = vsub.f32 %v6934_v21, %v6934_v21  ;;  %v9500_v21 = vld [vmem:[%s12421_s15 + $0x38] sm:$0xff] }
0x2fc1   :  { %v6767_v63 = vmul.f32 1.442695, %v6764_v18  ;;  %v6943_v15 = vmul.f32 1.442695, %v6941_v44 }
0x2fc2   :  { %v6940_v46 = vpop.xlane.xlu0 %6939  ;;  %v7112_v16 = vpop.xlane.xlu1 %7111 }
0x2fc3   :  { %10721 = vpow2.f32 %v6767_v63  ;;  %v6942_v47 = vsub.f32 %v6940_v46, %v6940_v46  ;;  %v7119_v49 = vsub.f32 %v7112_v16, %v7112_v16 }
0x2fc4   :  { %10723 = vpow2.f32 %v6943_v15 }
0x2fc5   :  { %v6945_v1 = vmul.f32 1.442695, %v6942_v47  ;;  %v7121_v0 = vmul.f32 1.442695, %v7119_v49 }
0x2fc6   :  { %v7118_v50 = vpop.xlane.xlu0 %7117  ;;  %v6665_v51 = vpop.permute.xlu1 %6664 }
0x2fc7   :  { %10725 = vpow2.f32 %v6945_v1  ;;  %v7120_v3 = vsub.f32 %v7118_v50, %v7118_v50 }
0x2fc8   :  { %10727 = vpow2.f32 %v7121_v0 }
0x2fc9   :  { %v7123_v53 = vmul.f32 1.442695, %v7120_v3 }
0x2fca   :  { %v6584_v38 = vpop.permute.xlu0 %6583  ;;  %v6853_v55 = vpop.permute.xlu1 %6852 }
0x2fcb   :  { %10729 = vpow2.f32 %v7123_v53  ;;  %10333 = vmatpush3.msk.msra.mxu1 %vm3821_vm8, %v6584_v38 }
0x2fcc   :  { %v10720_v60 = vpop.eup %10719  ;;  %10335 = vmatmul.mubr.msk.f32.vlgmr.msra.gmra.mxu1 %vm3817_vm9, %v6577_v57  ;;  %10337 = vmatprep.subr.mxu1 %v10803_v23 }
0x2fcd   :  { %10731 = vrcp.f32 %v10720_v60  ;;  %10338 = vmatpush3.msk.msra.mxu1 %vm3821_vm8, %v6665_v51  ;;  %10339 = vmatprep.mubr.msk.f32.mxu1 %vm10804_vm1, %v10803_v23 }
0x2fce   :  { %v6776_v62 = vpop.permute.xlu1 %6775  ;;  %10347 = vmatprep.subr.mxu1 %v10803_v23  ;;  %v7031_v8 = vpop.permute.xlu0 %7030 }
0x2fcf   :  { %10343 = vmatpush3.msk.msra.mxu0 %vm3821_vm8, %v6776_v62 }
0x2fd0   :  { %v10722_v41 = vpop.eup %10721  ;;  %10340 = vmatmul.mubr.msk.f32.vlgmr.msra.gmra.mxu1 %vm3817_vm9, %v6578_v61  ;;  %10352 = vmatprep.subr.mxu0 %v10803_v23 }
0x2fd1   :  { %v10724_v2 = vpop.eup %10723  ;;  %10733 = vrcp.f32 %v10722_v41  ;;  %10348 = vmatpush3.msk.msra.mxu1 %vm3821_vm8, %v6853_v55  ;;  %10349 = vmatprep.mubr.msk.f32.mxu1 %vm10804_vm1, %v10803_v23 }
0x2fd2   :  { %10735 = vrcp.f32 %v10724_v2  ;;  %10357 = vmatprep.subr.mxu1 %v10803_v23  ;;  %v6954_v4 = vpop.permute.xlu1 %6953  ;;  %v7209_v13 = vpop.permute.xlu0 %7208 }
0x2fd4   :  { %v10726_v5 = vpop.eup %10725 }
0x2fd5   :  { %v10728_v17 = vpop.eup %10727  ;;  %10737 = vrcp.f32 %v10726_v5 }
0x2fd6   :  { %10739 = vrcp.f32 %v10728_v17  ;;  %v7132_v42 = vpop.permute.xlu1 %7131 }
0x2fd8   :  { %v10730_v24 = vpop.eup %10729 }
0x2fd9   :  { %10741 = vrcp.f32 %v10730_v24 }
0x2fda   :  { %v10732_v6 = vpop.eup %10731 }
0x2fdb   :  { %v6773_v58 = vmul.f32 %v10732_v6, %v10720_v60 }
0x2fdd   :  { %10345 = vmatmul.mubr.msk.f32.vlgmr.msra.gmra.mxu0 %vm3817_vm9, %v6773_v58 }
0x2fde   :  { %v10734_v48 = vpop.eup %10733  ;;  %10353 = vmatpush3.msk.msra.mxu0 %vm3821_vm8, %v6954_v4  ;;  %10354 = vmatprep.mubr.msk.f32.mxu0 %vm10804_vm1, %v10803_v23  ;;  %v9494_v4 = vld [vmem:[%s12420_s14 + $0x30] sm:$0xff] }
0x2fdf   :  { %v10736_v7 = vpop.eup %10735  ;;  %10362 = vmatprep.subr.mxu0 %v10803_v23  ;;  %v6774_v45 = vmul.f32 %v10734_v48, %v10722_v41  ;;  %v9499_v41 = vld [vmem:[%s12421_s15 + $0x30] sm:$0xff]  ;;  %v9492_v48 = vld [vmem:[%s12420_s14 + $0x20] sm:$0xff] }
0x2fe0   :  { %v6951_v20 = vmul.f32 %v10736_v7, %v10724_v2  ;;  %v9498_v2 = vld [vmem:[%s12421_s15 + $0x28] sm:$0xff] }
0x2fe1   :  { %10350 = vmatmul.mubr.msk.f32.vlgmr.msra.gmra.mxu1 %vm3817_vm9, %v6774_v45 }
0x2fe2   :  { %v10738_v9 = vpop.eup %10737  ;;  %10355 = vmatmul.mubr.msk.f32.vlgmr.msra.gmra.mxu0 %vm3817_vm9, %v6951_v20  ;;  %10358 = vmatpush3.msk.msra.mxu1 %vm3821_vm8, %v7031_v8 }
0x2fe3   :  { %v10740_v10 = vpop.eup %10739  ;;  %10363 = vmatpush3.msk.msra.mxu0 %vm3821_vm8, %v7132_v42  ;;  %10359 = vmatprep.mubr.msk.f32.mxu1 %vm10804_vm1, %v10803_v23  ;;  %v6952_v11 = vmul.f32 %v10738_v9, %v10726_v5  ;;  %v9497_v5 = vld [vmem:[%s12421_s15 + $0x20] sm:$0xff]  ;;  %s10820_s15 = smov [#allocation2]  }
0x2fe4   :  { %10364 = vmatprep.mubr.msk.f32.mxu0 %vm10804_vm1, %v10803_v23  ;;  %10367 = vmatprep.subr.mxu1 %v10803_v23  ;;  %v7129_v12 = vmul.f32 %v10740_v10, %v10728_v17  ;;  %v9491_v9 = vld [vmem:[%s12423_s17 + $0x1] ss:$0 sm:$0xff]  ;;  %s9308_s13 = sshll.u32 %s10820_s15, 4  ;;  %s9309_s13 = int_to_ptr.vmem [resolvable:$true] %s9308_s13 }
0x2fe5   :  { %10360 = vmatmul.mubr.msk.f32.vlgmr.msra.gmra.mxu1 %vm3817_vm9, %v6952_v11  ;;  %10372 = vmatprep.subr.mxu0 %v10803_v23  ;;  %s10781_s0 = scalar_lea.vmem %s9309_s13, 32  ;;  %p10786_p1 = scmp.lt.s32.totalorder %s9309_s13, %s9309_s13 }
0x2fe6   :  { %v10742_v25 = vpop.eup %10741  ;;  %10365 = vmatmul.mubr.msk.f32.vlgmr.msra.gmra.mxu0 %vm3817_vm9, %v7129_v12  ;;  %10368 = vmatpush3.msk.msra.mxu1 %vm3821_vm8, %v7209_v13  ;;  %p10782_p0 = scmp.ne.s32.totalorder %s9309_s13, %s10781_s0  ;;  %p10787_p2 = scmp.lt.s32.totalorder %s10781_s0, %s10781_s0 }
0x2fe7   :  { %10369 = vmatprep.mubr.msk.f32.mxu1 %vm10804_vm1, %v10803_v23  ;;  %v7130_v14 = vmul.f32 %v10742_v25, %v10730_v24  ;;  %10380 = vmatprep.mubr.msk.f32.mxu0 %vm10804_vm1, %v10803_v23 }
0x2fe8   :  { %10383 = vmatprep.subr.mxu1 %v10803_v23  ;;  %10373 = vmatpush3.msra.mxu0 %v9488_v30  ;;  %p10788_p3 = por %p10787_p2, %p10786_p1 }
0x2fe9   :  { %10370 = vmatmul.mubr.msk.f32.vlgmr.msra.gmra.mxu1 %vm3817_vm9, %v7130_v14  ;;  %10374 = vmatprep.subr.mxu0 %v10803_v23 }
0x2fea   :  { %10391 = vmatprep.mubr.msk.f32.mxu1 %vm10804_vm1, %v10803_v23  ;;  %10375 = vmatpush3.msra.mxu0 %v9487_v31  ;;  %p10789_p4 = pnand %p10788_p3, %p10782_p0 }
0x2feb   :  { %10376 = vmatprep.subr.mxu0 %v10803_v23 }
0x2fec   :  { %10377 = vmatpush3.msra.mxu0 %v9486_v32 }
0x2fed   :  { %10378 = vmatprep.subr.mxu0 %v10803_v23 }
0x2fee   :  { %10379 = vmatpush3.msra.mxu0 %v9485_v34 }
0x2fef   :  { %10394 = vmatprep.subr.mxu0 %v9500_v21 }
0x308c   :  { %v6656_v19 = vpop.f32.mrf.mxu1 }
0x308e   :  { %v10336_v22 = vpop.f32.mrf.mxu1 }
0x3090   :  { %v6737_v26 = vpop.f32.mrf.mxu1 }
0x3091   :  { %v7287_v27 = vrot.slane %v6737_v26, 7 }
0x3092   :  { %v10341_v28 = vpop.f32.mrf.mxu1 }
0x3093   :  { %v7288_v29 = vsel %vm4522_vm10, %v7287_v27, %v6656_v19 }
0x309d   :  { %v6848_v37 = vpop.f32.mrf.mxu0 }
0x309f   :  { %v10346_v40 = vpop.f32.mrf.mxu0 }
0x30a1   :  { %v6925_v18 = vpop.f32.mrf.mxu1 }
0x30a2   :  { %v7292_v44 = vrot.slane %v6925_v18, 7  ;;  %v7026_v63 = vpop.f32.mrf.mxu0 }
0x30a3   :  { %v10351_v15 = vpop.f32.mrf.mxu1 }
0x30a4   :  { %v10356_v46 = vpop.f32.mrf.mxu0  ;;  %v7293_v16 = vsel %vm4522_vm10, %v7292_v44, %v6848_v37 }
0x30a5   :  { %7294 = vrot.lane.b32.xlu0 %v7293_v16, %s12509_s27  ;;  %v7103_v47 = vpop.f32.mrf.mxu1 }
0x30a6   :  { %v7204_v49 = vpop.f32.mrf.mxu0  ;;  %v7299_v1 = vrot.slane %v7103_v47, 7 }
0x30a7   :  { %v10361_v0 = vpop.f32.mrf.mxu1 }
0x30a8   :  { %v10366_v50 = vpop.f32.mrf.mxu0  ;;  %v7300_v51 = vsel %vm4522_vm10, %v7299_v1, %v7026_v63 }
0x30a9   :  { %7301 = vrot.lane.b32.xlu1 %v7300_v51, %s12510_s24  ;;  %v7281_v52 = vpop.f32.mrf.mxu1 }
0x30aa   :  { %v7306_v3 = vrot.slane %v7281_v52, 7 }
0x30ab   :  { %v10371_v53 = vpop.f32.mrf.mxu1 }
0x30ac   :  { %v7307_v38 = vsel %vm4522_vm10, %v7306_v3, %v7204_v49 }
0x30ad   :  { %7308 = vrot.lane.b32.xlu0 %v7307_v38, %s12511_s21 }
0x3117   :  { %v7295_v55 = vpop.permute.xlu0 %7294 }
0x3118   :  { %v7311_v59 = vsel %vm234_vm2, %v7288_v29, %v7295_v55 }
0x311b   :  { %v7302_v57 = vpop.permute.xlu1 %7301 }
0x311c   :  { %v7312_v60 = vsel %vm1588_vm4, %v7311_v59, %v7302_v57 }
0x311f   :  { %v7309_v62 = vpop.permute.xlu0 %7308 }
0x3120   :  { %v7313_v61 = vsel %vm1591_vm3, %v7312_v60, %v7309_v62 }
0x3121   :  { %10381 = vmatmul.mubr.msk.f32.vlgmr.msra.gmra.mxu0 %vm84_vm0, %v7313_v61 }
0x3122   :  { %10395 = vmatpush3.msra.mxu0 %v9500_v21  ;;  %10402 = vmatprep.mubr.msk.f32.mxu0 %vm84_vm0, %v11681_v54 }
0x3123   :  { %10396 = vmatprep.subr.mxu0 %v9499_v41 }
0x3124   :  { %10397 = vmatpush3.msra.mxu0 %v9499_v41 }
0x3125   :  { %10398 = vmatprep.subr.mxu0 %v9498_v2 }
0x3126   :  { %10399 = vmatpush3.msra.mxu0 %v9498_v2 }
0x3127   :  { %10400 = vmatprep.subr.mxu0 %v9497_v5 }
0x3128   :  { %10401 = vmatpush3.msra.mxu0 %v9497_v5 }
0x3129   :  { %10403 = vmatmul.mubr.msk.f32.vlgmr.msra.gmra.mxu0 %vm84_vm0, %v11685_v56  ;;  %10415 = vmatprep.subr.mxu0 %v10803_v23  ;;  %v9495_v56 = vld [vmem:[%s12420_s14 + $0x38] sm:$0xff] }
0x312a   :  { %10417 = vmatprep.mubr.msk.f32.mxu0 %vm10804_vm1, %v10803_v23  ;;  %10384 = vmatpush3.msra.mxu1 %v9495_v56 }
0x312b   :  { %10385 = vmatprep.subr.mxu1 %v10803_v23 }
0x312c   :  { %10386 = vmatpush3.msra.mxu1 %v9494_v4 }
0x312d   :  { %10387 = vmatprep.subr.mxu1 %v10803_v23 }
0x31e1   :  { %v7388_v54 = vpop.f32.mrf.mxu0 }
0x31e2   :  { %v12110_v17 = vadd.f32 %v7388_v54, %v11965_v43  ;;  %v9493_v43 = vld [vmem:[%s12420_s14 + $0x28] sm:$0xff]  ;;  %s12518_s14 = sld [smem:[#allocation17_spill]] }
0x31e3   :  { %v10382_v24 = vpop.f32.mrf.mxu0  ;;  %10388 = vmatpush3.msra.mxu1 %v9493_v43 }
0x31e4   :  { %v7395_v6 = vmul.f32 %v12110_v17, %v12110_v17  ;;  %10389 = vmatprep.subr.mxu1 %v10803_v23 }
0x31e5   :  { %10390 = vmatpush3.msra.mxu1 %v9492_v48 }
0x31e6   :  { %v7396_v58 = vsel %vm3667_vm6, %v7395_v6, 0.0  ;;  %10405 = vmatprep.subr.mxu1 %v10803_v23 }
0x31e7   :  { %7397 = vadd.xlane.f32.xlu1 %v7396_v58 }
0x31e9   :  { %v12134_v42 = vpop.f32.mrf.mxu0 }
0x31eb   :  { %v12137_v12 = vpop.f32.mrf.mxu0 }
0x3270   :  { %v7398_v7 = vpop.xlane.xlu1 %7397 }
0x3271   :  { %v7399_v8 = vmul.f32 0.03125, %v7398_v7 }
0x3273   :  { %v7400_v45 = vadd.f32 1e-06, %v7399_v8 }
0x3275   :  { %10743 = vrsqrt.f32 %v7400_v45 }
0x3282   :  { %v10744_v20 = vpop.eup %10743 }
0x3283   :  { %v7402_v10 = vmul.f32 %v10744_v20, %v12110_v17 }
0x3285   :  { %v7409_v11 = vmul.f32 %v9491_v9, %v7402_v10 }
0x3287   :  { %10392 = vmatmul.mubr.msk.f32.vlgmr.msra.gmra.mxu1 %vm84_vm0, %v7409_v11 }
0x3288   :  { %10406 = vmatpush3.xpose.msk.msra.mxu1 %vm234_vm2, %v12137_v12  ;;  %10407 = vmatprep.mubr.msk.f32.mxu1 %vm10804_vm1, %v10803_v23 }
0x3289   :  { %10410 = vmatprep.subr.mxu1 %v10803_v23 }
0x3347   :  { %v7484_v13 = vpop.f32.mrf.mxu1 }
0x3348   :  { %v7575_v25 = vrot.slane %v7484_v13, %v11007_v33 }
0x3349   :  { %v10393_v14 = vpop.f32.mrf.mxu1 }
0x334a   :  { %v7576_v19 = vcombine.high %v7575_v25, %v7575_v25  ;;  %v7583_v22 = vrot.slane %v7575_v25, %v11007_v33 }
0x334c   :  { %10408 = vmatmul.mubr.msk.f32.vlgmr.msra.gmra.mxu1 %vm234_vm2, %v7583_v22  ;;  %v7590_v26 = vrot.slane %v7576_v19, %v11007_v33  ;;  %v12177_v1 = vrot.slane %v7583_v22, %v11015_v36 }
0x334d   :  { %10411 = vmatpush3.xpose.msk.msra.mxu1 %vm234_vm2, %v12134_v42  ;;  %10412 = vmatprep.mubr.msk.f32.mxu1 %vm10804_vm1, %v10803_v23 }
0x334e   :  { %10420 = vmatprep.subr.mxu1 %v10803_v23  ;;  %v12168_v49 = vrot.slane %v7590_v26, %v11015_v36 }
0x3350   :  { %10413 = vmatmul.mubr.msk.f32.vlgmr.msra.gmra.mxu1 %vm234_vm2, %v7590_v26 }
0x3351   :  { %10422 = vmatprep.mubr.msk.f32.mxu1 %vm10804_vm1, %v10803_v23 }
0x340c   :  { %v7662_v27 = vpop.f32.mrf.mxu1 }
0x340d   :  { %v7663_v32 = vadd.f32 %v7662_v27, %v11013_v35 }
0x340e   :  { %v10409_v28 = vpop.f32.mrf.mxu1 }
0x340f   :  { %v7741_v33 = vsel %vm3788_vm7, %v7663_v32, -inf }
0x3410   :  { %v7737_v29 = vpop.f32.mrf.mxu1 }
0x3411   :  { %v7738_v30 = vadd.f32 %v7737_v29, %v11022_v39 }
0x3412   :  { %v10414_v31 = vpop.f32.mrf.mxu1 }
0x3413   :  { %v7744_v34 = vsel %vm3788_vm7, %v7738_v30, -inf }
0x3414   :  { %7745 = vmax.xlane.f32.xlu0 %v7744_v34 }
0x3418   :  { %7742 = vmax.xlane.f32.xlu0 %v7741_v33 }
0x349d   :  { %v7746_v37 = vpop.xlane.xlu0 %7745 }
0x349e   :  { %v7748_v40 = vsub.f32 %v7738_v30, %v7746_v37 }
0x34a0   :  { %v7751_v21 = vmul.f32 1.442695, %v7748_v40 }
0x34a1   :  { %v7743_v18 = vpop.xlane.xlu0 %7742 }
0x34a2   :  { %10745 = vpow2.f32 %v7751_v21  ;;  %v7747_v44 = vsub.f32 %v7663_v32, %v7743_v18 }
0x34a4   :  { %v7749_v63 = vmul.f32 1.442695, %v7747_v44 }
0x34a6   :  { %10747 = vpow2.f32 %v7749_v63 }
0x34af   :  { %v10746_v15 = vpop.eup %10745 }
0x34b0   :  { %v7756_v46 = vsel %vm3788_vm7, %v10746_v15, 0.0 }
0x34b1   :  { %7757 = vadd.xlane.f32.xlu0 %v7756_v46 }
0x34b3   :  { %v10748_v16 = vpop.eup %10747 }
0x34b4   :  { %v7753_v47 = vsel %vm3788_vm7, %v10748_v16, 0.0 }
0x34b5   :  { %7754 = vadd.xlane.f32.xlu1 %v7753_v47 }
0x34c6   :  { %7763 = vrot.lane.b32.xlu1 %v12137_v12, %s12512_s7 }
0x34c7   :  { %7839 = vrot.lane.b32.xlu0 %v12134_v42, %s12512_s7 }
0x34ca   :  { %8003 = vrot.lane.b32.xlu1 %v12134_v42, %s12501_s25 }
0x34cb   :  { %8001 = vrot.lane.b32.xlu0 %v12168_v49, %s12501_s25 }
0x34ce   :  { %7921 = vrot.lane.b32.xlu1 %v12137_v12, %s12501_s25 }
0x34d2   :  { %7919 = vrot.lane.b32.xlu1 %v12177_v1, %s12501_s25 }
0x353a   :  { %v7758_v0 = vpop.xlane.xlu0 %7757 }
0x353b   :  { %10749 = vrcp.f32 %v7758_v0 }
0x353e   :  { %v7755_v50 = vpop.xlane.xlu1 %7754  ;;  %v7840_v51 = vpop.permute.xlu0 %7839 }
0x353f   :  { %10751 = vrcp.f32 %v7755_v50  ;;  %10421 = vmatpush3.msra.mxu1 %v7840_v51 }
0x3540   :  { %10430 = vmatprep.subr.mxu1 %v10803_v23 }
0x3542   :  { %v7764_v52 = vpop.permute.xlu1 %7763  ;;  %v8002_v59 = vpop.permute.xlu0 %8001 }
0x3543   :  { %10416 = vmatpush3.msra.mxu0 %v7764_v52 }
0x3544   :  { %10425 = vmatprep.subr.mxu0 %v10803_v23 }
0x3546   :  { %v8004_v3 = vpop.permute.xlu1 %8003 }
0x3548   :  { %v10750_v53 = vpop.eup %10749 }
0x3549   :  { %v7762_v38 = vmul.f32 %v10750_v53, %v10746_v15 }
0x354a   :  { %v7922_v55 = vpop.permute.xlu1 %7921 }
0x354b   :  { %10423 = vmatmul.mubr.msk.f32.vlgmr.msra.gmra.mxu1 %vm234_vm2, %v7762_v38 }
0x354c   :  { %v10752_v36 = vpop.eup %10751  ;;  %10431 = vmatpush3.xpose.msk.msra.mxu1 %vm234_vm2, %v8004_v3  ;;  %10432 = vmatprep.mubr.msk.f32.mxu1 %vm10804_vm1, %v10803_v23 }
0x354d   :  { %v7761_v57 = vmul.f32 %v10752_v36, %v10748_v16  ;;  %10440 = vmatprep.subr.mxu1 %v10803_v23 }
0x354e   :  { %v7920_v60 = vpop.permute.xlu1 %7919 }
0x354f   :  { %10418 = vmatmul.mubr.msk.f32.vlgmr.msra.gmra.mxu0 %vm234_vm2, %v7761_v57  ;;  %10433 = vmatmul.mubr.msk.f32.vlgmr.msra.gmra.mxu1 %vm234_vm2, %v8002_v59 }
0x3550   :  { %10426 = vmatpush3.xpose.msk.msra.mxu0 %vm234_vm2, %v7922_v55  ;;  %10427 = vmatprep.mubr.msk.f32.mxu0 %vm10804_vm1, %v10803_v23 }
0x3551   :  { %10435 = vmatprep.subr.mxu0 %v10803_v23  ;;  %10442 = vmatprep.mubr.msk.f32.mxu1 %vm10804_vm1, %v10803_v23 }
0x3553   :  { %10428 = vmatmul.mubr.msk.f32.vlgmr.msra.gmra.mxu0 %vm234_vm2, %v7920_v60 }
0x3554   :  { %10437 = vmatprep.mubr.msk.f32.mxu0 %vm10804_vm1, %v10803_v23 }
0x360b   :  { %v7911_v62 = vpop.f32.mrf.mxu1 }
0x360c   :  { %v8915_v41 = vrot.slane %v7911_v62, 7 }
0x360d   :  { %v10424_v61 = vpop.f32.mrf.mxu1 }
0x360f   :  { %v7835_v2 = vpop.f32.mrf.mxu0  ;;  %v8075_v5 = vpop.f32.mrf.mxu1 }
0x3610   :  { %v12200_v54 = vsel %vm4522_vm10, %v8915_v41, %v7835_v2  ;;  %v8076_v24 = vadd.f32 %v8075_v5, %v11022_v39 }
0x3611   :  { %v10419_v6 = vpop.f32.mrf.mxu0  ;;  %v10434_v58 = vpop.f32.mrf.mxu1 }
0x3612   :  { %v8082_v56 = vsel %vm3788_vm7, %v8076_v24, -inf }
0x3613   :  { %v7993_v4 = vpop.f32.mrf.mxu0  ;;  %8083 = vmax.xlane.f32.xlu0 %v8082_v56 }
0x3614   :  { %v7994_v43 = vadd.f32 %v7993_v4, %v11013_v35 }
0x3615   :  { %v10429_v48 = vpop.f32.mrf.mxu0 }
0x3616   :  { %v8079_v7 = vsel %vm3788_vm7, %v7994_v43, -inf }
0x3617   :  { %8080 = vmax.xlane.f32.xlu1 %v8079_v7 }
0x3628   :  { %8101 = vrot.lane.b32.xlu1 %v12137_v12, %s12500_s26 }
0x362c   :  { %8333 = vrot.lane.b32.xlu1 %v12134_v42, %s12504_s5 }
0x3630   :  { %8255 = vrot.lane.b32.xlu1 %v12137_v12, %s12504_s5 }
0x3634   :  { %8253 = vrot.lane.b32.xlu1 %v12177_v1, %s12504_s5 }
0x369c   :  { %v8084_v8 = vpop.xlane.xlu0 %8083 }
0x369d   :  { %v8086_v45 = vsub.f32 %v8076_v24, %v8084_v8 }
0x369f   :  { %v8089_v10 = vmul.f32 1.442695, %v8086_v45 }
0x36a0   :  { %v8081_v20 = vpop.xlane.xlu1 %8080 }
0x36a1   :  { %v8085_v9 = vsub.f32 %v7994_v43, %v8081_v20 }
0x36a3   :  { %v8087_v11 = vmul.f32 1.442695, %v8085_v9 }
0x36a4   :  { %v8102_v13 = vpop.permute.xlu1 %8101 }
0x36a5   :  { %10753 = vpow2.f32 %v8087_v11  ;;  %10436 = vmatpush3.msra.mxu0 %v8102_v13 }
0x36a6   :  { %10445 = vmatprep.subr.mxu0 %v10803_v23  ;;  %10755 = vpow2.f32 %v8089_v10 }
0x36a8   :  { %v8334_v28 = vpop.permute.xlu1 %8333 }
0x36ac   :  { %v8256_v31 = vpop.permute.xlu1 %8255 }
0x36b0   :  { %v8254_v37 = vpop.permute.xlu1 %8253 }
0x36b2   :  { %v10754_v25 = vpop.eup %10753 }
0x36b3   :  { %v8091_v14 = vsel %vm3788_vm7, %v10754_v25, 0.0  ;;  %v10756_v19 = vpop.eup %10755 }
0x36b4   :  { %8092 = vadd.xlane.f32.xlu0 %v8091_v14  ;;  %v8094_v22 = vsel %vm3788_vm7, %v10756_v19, 0.0 }
0x36b8   :  { %8095 = vadd.xlane.f32.xlu0 %v8094_v22 }
0x36ce   :  { %8177 = vrot.lane.b32.xlu0 %v12134_v42, %s12500_s26 }
0x36d2   :  { %8331 = vrot.lane.b32.xlu0 %v12168_v49, %s12504_s5  ;;  %s12519_s5 = sld [smem:[#allocation19_spill]] }
0x373d   :  { %v8093_v26 = vpop.xlane.xlu0 %8092 }
0x373e   :  { %10757 = vrcp.f32 %v8093_v26 }
0x3741   :  { %v8096_v27 = vpop.xlane.xlu0 %8095 }
0x3742   :  { %10759 = vrcp.f32 %v8096_v27 }
0x3745   :  { %v8178_v29 = vpop.permute.xlu0 %8177 }
0x3746   :  { %10441 = vmatpush3.msra.mxu1 %v8178_v29 }
0x3747   :  { %10450 = vmatprep.subr.mxu1 %v10803_v23 }
0x3749   :  { %v8332_v40 = vpop.permute.xlu0 %8331 }
0x374b   :  { %v10758_v30 = vpop.eup %10757 }
0x374c   :  { %v8099_v32 = vmul.f32 %v10758_v30, %v10754_v25 }
0x374e   :  { %10438 = vmatmul.mubr.msk.f32.vlgmr.msra.gmra.mxu0 %vm234_vm2, %v8099_v32 }
0x374f   :  { %v10760_v34 = vpop.eup %10759  ;;  %10446 = vmatpush3.xpose.msk.msra.mxu0 %vm234_vm2, %v8256_v31  ;;  %10447 = vmatprep.mubr.msk.f32.mxu0 %vm10804_vm1, %v10803_v23 }
0x3750   :  { %v8100_v33 = vmul.f32 %v10760_v34, %v10756_v19  ;;  %10455 = vmatprep.subr.mxu0 %v10803_v23 }
0x3752   :  { %10443 = vmatmul.mubr.msk.f32.vlgmr.msra.gmra.mxu1 %vm234_vm2, %v8100_v33  ;;  %10448 = vmatmul.mubr.msk.f32.vlgmr.msra.gmra.mxu0 %vm234_vm2, %v8254_v37 }
0x3753   :  { %10451 = vmatpush3.xpose.msk.msra.mxu1 %vm234_vm2, %v8334_v28  ;;  %10452 = vmatprep.mubr.msk.f32.mxu1 %vm10804_vm1, %v10803_v23 }
0x3754   :  { %10460 = vmatprep.subr.mxu1 %v10803_v23  ;;  %10457 = vmatprep.mubr.msk.f32.mxu0 %vm10804_vm1, %v10803_v23 }
0x3756   :  { %10453 = vmatmul.mubr.msk.f32.vlgmr.msra.gmra.mxu1 %vm234_vm2, %v8332_v40 }
0x3757   :  { %10462 = vmatprep.mubr.msk.f32.mxu1 %vm10804_vm1, %v10803_v23 }
0x380e   :  { %v8173_v21 = vpop.f32.mrf.mxu0 }
0x3810   :  { %v10439_v18 = vpop.f32.mrf.mxu0 }
0x3812   :  { %v8249_v44 = vpop.f32.mrf.mxu1  ;;  %v8327_v63 = vpop.f32.mrf.mxu0 }
0x3813   :  { %v8920_v15 = vrot.slane %v8249_v44, 7  ;;  %v8328_v46 = vadd.f32 %v8327_v63, %v11013_v35 }
0x3814   :  { %v10444_v16 = vpop.f32.mrf.mxu1  ;;  %v10449_v47 = vpop.f32.mrf.mxu0 }
0x3815   :  { %v8409_v0 = vsel %vm3788_vm7, %v8328_v46, -inf  ;;  %v12241_v50 = vsel %vm4522_vm10, %v8920_v15, %v8173_v21 }
0x3816   :  { %8410 = vmax.xlane.f32.xlu1 %v8409_v0  ;;  %v8405_v51 = vpop.f32.mrf.mxu1  ;;  %v9529_v0 = vld [vmem:[%s12514_s20 + $0x30] sm:$0xff] }
0x3817   :  { %v8406_v52 = vadd.f32 %v8405_v51, %v11022_v39  ;;  %v9527_v51 = vld [vmem:[%s12514_s20 + $0x20] sm:$0xff] }
0x3818   :  { %v10454_v3 = vpop.f32.mrf.mxu1 }
0x3819   :  { %v8412_v53 = vsel %vm3788_vm7, %v8406_v52, -inf }
0x381a   :  { %8413 = vmax.xlane.f32.xlu0 %v8412_v53 }
0x3827   :  { %8431 = vrot.lane.b32.xlu1 %v12137_v12, %s12503_s1 }
0x382b   :  { %8663 = vrot.lane.b32.xlu1 %v12134_v42, %s12507_s2 }
0x382f   :  { %8585 = vrot.lane.b32.xlu1 %v12137_v12, %s12507_s2 }
0x3833   :  { %8583 = vrot.lane.b32.xlu1 %v12177_v1, %s12507_s2 }
0x389f   :  { %v8411_v38 = vpop.xlane.xlu1 %8410 }
0x38a0   :  { %v8415_v36 = vsub.f32 %v8328_v46, %v8411_v38 }
0x38a2   :  { %v8417_v55 = vmul.f32 1.442695, %v8415_v36 }
0x38a3   :  { %v8432_v57 = vpop.permute.xlu1 %8431  ;;  %v8414_v59 = vpop.xlane.xlu0 %8413 }
0x38a4   :  { %10761 = vpow2.f32 %v8417_v55  ;;  %v8416_v60 = vsub.f32 %v8406_v52, %v8414_v59  ;;  %10456 = vmatpush3.msra.mxu0 %v8432_v57 }
0x38a5   :  { %10465 = vmatprep.subr.mxu0 %v10803_v23 }
0x38a6   :  { %v8419_v62 = vmul.f32 1.442695, %v8416_v60 }
0x38a7   :  { %v8664_v6 = vpop.permute.xlu1 %8663 }
0x38a8   :  { %10763 = vpow2.f32 %v8419_v62 }
0x38ab   :  { %v8586_v4 = vpop.permute.xlu1 %8585 }
0x38af   :  { %v8584_v7 = vpop.permute.xlu1 %8583 }
0x38b1   :  { %v10762_v61 = vpop.eup %10761 }
0x38b2   :  { %v8421_v41 = vsel %vm3788_vm7, %v10762_v61, 0.0 }
0x38b3   :  { %8422 = vadd.xlane.f32.xlu0 %v8421_v41 }
0x38b5   :  { %v10764_v2 = vpop.eup %10763 }
0x38b6   :  { %v8424_v5 = vsel %vm3788_vm7, %v10764_v2, 0.0 }
0x38b7   :  { %8425 = vadd.xlane.f32.xlu0 %v8424_v5 }
0x38cd   :  { %8507 = vrot.lane.b32.xlu0 %v12134_v42, %s12503_s1 }
0x38d1   :  { %8661 = vrot.lane.b32.xlu0 %v12168_v49, %s12507_s2 }
0x393c   :  { %v8423_v1 = vpop.xlane.xlu0 %8422 }
0x393d   :  { %10765 = vrcp.f32 %v8423_v1 }
0x3940   :  { %v8426_v24 = vpop.xlane.xlu0 %8425 }
0x3941   :  { %10767 = vrcp.f32 %v8426_v24 }
0x3944   :  { %v8508_v58 = vpop.permute.xlu0 %8507 }
0x3945   :  { %10461 = vmatpush3.msra.mxu1 %v8508_v58  ;;  %v9536_v58 = vld [vmem:[%s12515_s19 + $0x30] sm:$0xff] }
0x3946   :  { %10470 = vmatprep.subr.mxu1 %v10803_v23 }
0x3948   :  { %v8662_v8 = vpop.permute.xlu0 %8661 }
0x394a   :  { %v10766_v56 = vpop.eup %10765 }
0x394b   :  { %v8429_v43 = vmul.f32 %v10766_v56, %v10762_v61  ;;  %v9534_v56 = vld [vmem:[%s12515_s19 + $0x20] sm:$0xff] }
0x394d   :  { %10458 = vmatmul.mubr.msk.f32.vlgmr.msra.gmra.mxu0 %vm234_vm2, %v8429_v43  ;;  %v9545_v43 = vld [vmem:[%s12516_s18 + $0x70] sm:$0xff] }
0x394e   :  { %v10768_v48 = vpop.eup %10767  ;;  %10466 = vmatpush3.xpose.msk.msra.mxu0 %vm234_vm2, %v8586_v4  ;;  %10467 = vmatprep.mubr.msk.f32.mxu0 %vm10804_vm1, %v10803_v23  ;;  %v9546_v4 = vld [vmem:[%s12516_s18 + $0x78] sm:$0xff] }
0x394f   :  { %v8430_v49 = vmul.f32 %v10768_v48, %v10764_v2  ;;  %10475 = vmatprep.subr.mxu0 %v10803_v23  ;;  %v9544_v48 = vld [vmem:[%s12516_s18 + $0x68] sm:$0xff] }
0x3951   :  { %10463 = vmatmul.mubr.msk.f32.vlgmr.msra.gmra.mxu1 %vm234_vm2, %v8430_v49  ;;  %10468 = vmatmul.mubr.msk.f32.vlgmr.msra.gmra.mxu0 %vm234_vm2, %v8584_v7  ;;  %v9543_v49 = vld [vmem:[%s12516_s18 + $0x60] sm:$0xff]  ;;  %v9542_v7 = vld [vmem:[%s12516_s18 + $0x58] sm:$0xff] }
0x3952   :  { %10471 = vmatpush3.xpose.msk.msra.mxu1 %vm234_vm2, %v8664_v6  ;;  %10472 = vmatprep.mubr.msk.f32.mxu1 %vm10804_vm1, %v10803_v23 }
0x3953   :  { %10480 = vmatprep.subr.mxu1 %v10803_v23  ;;  %10477 = vmatprep.mubr.msk.f32.mxu0 %vm10804_vm1, %v10803_v23 }
0x3955   :  { %10473 = vmatmul.mubr.msk.f32.vlgmr.msra.gmra.mxu1 %vm234_vm2, %v8662_v8  ;;  %v9541_v8 = vld [vmem:[%s12516_s18 + $0x50] sm:$0xff] }
0x3956   :  { %10482 = vmatprep.mubr.msk.f32.mxu1 %vm10804_vm1, %v10803_v23 }
0x3a0d   :  { %v8503_v45 = vpop.f32.mrf.mxu0 }
0x3a0f   :  { %v10459_v20 = vpop.f32.mrf.mxu0 }
0x3a11   :  { %v8579_v9 = vpop.f32.mrf.mxu1  ;;  %v8657_v10 = vpop.f32.mrf.mxu0 }
0x3a12   :  { %v8658_v11 = vadd.f32 %v8657_v10, %v11013_v35  ;;  %v8927_v28 = vrot.slane %v8579_v9, 7 }
0x3a13   :  { %v10464_v13 = vpop.f32.mrf.mxu1  ;;  %v10469_v25 = vpop.f32.mrf.mxu0 }
0x3a14   :  { %v8739_v14 = vsel %vm3788_vm7, %v8658_v11, -inf  ;;  %v8928_v35 = vsel %vm4522_vm10, %v8927_v28, %v8503_v45 }
0x3a15   :  { %8740 = vmax.xlane.f32.xlu1 %v8739_v14  ;;  %v8735_v19 = vpop.f32.mrf.mxu1  ;;  %v9540_v14 = vld [vmem:[%s12516_s18 + $0x48] sm:$0xff] }
0x3a16   :  { %v8736_v22 = vadd.f32 %v8735_v19, %v11022_v39  ;;  %v9539_v19 = vld [vmem:[%s12516_s18 + $0x40] sm:$0xff] }
0x3a17   :  { %v10474_v26 = vpop.f32.mrf.mxu1 }
0x3a18   :  { %v8742_v27 = vsel %vm3788_vm7, %v8736_v22, -inf }
0x3a19   :  { %8743 = vmax.xlane.f32.xlu0 %v8742_v27 }
0x3a26   :  { %8761 = vrot.lane.b32.xlu1 %v12137_v12, %s12513_s10 }
0x3a2a   :  { %8922 = vrot.lane.b32.xlu1 %v12241_v50, %s12509_s27  ;;  %v9528_v50 = vld [vmem:[%s12514_s20 + $0x28] sm:$0xff] }
0x3a2e   :  { %8929 = vrot.lane.b32.xlu1 %v8928_v35, %s12510_s24 }
0x3a9e   :  { %v8741_v29 = vpop.xlane.xlu1 %8740 }
0x3a9f   :  { %v8745_v30 = vsub.f32 %v8658_v11, %v8741_v29  ;;  %v9533_v11 = vld [vmem:[%s12518_s14 + $0x1] ss:$0 sm:$0xff] }
0x3aa1   :  { %v8747_v31 = vmul.f32 1.442695, %v8745_v30 }
0x3aa2   :  { %v8762_v32 = vpop.permute.xlu1 %8761  ;;  %v8744_v39 = vpop.xlane.xlu0 %8743 }
0x3aa3   :  { %10769 = vpow2.f32 %v8747_v31  ;;  %v8746_v34 = vsub.f32 %v8736_v22, %v8744_v39  ;;  %10476 = vmatpush3.msra.mxu0 %v8762_v32  ;;  %v9219_v32 = vld [vmem:[%s12519_s5 + $0x18] sm:$0xff]  ;;  %v9218_v39 = vld [vmem:[%s12519_s5 + $0x10] sm:$0xff] }
0x3aa4   :  { %10485 = vmatprep.subr.mxu0 %v10803_v23 }
0x3aa5   :  { %v8749_v33 = vmul.f32 1.442695, %v8746_v34  ;;  %v9217_v34 = vld [vmem:[%s12519_s5 + $0x8] sm:$0xff] }
0x3aa6   :  { %v8923_v57 = vpop.permute.xlu1 %8922 }
0x3aa7   :  { %10771 = vpow2.f32 %v8749_v33  ;;  %v8939_v60 = vsel %vm234_vm2, %v12200_v54, %v8923_v57  ;;  %v9537_v54 = vld [vmem:[%s12515_s19 + $0x38] sm:$0xff]  ;;  %v9216_v33 = vld [vmem:[%s12519_s5] sm:$0xff] }
0x3aaa   :  { %v8930_v59 = vpop.permute.xlu1 %8929 }
0x3aab   :  { %v8940_v62 = vsel %vm1588_vm4, %v8939_v60, %v8930_v59 }
0x3ab0   :  { %v10770_v12 = vpop.eup %10769 }
0x3ab1   :  { %v8751_v37 = vsel %vm3788_vm7, %v10770_v12, 0.0 }
0x3ab2   :  { %8752 = vadd.xlane.f32.xlu0 %v8751_v37 }
0x3ab4   :  { %v10772_v40 = vpop.eup %10771 }
0x3ab5   :  { %v8754_v21 = vsel %vm3788_vm7, %v10772_v40, 0.0 }
0x3ab6   :  { %8755 = vadd.xlane.f32.xlu0 %v8754_v21 }
0x3acc   :  { %8837 = vrot.lane.b32.xlu0 %v12134_v42, %s12513_s10  ;;  %v9530_v42 = vld [vmem:[%s12514_s20 + $0x38] sm:$0xff] }
0x3b3b   :  { %v8753_v18 = vpop.xlane.xlu0 %8752 }
0x3b3c   :  { %10773 = vrcp.f32 %v8753_v18  ;;  %v9548_v18 = vld [vmem:[%s12520_s9] ss:$0 sm:$0xff] }
0x3b3f   :  { %v8756_v44 = vpop.xlane.xlu0 %8755 }
0x3b40   :  { %10775 = vrcp.f32 %v8756_v44 }
0x3b43   :  { %v8838_v63 = vpop.permute.xlu0 %8837 }
0x3b44   :  { %10481 = vmatpush3.msra.mxu1 %v8838_v63 }
0x3b45   :  { %10496 = vmatprep.subr.mxu1 %v10803_v23 }
0x3b49   :  { %v10774_v15 = vpop.eup %10773 }
0x3b4a   :  { %v8759_v46 = vmul.f32 %v10774_v15, %v10770_v12  ;;  %v9549_v15 = vld [vmem:[%s12521_s11] ss:$0 sm:$0xff] }
0x3b4c   :  { %10478 = vmatmul.mubr.msk.f32.vlgmr.msra.gmra.mxu0 %vm234_vm2, %v8759_v46 }
0x3b4d   :  { %v10776_v16 = vpop.eup %10775  ;;  %10493 = vmatprep.mubr.msk.f32.mxu0 %vm10804_vm1, %v10803_v23  ;;  %10486 = vmatpush3.msra.mxu0 %v9530_v42 }
0x3b4e   :  { %v8760_v47 = vmul.f32 %v10776_v16, %v10772_v40  ;;  %10487 = vmatprep.subr.mxu0 %v10803_v23 }
0x3b4f   :  { %10488 = vmatpush3.msra.mxu0 %v9529_v0 }
0x3b50   :  { %10483 = vmatmul.mubr.msk.f32.vlgmr.msra.gmra.mxu1 %vm234_vm2, %v8760_v47  ;;  %10489 = vmatprep.subr.mxu0 %v10803_v23 }
0x3b51   :  { %10504 = vmatprep.mubr.msk.f32.mxu1 %vm10804_vm1, %v10803_v23  ;;  %10490 = vmatpush3.msra.mxu0 %v9528_v50 }
0x3b52   :  { %10491 = vmatprep.subr.mxu0 %v10803_v23  ;;  %10497 = vmatpush3.msra.mxu1 %v9537_v54 }
0x3b53   :  { %10492 = vmatpush3.msra.mxu0 %v9527_v51  ;;  %10498 = vmatprep.subr.mxu1 %v10803_v23 }
0x3b54   :  { %10507 = vmatprep.subr.mxu0 %v10803_v23  ;;  %10499 = vmatpush3.msra.mxu1 %v9536_v58 }
0x3b55   :  { %10500 = vmatprep.subr.mxu1 %v10803_v23 }
0x3c0c   :  { %v8833_v52 = vpop.f32.mrf.mxu0 }
0x3c0e   :  { %v10479_v3 = vpop.f32.mrf.mxu0 }
0x3c10   :  { %v8909_v53 = vpop.f32.mrf.mxu1 }
0x3c11   :  { %v8934_v38 = vrot.slane %v8909_v53, 7 }
0x3c12   :  { %v10484_v36 = vpop.f32.mrf.mxu1 }
0x3c13   :  { %v8935_v55 = vsel %vm4522_vm10, %v8934_v38, %v8833_v52 }
0x3c14   :  { %8936 = vrot.lane.b32.xlu0 %v8935_v55, %s12511_s21 }
0x3c86   :  { %v8937_v61 = vpop.permute.xlu0 %8936 }
0x3c87   :  { %v8941_v41 = vsel %vm1591_vm3, %v8940_v62, %v8937_v61 }
0x3c88   :  { %10494 = vmatmul.mubr.msk.f32.vlgmr.msra.gmra.mxu0 %vm84_vm0, %v8941_v41 }
0x3c89   :  { %10523 = vmatprep.mubr.msk.f32.mxu0 %vm10804_vm1, %v10803_v23  ;;  %10508 = vmatpush3.msra.mxu0 %v9546_v4 }
0x3c8a   :  { %10509 = vmatprep.subr.mxu0 %v10803_v23 }
0x3c8b   :  { %10510 = vmatpush3.msra.mxu0 %v9545_v43 }
0x3c8c   :  { %10511 = vmatprep.subr.mxu0 %v10803_v23 }
0x3c8d   :  { %10512 = vmatpush3.msra.mxu0 %v9544_v48 }
0x3c8e   :  { %10513 = vmatprep.subr.mxu0 %v10803_v23 }
0x3c8f   :  { %10514 = vmatpush3.msra.mxu0 %v9543_v49 }
0x3c90   :  { %10515 = vmatprep.subr.mxu0 %v10803_v23 }
0x3c91   :  { %10516 = vmatpush3.msra.mxu0 %v9542_v7 }
0x3c92   :  { %10517 = vmatprep.subr.mxu0 %v10803_v23 }
0x3c93   :  { %10518 = vmatpush3.msra.mxu0 %v9541_v8 }
0x3c94   :  { %10519 = vmatprep.subr.mxu0 %v10803_v23 }
0x3c95   :  { %10520 = vmatpush3.msra.mxu0 %v9540_v14 }
0x3c96   :  { %10521 = vmatprep.subr.mxu0 %v10803_v23 }
0x3c97   :  { %10522 = vmatpush3.msra.mxu0 %v9539_v19 }
0x3d48   :  { %v9016_v2 = vpop.f32.mrf.mxu0 }
0x3d49   :  { %v9020_v5 = vadd.f32 %v9016_v2, %v12110_v17  ;;  %v9535_v17 = vld [vmem:[%s12515_s19 + $0x28] sm:$0xff] }
0x3d4a   :  { %v10495_v1 = vpop.f32.mrf.mxu0  ;;  %10501 = vmatpush3.msra.mxu1 %v9535_v17 }
0x3d4b   :  { %v9023_v24 = vmul.f32 %v9020_v5, %v9020_v5  ;;  %10502 = vmatprep.subr.mxu1 %v10803_v23 }
0x3d4c   :  { %10503 = vmatpush3.msra.mxu1 %v9534_v56 }
0x3d4d   :  { %v9024_v6 = vsel %vm3667_vm6, %v9023_v24, 0.0  ;;  %10526 = vmatprep.subr.mxu1 %v10803_v23 }
0x3d4e   :  { %9025 = vadd.xlane.f32.xlu1 %v9024_v6 }
0x3dd7   :  { %v9026_v45 = vpop.xlane.xlu1 %9025 }
0x3dd8   :  { %v9027_v20 = vmul.f32 0.03125, %v9026_v45 }
0x3dda   :  { %v9028_v9 = vadd.f32 1e-06, %v9027_v20 }
0x3ddc   :  { %10777 = vrsqrt.f32 %v9028_v9 }
0x3de9   :  { %v10778_v10 = vpop.eup %10777 }
0x3dea   :  { %v9030_v13 = vmul.f32 %v10778_v10, %v9020_v5 }
0x3dec   :  { %v9037_v25 = vmul.f32 %v9533_v11, %v9030_v13 }
0x3dee   :  { %10505 = vmatmul.mubr.msk.f32.vlgmr.msra.gmra.mxu1 %vm84_vm0, %v9037_v25 }
0x3def   :  { %10534 = vmatprep.mubr.msk.f32.mxu1 %vm10804_vm1, %v10803_v23  ;;  %10527 = vmatpush3.msra.mxu1 %v9219_v32 }
0x3df0   :  { %10528 = vmatprep.subr.mxu1 %v10803_v23 }
0x3df1   :  { %10529 = vmatpush3.msra.mxu1 %v9218_v39 }
0x3df2   :  { %10530 = vmatprep.subr.mxu1 %v10803_v23 }
0x3df3   :  { %10531 = vmatpush3.msra.mxu1 %v9217_v34 }
0x3df4   :  { %10532 = vmatprep.subr.mxu1 %v10803_v23 }
0x3df5   :  { %10533 = vmatpush3.msra.mxu1 %v9216_v33 }
0x3eae   :  { %v9112_v22 = vpop.f32.mrf.mxu1 }
0x3eaf   :  { %v9116_v26 = vmax.f32 %v9112_v22, 0.0 }
0x3eb0   :  { %v10506_v27 = vpop.f32.mrf.mxu1 }
0x3eb1   :  { %10524 = vmatmul.mubr.msk.f32.vlgmr.msra.gmra.mxu0 %vm1801_vm5, %v9116_v26 }
0x3f71   :  { %v9195_v28 = vpop.f32.mrf.mxu0 }
0x3f72   :  { %v9199_v35 = vadd.f32 %v9195_v28, %v9020_v5 }
0x3f73   :  { %v10525_v29 = vpop.f32.mrf.mxu0 }
0x3f74   :  { %v9201_v30 = vmul.f32 %v9199_v35, %v9199_v35 }
0x3f76   :  { %v9202_v31 = vsel %vm3667_vm6, %v9201_v30, 0.0 }
0x3f77   :  { %9203 = vadd.xlane.f32.xlu0 %v9202_v31 }
0x4000   :  { %v9204_v12 = vpop.xlane.xlu0 %9203 }
0x4001   :  { %v9205_v37 = vmul.f32 0.03125, %v9204_v12 }
0x4003   :  { %v9206_v40 = vadd.f32 1e-06, %v9205_v37 }
0x4005   :  { %10779 = vrsqrt.f32 %v9206_v40 }
0x4012   :  { %v10780_v21 = vpop.eup %10779 }
0x4013   :  { %v9208_v44 = vmul.f32 %v10780_v21, %v9199_v35 }
0x4015   :  { %v9215_v63 = vmul.f32 %v9548_v18, %v9208_v44 }
0x4017   :  { %10535 = vmatmul.mubr.msk.f32.vlgmr.msra.gmra.mxu1 %vm84_vm0, %v9215_v63 }
0x40d7   :  { %v9296_v23 = vpop.f32.mrf.mxu1 }
0x40d8   :  { %v9297_v46 = vadd.f32 %v9549_v15, %v9296_v23 }
0x40d9   :  { %v10536_v16 = vpop.f32.mrf.mxu1 }
0x40da   :  { %9301 = vst.msk [vmem:[#allocation2] sm:$0x3] %vm9300_vm11, %v9297_v46 }
0x40db   :  { %10792 = shalt.err (!%p10789_p4)
}
0x40dc   :  { %s12522_s28 = sld [smem:[#allocation21_spill]] }
0x40e2   :  { %9311 = dma.vmem_to_hbm [thread:$0]  %s9309_s13, 32, %s12522_s28, [#allocation3]  }
0x40e3   :  { %10801 = dma.done.wait [#allocation3], 32  }
0x40e4   :  { %10802 = vsyncadd [#allocation3], 4294967264 }
0x40e5   :  { %9315 = vsyncpa [#allocation3], 1 }

</bundles_post_ra>
